<compile_context>
chip_gen: v6e
topology: v6e:2x2x1
jax: 0.10.0
libtpu: 0.0.40
codegen_flags: <defaults>
</compile_context>

<pallas_src>
import functools

import numpy as np

import jax
import jax.numpy as jnp
from jax.experimental import pallas as pl
from jax.experimental.pallas import tpu as pltpu


# ---------------------------------------------------------------------------
# Bicubic x2 interpolation matrix (PyTorch F.interpolate semantics:
# mode='bicubic', align_corners=False, A=-0.75, taps clamped to the border).
# ---------------------------------------------------------------------------
def _cubic_inner(t, a):          # |x| <= 1
    return ((a + 2.0) * t - (a + 3.0)) * t * t + 1.0


def _cubic_outer(t, a):          # 1 < |x| < 2
    return ((a * t - 5.0 * a) * t + 8.0 * a) * t - 4.0 * a


def _bicubic_x2_matrix(in_size, a=-0.75):
    """(2*in_size, in_size) matrix M such that  upsampled = M @ signal (1 axis)."""
    out_size = 2 * in_size
    scale = in_size / out_size                    # 0.5 (align_corners=False)
    m = np.zeros((out_size, in_size), dtype=np.float64)
    for o in range(out_size):
        s = (o + 0.5) * scale - 0.5
        i0 = int(np.floor(s))
        t = s - i0
        w = (_cubic_outer(1.0 + t, a), _cubic_inner(t, a),
             _cubic_inner(1.0 - t, a), _cubic_outer(2.0 - t, a))
        for k in range(4):
            idx = min(max(i0 - 1 + k, 0), in_size - 1)     # border replicate
            m[o, idx] += w[k]
    return m.astype(np.float32)


def _flat_upsample_operators(h, w):
    """Kronecker-lifted per-axis bicubic operators on flattened pixels.

    up_flat = (x_flat @ Aw) @ Ah with x_flat: (B, h*w); result pixel index is
    p = y*(2w) + x.  This keeps the whole upsample as two plain 2-D,
    lane-dense MXU matmuls (no in-kernel relayouts, batched dots or
    transposes).  Constants are ~2.5 MiB here; for large images tile rows
    over the grid instead so the per-tile operators stay small.
    """
    uh = _bicubic_x2_matrix(h)                              # (2h, h)
    uw = _bicubic_x2_matrix(w)                              # (2w, w)
    aw = np.kron(np.eye(h, dtype=np.float32), uw.T)         # (h*w,  h*2w)
    ah = np.kron(uh.T, np.eye(2 * w, dtype=np.float32))     # (h*2w, 2h*2w)
    return aw, ah


# ---------------------------------------------------------------------------
# Kernels
# ---------------------------------------------------------------------------
def _upsample_x2(x_ref, aw_ref, ah_ref, compute_dtype):
    # two lane-dense 2-D matmuls, f32 accumulation
    t = jnp.dot(x_ref[...], aw_ref[...], preferred_element_type=jnp.float32)
    u = jnp.dot(t.astype(compute_dtype), ah_ref[...],
                preferred_element_type=jnp.float32)
    return u                     # (N*C, 4*H*W) float32, pixel-flattened


def _upsample_kernel(aw_ref, ah_ref, x_ref, out_ref, *, compute_dtype):
    out_ref[...] = _upsample_x2(x_ref, aw_ref, ah_ref, compute_dtype).astype(
        out_ref.dtype)


def _upsample_conv_kernel(aw_ref, ah_ref, x_ref, w_ref, b_ref, out_ref, pad_ref,
                          *, n_batch, channels, h_out, w_out, compute_dtype):
    cd = compute_dtype
    p = h_out * w_out

    # ---- bicubic x2 upsample --------------------------------------------
    u = _upsample_x2(x_ref, aw_ref, ah_ref, cd)              # (N*C, P) f32

    # ---- row-padded, pixel-flattened activation in a VMEM scratch --------
    # pad_ref[b, 1 + r*w_out + s] holds row r of the zero-row-padded image
    # (rows r=0 and r=h_out+1 are the conv's top/bottom zero padding; one
    #  extra element at each end keeps the +-1 column shifts in bounds).
    pad_ref[...] = jnp.zeros_like(pad_ref)
    pad_ref[:, 1 + w_out:1 + w_out + p] = u.astype(cd)

    # Column masks: a +-1 horizontal tap on the flat layout wraps across row
    # ends, so column 0 / w_out-1 must be zeroed for dx = -1 / +1.
    col = jax.lax.broadcasted_iota(jnp.int32, (1, p), 1) % w_out
    keep_left = col != 0               # valid lanes when dx = -1
    keep_right = col != (w_out - 1)    # valid lanes when dx = +1

    bias = b_ref[...].astype(jnp.float32)                    # (C, 1)

    # ---- 3x3 conv: 9 shifted, lane-dense (C,C)@(C,P) matmuls, f32 accum --
    for n in range(n_batch):
        r0 = n * channels
        acc = jnp.zeros((channels, p), jnp.float32)
        for kh in range(3):
            for kw in range(3):
                dy, dx = kh - 1, kw - 1
                start = 1 + (1 + dy) * w_out + dx
                rhs = pad_ref[r0:r0 + channels, start:start + p]   # (C, P)
                if dx == -1:
                    rhs = jnp.where(keep_left, rhs, 0)
                elif dx == 1:
                    rhs = jnp.where(keep_right, rhs, 0)
                acc = acc + jnp.dot(w_ref[kh * 3 + kw], rhs,
                                    preferred_element_type=jnp.float32)
        out_ref[r0:r0 + channels, :] = (acc + bias).astype(out_ref.dtype)


# ---------------------------------------------------------------------------
# Public wrapper (PyTorch NCHW convention in / out)
# ---------------------------------------------------------------------------
@functools.partial(jax.jit, static_argnames=("use_conv", "compute_dtype"))
def conv_upsample_x2(x, weight=None, bias=None, *, use_conv=True,
                     compute_dtype=jnp.bfloat16):
    """Forward of CONVUpsamplex2.

    x:      (N, C, H, W) float32
    weight: (C, C, 3, 3) float32 (PyTorch Conv2d weight)  [use_conv=True]
    bias:   (C,)         float32 (PyTorch Conv2d bias)    [use_conv=True]
    returns (N, C, 2H, 2W) float32
    """
    n, c, h, w = x.shape
    h2, w2 = 2 * h, 2 * w
    p = h2 * w2
    nc = n * c
    cd = compute_dtype

    aw_np, ah_np = _flat_upsample_operators(h, w)
    aw = jnp.asarray(aw_np, dtype=cd)                 # (H*W,  H*2W)
    ah = jnp.asarray(ah_np, dtype=cd)                 # (H*2W, 2H*2W)
    x_flat = x.reshape(nc, h * w).astype(cd)          # free reshape (row-major)

    common = dict(
        grid=(1,),                                    # single step: all in VMEM
        compiler_params=pltpu.CompilerParams(
            dimension_semantics=("parallel",)),
    )

    if use_conv:
        assert weight is not None and bias is not None
        # per-tap weights, tap index k = kh*3 + kw, w_taps[k] = weight[:, :, kh, kw]
        w_taps = weight.transpose(2, 3, 0, 1).reshape(9, c, c).astype(cd)
        b_col = bias.astype(jnp.float32).reshape(c, 1)
        kernel = functools.partial(
            _upsample_conv_kernel, n_batch=n, channels=c, h_out=h2, w_out=w2,
            compute_dtype=cd)
        out_flat = pl.pallas_call(
            kernel,
            out_shape=jax.ShapeDtypeStruct((nc, p), jnp.float32),
            in_specs=[
                pl.BlockSpec((h * w, h * w2), lambda i: (0, 0)),
                pl.BlockSpec((h * w2, p), lambda i: (0, 0)),
                pl.BlockSpec((nc, h * w), lambda i: (0, 0)),
                pl.BlockSpec((9, c, c), lambda i: (0, 0, 0)),
                pl.BlockSpec((c, 1), lambda i: (0, 0)),
            ],
            out_specs=pl.BlockSpec((nc, p), lambda i: (0, 0)),
            scratch_shapes=[pltpu.VMEM((nc, (h2 + 2) * w2 + 2), cd)],
            **common,
        )(aw, ah, x_flat, w_taps, b_col)
    else:
        kernel = functools.partial(_upsample_kernel, compute_dtype=cd)
        out_flat = pl.pallas_call(
            kernel,
            out_shape=jax.ShapeDtypeStruct((nc, p), jnp.float32),
            in_specs=[
                pl.BlockSpec((h * w, h * w2), lambda i: (0, 0)),
                pl.BlockSpec((h * w2, p), lambda i: (0, 0)),
                pl.BlockSpec((nc, h * w), lambda i: (0, 0)),
            ],
            out_specs=pl.BlockSpec((nc, p), lambda i: (0, 0)),
            **common,
        )(aw, ah, x_flat)

    # (N*C, 4HW) -> (N, C, 2H, 2W): layout-preserving reshape, no transpose.
    return out_flat.reshape(n, c, h2, w2)


# ---------------------------------------------------------------------------
# Plain-JAX reference (same PyTorch bicubic semantics) for verification
# ---------------------------------------------------------------------------
def _reference(x, weight, bias, use_conv):
    _, _, h, w = x.shape
    uh = jnp.asarray(_bicubic_x2_matrix(h))
    uw = jnp.asarray(_bicubic_x2_matrix(w))
    up = jnp.einsum("oh,nchw,vw->ncov", uh, x, uw,
                    precision=jax.lax.Precision.HIGHEST)
    if not use_conv:
        return up
    y = jax.lax.conv_general_dilated(
        up, weight, window_strides=(1, 1), padding=((1, 1), (1, 1)),
        dimension_numbers=("NCHW", "OIHW", "NCHW"),
        precision=jax.lax.Precision.HIGHEST)
    return y + bias[None, :, None, None]


if __name__ == "__main__":
    # CONVUpsamplex2(channels=16, use_conv=True) on a small feature map.
    n, c, h, w = 2, 16, 16, 16
    key = jax.random.PRNGKey(0)
    kx, kwt, kb = jax.random.split(key, 3)
    x = jax.random.normal(kx, (n, c, h, w), dtype=jnp.float32)
    weight = jax.random.normal(kwt, (c, c, 3, 3), dtype=jnp.float32) * 0.1
    bias = jax.random.normal(kb, (c,), dtype=jnp.float32) * 0.1

    ref_conv = _reference(x, weight, bias, use_conv=True)
    ref_up = _reference(x, weight, bias, use_conv=False)

    # Tolerance sized for bf16 MXU operands with f32 accumulation (and for the
    # compiler's bf16-pass emulation of f32 matmuls); indexing / weight bugs
    # would show up as O(1) errors.
    tol = dict(atol=5e-2, rtol=5e-2)

    # 1) deploy default: bf16 operands on the MXU, f32 accumulation.
    out = jax.block_until_ready(conv_upsample_x2(x, weight, bias, use_conv=True))
    assert out.shape == (n, c, 2 * h, 2 * w), out.shape
    assert jnp.allclose(out, ref_conv, **tol), float(jnp.max(jnp.abs(out - ref_conv)))

    # 2) full-f32 path (exact module numerics).
    out32 = jax.block_until_ready(
        conv_upsample_x2(x, weight, bias, use_conv=True,
                         compute_dtype=jnp.float32))
    assert jnp.allclose(out32, ref_conv, **tol), float(jnp.max(jnp.abs(out32 - ref_conv)))

    # 3) use_conv=False branch (pure bicubic x2 upsample).
    out_up = jax.block_until_ready(
        conv_upsample_x2(x, use_conv=False, compute_dtype=jnp.float32))
    assert out_up.shape == (n, c, 2 * h, 2 * w), out_up.shape
    assert jnp.allclose(out_up, ref_up, **tol), float(jnp.max(jnp.abs(out_up - ref_up)))

    print("KERNEL_OK")
</pallas_src>

<mosaic_0001>
module attributes {stable_mosaic.version = 11 : i64} {
  func.func @_upsample_conv_kernel(%arg0: i32, %arg1: memref<256x512xbf16, #tpu.memory_space<vmem>>, %arg2: memref<512x1024xbf16, #tpu.memory_space<vmem>>, %arg3: memref<32x256xbf16, #tpu.memory_space<vmem>>, %arg4: memref<9x16x16xbf16, #tpu.memory_space<vmem>>, %arg5: memref<16x1xf32, #tpu.memory_space<vmem>>, %arg6: memref<32x1024xf32, #tpu.memory_space<vmem>>, %arg7: memref<32x1090xbf16, #tpu.memory_space<vmem>>) attributes {dimension_semantics = [#tpu.dimension_semantics<parallel>], iteration_bounds = array<i64: 1>, scalar_prefetch = 0 : i64, scratch_operands = 1 : i64, tpu.core_type = #tpu.core_type<tc>, window_params = [{pipeline_mode = #tpu.pipeline_mode<synchronous>, transform_indices = @transform_0, window_bounds = array<i64: 256, 512>}, {pipeline_mode = #tpu.pipeline_mode<synchronous>, transform_indices = @transform_1, window_bounds = array<i64: 512, 1024>}, {pipeline_mode = #tpu.pipeline_mode<synchronous>, transform_indices = @transform_2, window_bounds = array<i64: 32, 256>}, {pipeline_mode = #tpu.pipeline_mode<synchronous>, transform_indices = @transform_3, window_bounds = array<i64: 9, 16, 16>}, {pipeline_mode = #tpu.pipeline_mode<synchronous>, transform_indices = @transform_4, window_bounds = array<i64: 16, 1>}, {pipeline_mode = #tpu.pipeline_mode<synchronous>, transform_indices = @transform_5, window_bounds = array<i64: 32, 1024>}]} {
    %c0 = arith.constant 0 : index
    %c0_0 = arith.constant 0 : index
    %0 = vector.load %arg3[%c0, %c0_0] : memref<32x256xbf16, #tpu.memory_space<vmem>>, vector<32x256xbf16>
    %c0_1 = arith.constant 0 : index
    %c0_2 = arith.constant 0 : index
    %1 = vector.load %arg1[%c0_1, %c0_2] : memref<256x512xbf16, #tpu.memory_space<vmem>>, vector<256x512xbf16>
    %cst = arith.constant dense<0.000000e+00> : vector<32x512xf32>
    %2 = tpu.matmul %0, %1, %cst {dimension_numbers = #tpu.dot_dimension_numbers<[1], [0], [0], [1], [0, 0, 1, 1], [], []>} : vector<32x256xbf16>, vector<256x512xbf16>, vector<32x512xf32> -> vector<32x512xf32>
    %3 = arith.truncf %2 : vector<32x512xf32> to vector<32x512xbf16>
    %c0_3 = arith.constant 0 : index
    %c0_4 = arith.constant 0 : index
    %4 = vector.load %arg2[%c0_3, %c0_4] : memref<512x1024xbf16, #tpu.memory_space<vmem>>, vector<512x1024xbf16>
    %cst_5 = arith.constant dense<0.000000e+00> : vector<32x1024xf32>
    %5 = tpu.matmul %3, %4, %cst_5 {dimension_numbers = #tpu.dot_dimension_numbers<[1], [0], [0], [1], [0, 0, 1, 1], [], []>} : vector<32x512xbf16>, vector<512x1024xbf16>, vector<32x1024xf32> -> vector<32x1024xf32>
    %cst_6 = arith.constant 0.000000e+00 : bf16
    %6 = vector.broadcast %cst_6 : bf16 to vector<32x1090xbf16>
    %c0_7 = arith.constant 0 : index
    %c0_8 = arith.constant 0 : index
    %7 = vector.load %arg7[%c0_7, %c0_8] : memref<32x1090xbf16, #tpu.memory_space<vmem>>, vector<32x1090xbf16>
    tpu.vector_store %arg7[%c0_7, %c0_8], %6 {strides = array<i32>} : memref<32x1090xbf16, #tpu.memory_space<vmem>>, vector<32x1090xbf16>,
    %8 = arith.truncf %5 : vector<32x1024xf32> to vector<32x1024xbf16>
    %c0_9 = arith.constant 0 : index
    %c33 = arith.constant 33 : index
    %9 = vector.load %arg7[%c0_9, %c33] : memref<32x1090xbf16, #tpu.memory_space<vmem>>, vector<32x1024xbf16>
    tpu.vector_store %arg7[%c0_9, %c33], %8 {strides = array<i32>} : memref<32x1090xbf16, #tpu.memory_space<vmem>>, vector<32x1024xbf16>,
    %10 = tpu.iota {dimensions = array<i32: 1>} : vector<1x1024xi32>
    %c32_i32 = arith.constant 32 : i32
    %c0_i32 = arith.constant 0 : i32
    %11 = arith.cmpi eq, %c32_i32, %c0_i32 : i32
    %c1_i32 = arith.constant 1 : i32
    %12 = arith.select %11, %c1_i32, %c32_i32 : i32
    %13 = vector.broadcast %12 : i32 to vector<1x1024xi32>
    %14 = arith.remsi %10, %13 : vector<1x1024xi32>
    %c0_i32_10 = arith.constant 0 : i32
    %15 = vector.broadcast %c0_i32_10 : i32 to vector<1x1024xi32>
    %16 = arith.cmpi ne, %14, %15 : vector<1x1024xi32>
    %c0_i32_11 = arith.constant 0 : i32
    %17 = vector.broadcast %c0_i32_11 : i32 to vector<1x1024xi32>
    %18 = arith.cmpi slt, %14, %17 : vector<1x1024xi32>
    %c0_i32_12 = arith.constant 0 : i32
    %19 = arith.cmpi slt, %12, %c0_i32_12 : i32
    %20 = vector.broadcast %19 : i1 to vector<1x1024xi1>
    %21 = vector.broadcast %20 : vector<1x1024xi1> to vector<1x1024xi1>
    %22 = arith.xori %18, %21 : vector<1x1024xi1>
    %23 = arith.andi %22, %16 : vector<1x1024xi1>
    %24 = vector.broadcast %12 : i32 to vector<1x1024xi32>
    %25 = arith.addi %14, %24 : vector<1x1024xi32>
    %26 = arith.select %23, %25, %14 : vector<1x1024xi1>, vector<1x1024xi32>
    %c0_i32_13 = arith.constant 0 : i32
    %27 = vector.broadcast %c0_i32_13 : i32 to vector<1x1024xi32>
    %28 = arith.cmpi ne, %26, %27 : vector<1x1024xi32>
    %c31_i32 = arith.constant 31 : i32
    %29 = vector.broadcast %c31_i32 : i32 to vector<1x1024xi32>
    %30 = arith.cmpi ne, %26, %29 : vector<1x1024xi32>
    %c0_14 = arith.constant 0 : index
    %c0_15 = arith.constant 0 : index
    %31 = vector.load %arg5[%c0_14, %c0_15] : memref<16x1xf32, #tpu.memory_space<vmem>>, vector<16x1xf32>
    %cst_16 = arith.constant 0.000000e+00 : f32
    %32 = vector.broadcast %cst_16 : f32 to vector<16x1024xf32>
    %c0_17 = arith.constant 0 : index
    %c0_18 = arith.constant 0 : index
    %33 = vector.load %arg7[%c0_17, %c0_18] : memref<32x1090xbf16, #tpu.memory_space<vmem>>, vector<16x1024xbf16>
    %c0_i32_19 = arith.constant 0 : i32
    %34 = arith.sitofp %c0_i32_19 : i32 to bf16
    %35 = vector.shape_cast %28 : vector<1x1024xi1> to vector<1x1024xi1>
    %36 = vector.broadcast %35 : vector<1x1024xi1> to vector<16x1024xi1>
    %37 = vector.broadcast %34 : bf16 to vector<16x1024xbf16>
    %38 = arith.select %36, %33, %37 : vector<16x1024xi1>, vector<16x1024xbf16>
    %c0_20 = arith.constant 0 : index
    %c0_21 = arith.constant 0 : index
    %c0_22 = arith.constant 0 : index
    %39 = vector.load %arg4[%c0_20, %c0_21, %c0_22] : memref<9x16x16xbf16, #tpu.memory_space<vmem>>, vector<1x16x16xbf16>
    %40 = vector.shape_cast %39 : vector<1x16x16xbf16> to vector<16x16xbf16>
    %cst_23 = arith.constant dense<0.000000e+00> : vector<16x1024xf32>
    %41 = tpu.matmul %40, %38, %cst_23 {dimension_numbers = #tpu.dot_dimension_numbers<[1], [0], [0], [1], [0, 0, 1, 1], [], []>} : vector<16x16xbf16>, vector<16x1024xbf16>, vector<16x1024xf32> -> vector<16x1024xf32>
    %42 = arith.addf %32, %41 : vector<16x1024xf32>
    %c0_24 = arith.constant 0 : index
    %c1 = arith.constant 1 : index
    %43 = vector.load %arg7[%c0_24, %c1] : memref<32x1090xbf16, #tpu.memory_space<vmem>>, vector<16x1024xbf16>
    %c1_25 = arith.constant 1 : index
    %c0_26 = arith.constant 0 : index
    %c0_27 = arith.constant 0 : index
    %44 = vector.load %arg4[%c1_25, %c0_26, %c0_27] : memref<9x16x16xbf16, #tpu.memory_space<vmem>>, vector<1x16x16xbf16>
    %45 = vector.shape_cast %44 : vector<1x16x16xbf16> to vector<16x16xbf16>
    %cst_28 = arith.constant dense<0.000000e+00> : vector<16x1024xf32>
    %46 = tpu.matmul %45, %43, %cst_28 {dimension_numbers = #tpu.dot_dimension_numbers<[1], [0], [0], [1], [0, 0, 1, 1], [], []>} : vector<16x16xbf16>, vector<16x1024xbf16>, vector<16x1024xf32> -> vector<16x1024xf32>
    %47 = arith.addf %42, %46 : vector<16x1024xf32>
    %c0_29 = arith.constant 0 : index
    %c2 = arith.constant 2 : index
    %48 = vector.load %arg7[%c0_29, %c2] : memref<32x1090xbf16, #tpu.memory_space<vmem>>, vector<16x1024xbf16>
    %c0_i32_30 = arith.constant 0 : i32
    %49 = arith.sitofp %c0_i32_30 : i32 to bf16
    %50 = vector.shape_cast %30 : vector<1x1024xi1> to vector<1x1024xi1>
    %51 = vector.broadcast %50 : vector<1x1024xi1> to vector<16x1024xi1>
    %52 = vector.broadcast %49 : bf16 to vector<16x1024xbf16>
    %53 = arith.select %51, %48, %52 : vector<16x1024xi1>, vector<16x1024xbf16>
    %c2_31 = arith.constant 2 : index
    %c0_32 = arith.constant 0 : index
    %c0_33 = arith.constant 0 : index
    %54 = vector.load %arg4[%c2_31, %c0_32, %c0_33] : memref<9x16x16xbf16, #tpu.memory_space<vmem>>, vector<1x16x16xbf16>
    %55 = vector.shape_cast %54 : vector<1x16x16xbf16> to vector<16x16xbf16>
    %cst_34 = arith.constant dense<0.000000e+00> : vector<16x1024xf32>
    %56 = tpu.matmul %55, %53, %cst_34 {dimension_numbers = #tpu.dot_dimension_numbers<[1], [0], [0], [1], [0, 0, 1, 1], [], []>} : vector<16x16xbf16>, vector<16x1024xbf16>, vector<16x1024xf32> -> vector<16x1024xf32>
    %57 = arith.addf %47, %56 : vector<16x1024xf32>
    %c0_35 = arith.constant 0 : index
    %c32 = arith.constant 32 : index
    %58 = vector.load %arg7[%c0_35, %c32] : memref<32x1090xbf16, #tpu.memory_space<vmem>>, vector<16x1024xbf16>
    %c0_i32_36 = arith.constant 0 : i32
    %59 = arith.sitofp %c0_i32_36 : i32 to bf16
    %60 = vector.shape_cast %28 : vector<1x1024xi1> to vector<1x1024xi1>
    %61 = vector.broadcast %60 : vector<1x1024xi1> to vector<16x1024xi1>
    %62 = vector.broadcast %59 : bf16 to vector<16x1024xbf16>
    %63 = arith.select %61, %58, %62 : vector<16x1024xi1>, vector<16x1024xbf16>
    %c3 = arith.constant 3 : index
    %c0_37 = arith.constant 0 : index
    %c0_38 = arith.constant 0 : index
    %64 = vector.load %arg4[%c3, %c0_37, %c0_38] : memref<9x16x16xbf16, #tpu.memory_space<vmem>>, vector<1x16x16xbf16>
    %65 = vector.shape_cast %64 : vector<1x16x16xbf16> to vector<16x16xbf16>
    %cst_39 = arith.constant dense<0.000000e+00> : vector<16x1024xf32>
    %66 = tpu.matmul %65, %63, %cst_39 {dimension_numbers = #tpu.dot_dimension_numbers<[1], [0], [0], [1], [0, 0, 1, 1], [], []>} : vector<16x16xbf16>, vector<16x1024xbf16>, vector<16x1024xf32> -> vector<16x1024xf32>
    %67 = arith.addf %57, %66 : vector<16x1024xf32>
    %c0_40 = arith.constant 0 : index
    %c33_41 = arith.constant 33 : index
    %68 = vector.load %arg7[%c0_40, %c33_41] : memref<32x1090xbf16, #tpu.memory_space<vmem>>, vector<16x1024xbf16>
    %c4 = arith.constant 4 : index
    %c0_42 = arith.constant 0 : index
    %c0_43 = arith.constant 0 : index
    %69 = vector.load %arg4[%c4, %c0_42, %c0_43] : memref<9x16x16xbf16, #tpu.memory_space<vmem>>, vector<1x16x16xbf16>
    %70 = vector.shape_cast %69 : vector<1x16x16xbf16> to vector<16x16xbf16>
    %cst_44 = arith.constant dense<0.000000e+00> : vector<16x1024xf32>
    %71 = tpu.matmul %70, %68, %cst_44 {dimension_numbers = #tpu.dot_dimension_numbers<[1], [0], [0], [1], [0, 0, 1, 1], [], []>} : vector<16x16xbf16>, vector<16x1024xbf16>, vector<16x1024xf32> -> vector<16x1024xf32>
    %72 = arith.addf %67, %71 : vector<16x1024xf32>
    %c0_45 = arith.constant 0 : index
    %c34 = arith.constant 34 : index
    %73 = vector.load %arg7[%c0_45, %c34] : memref<32x1090xbf16, #tpu.memory_space<vmem>>, vector<16x1024xbf16>
    %c0_i32_46 = arith.constant 0 : i32
    %74 = arith.sitofp %c0_i32_46 : i32 to bf16
    %75 = vector.shape_cast %30 : vector<1x1024xi1> to vector<1x1024xi1>
    %76 = vector.broadcast %75 : vector<1x1024xi1> to vector<16x1024xi1>
    %77 = vector.broadcast %74 : bf16 to vector<16x1024xbf16>
    %78 = arith.select %76, %73, %77 : vector<16x1024xi1>, vector<16x1024xbf16>
    %c5 = arith.constant 5 : index
    %c0_47 = arith.constant 0 : index
    %c0_48 = arith.constant 0 : index
    %79 = vector.load %arg4[%c5, %c0_47, %c0_48] : memref<9x16x16xbf16, #tpu.memory_space<vmem>>, vector<1x16x16xbf16>
    %80 = vector.shape_cast %79 : vector<1x16x16xbf16> to vector<16x16xbf16>
    %cst_49 = arith.constant dense<0.000000e+00> : vector<16x1024xf32>
    %81 = tpu.matmul %80, %78, %cst_49 {dimension_numbers = #tpu.dot_dimension_numbers<[1], [0], [0], [1], [0, 0, 1, 1], [], []>} : vector<16x16xbf16>, vector<16x1024xbf16>, vector<16x1024xf32> -> vector<16x1024xf32>
    %82 = arith.addf %72, %81 : vector<16x1024xf32>
    %c0_50 = arith.constant 0 : index
    %c64 = arith.constant 64 : index
    %83 = vector.load %arg7[%c0_50, %c64] : memref<32x1090xbf16, #tpu.memory_space<vmem>>, vector<16x1024xbf16>
    %c0_i32_51 = arith.constant 0 : i32
    %84 = arith.sitofp %c0_i32_51 : i32 to bf16
    %85 = vector.shape_cast %28 : vector<1x1024xi1> to vector<1x1024xi1>
    %86 = vector.broadcast %85 : vector<1x1024xi1> to vector<16x1024xi1>
    %87 = vector.broadcast %84 : bf16 to vector<16x1024xbf16>
    %88 = arith.select %86, %83, %87 : vector<16x1024xi1>, vector<16x1024xbf16>
    %c6 = arith.constant 6 : index
    %c0_52 = arith.constant 0 : index
    %c0_53 = arith.constant 0 : index
    %89 = vector.load %arg4[%c6, %c0_52, %c0_53] : memref<9x16x16xbf16, #tpu.memory_space<vmem>>, vector<1x16x16xbf16>
    %90 = vector.shape_cast %89 : vector<1x16x16xbf16> to vector<16x16xbf16>
    %cst_54 = arith.constant dense<0.000000e+00> : vector<16x1024xf32>
    %91 = tpu.matmul %90, %88, %cst_54 {dimension_numbers = #tpu.dot_dimension_numbers<[1], [0], [0], [1], [0, 0, 1, 1], [], []>} : vector<16x16xbf16>, vector<16x1024xbf16>, vector<16x1024xf32> -> vector<16x1024xf32>
    %92 = arith.addf %82, %91 : vector<16x1024xf32>
    %c0_55 = arith.constant 0 : index
    %c65 = arith.constant 65 : index
    %93 = vector.load %arg7[%c0_55, %c65] : memref<32x1090xbf16, #tpu.memory_space<vmem>>, vector<16x1024xbf16>
    %c7 = arith.constant 7 : index
    %c0_56 = arith.constant 0 : index
    %c0_57 = arith.constant 0 : index
    %94 = vector.load %arg4[%c7, %c0_56, %c0_57] : memref<9x16x16xbf16, #tpu.memory_space<vmem>>, vector<1x16x16xbf16>
    %95 = vector.shape_cast %94 : vector<1x16x16xbf16> to vector<16x16xbf16>
    %cst_58 = arith.constant dense<0.000000e+00> : vector<16x1024xf32>
    %96 = tpu.matmul %95, %93, %cst_58 {dimension_numbers = #tpu.dot_dimension_numbers<[1], [0], [0], [1], [0, 0, 1, 1], [], []>} : vector<16x16xbf16>, vector<16x1024xbf16>, vector<16x1024xf32> -> vector<16x1024xf32>
    %97 = arith.addf %92, %96 : vector<16x1024xf32>
    %c0_59 = arith.constant 0 : index
    %c66 = arith.constant 66 : index
    %98 = vector.load %arg7[%c0_59, %c66] : memref<32x1090xbf16, #tpu.memory_space<vmem>>, vector<16x1024xbf16>
    %c0_i32_60 = arith.constant 0 : i32
    %99 = arith.sitofp %c0_i32_60 : i32 to bf16
    %100 = vector.shape_cast %30 : vector<1x1024xi1> to vector<1x1024xi1>
    %101 = vector.broadcast %100 : vector<1x1024xi1> to vector<16x1024xi1>
    %102 = vector.broadcast %99 : bf16 to vector<16x1024xbf16>
    %103 = arith.select %101, %98, %102 : vector<16x1024xi1>, vector<16x1024xbf16>
    %c8 = arith.constant 8 : index
    %c0_61 = arith.constant 0 : index
    %c0_62 = arith.constant 0 : index
    %104 = vector.load %arg4[%c8, %c0_61, %c0_62] : memref<9x16x16xbf16, #tpu.memory_space<vmem>>, vector<1x16x16xbf16>
    %105 = vector.shape_cast %104 : vector<1x16x16xbf16> to vector<16x16xbf16>
    %cst_63 = arith.constant dense<0.000000e+00> : vector<16x1024xf32>
    %106 = tpu.matmul %105, %103, %cst_63 {dimension_numbers = #tpu.dot_dimension_numbers<[1], [0], [0], [1], [0, 0, 1, 1], [], []>} : vector<16x16xbf16>, vector<16x1024xbf16>, vector<16x1024xf32> -> vector<16x1024xf32>
    %107 = arith.addf %97, %106 : vector<16x1024xf32>
    %108 = vector.broadcast %31 : vector<16x1xf32> to vector<16x1024xf32>
    %109 = arith.addf %107, %108 : vector<16x1024xf32>
    %c0_64 = arith.constant 0 : index
    %c0_65 = arith.constant 0 : index
    %110 = vector.load %arg6[%c0_64, %c0_65] : memref<32x1024xf32, #tpu.memory_space<vmem>>, vector<16x1024xf32>
    tpu.vector_store %arg6[%c0_64, %c0_65], %109 {strides = array<i32>} : memref<32x1024xf32, #tpu.memory_space<vmem>>, vector<16x1024xf32>,
    %cst_66 = arith.constant 0.000000e+00 : f32
    %111 = vector.broadcast %cst_66 : f32 to vector<16x1024xf32>
    %c16 = arith.constant 16 : index
    %c0_67 = arith.constant 0 : index
    %112 = vector.load %arg7[%c16, %c0_67] : memref<32x1090xbf16, #tpu.memory_space<vmem>>, vector<16x1024xbf16>
    %c0_i32_68 = arith.constant 0 : i32
    %113 = arith.sitofp %c0_i32_68 : i32 to bf16
    %114 = vector.shape_cast %28 : vector<1x1024xi1> to vector<1x1024xi1>
    %115 = vector.broadcast %114 : vector<1x1024xi1> to vector<16x1024xi1>
    %116 = vector.broadcast %113 : bf16 to vector<16x1024xbf16>
    %117 = arith.select %115, %112, %116 : vector<16x1024xi1>, vector<16x1024xbf16>
    %c0_69 = arith.constant 0 : index
    %c0_70 = arith.constant 0 : index
    %c0_71 = arith.constant 0 : index
    %118 = vector.load %arg4[%c0_69, %c0_70, %c0_71] : memref<9x16x16xbf16, #tpu.memory_space<vmem>>, vector<1x16x16xbf16>
    %119 = vector.shape_cast %118 : vector<1x16x16xbf16> to vector<16x16xbf16>
    %cst_72 = arith.constant dense<0.000000e+00> : vector<16x1024xf32>
    %120 = tpu.matmul %119, %117, %cst_72 {dimension_numbers = #tpu.dot_dimension_numbers<[1], [0], [0], [1], [0, 0, 1, 1], [], []>} : vector<16x16xbf16>, vector<16x1024xbf16>, vector<16x1024xf32> -> vector<16x1024xf32>
    %121 = arith.addf %111, %120 : vector<16x1024xf32>
    %c16_73 = arith.constant 16 : index
    %c1_74 = arith.constant 1 : index
    %122 = vector.load %arg7[%c16_73, %c1_74] : memref<32x1090xbf16, #tpu.memory_space<vmem>>, vector<16x1024xbf16>
    %c1_75 = arith.constant 1 : index
    %c0_76 = arith.constant 0 : index
    %c0_77 = arith.constant 0 : index
    %123 = vector.load %arg4[%c1_75, %c0_76, %c0_77] : memref<9x16x16xbf16, #tpu.memory_space<vmem>>, vector<1x16x16xbf16>
    %124 = vector.shape_cast %123 : vector<1x16x16xbf16> to vector<16x16xbf16>
    %cst_78 = arith.constant dense<0.000000e+00> : vector<16x1024xf32>
    %125 = tpu.matmul %124, %122, %cst_78 {dimension_numbers = #tpu.dot_dimension_numbers<[1], [0], [0], [1], [0, 0, 1, 1], [], []>} : vector<16x16xbf16>, vector<16x1024xbf16>, vector<16x1024xf32> -> vector<16x1024xf32>
    %126 = arith.addf %121, %125 : vector<16x1024xf32>
    %c16_79 = arith.constant 16 : index
    %c2_80 = arith.constant 2 : index
    %127 = vector.load %arg7[%c16_79, %c2_80] : memref<32x1090xbf16, #tpu.memory_space<vmem>>, vector<16x1024xbf16>
    %c0_i32_81 = arith.constant 0 : i32
    %128 = arith.sitofp %c0_i32_81 : i32 to bf16
    %129 = vector.shape_cast %30 : vector<1x1024xi1> to vector<1x1024xi1>
    %130 = vector.broadcast %129 : vector<1x1024xi1> to vector<16x1024xi1>
    %131 = vector.broadcast %128 : bf16 to vector<16x1024xbf16>
    %132 = arith.select %130, %127, %131 : vector<16x1024xi1>, vector<16x1024xbf16>
    %c2_82 = arith.constant 2 : index
    %c0_83 = arith.constant 0 : index
    %c0_84 = arith.constant 0 : index
    %133 = vector.load %arg4[%c2_82, %c0_83, %c0_84] : memref<9x16x16xbf16, #tpu.memory_space<vmem>>, vector<1x16x16xbf16>
    %134 = vector.shape_cast %133 : vector<1x16x16xbf16> to vector<16x16xbf16>
    %cst_85 = arith.constant dense<0.000000e+00> : vector<16x1024xf32>
    %135 = tpu.matmul %134, %132, %cst_85 {dimension_numbers = #tpu.dot_dimension_numbers<[1], [0], [0], [1], [0, 0, 1, 1], [], []>} : vector<16x16xbf16>, vector<16x1024xbf16>, vector<16x1024xf32> -> vector<16x1024xf32>
    %136 = arith.addf %126, %135 : vector<16x1024xf32>
    %c16_86 = arith.constant 16 : index
    %c32_87 = arith.constant 32 : index
    %137 = vector.load %arg7[%c16_86, %c32_87] : memref<32x1090xbf16, #tpu.memory_space<vmem>>, vector<16x1024xbf16>
    %c0_i32_88 = arith.constant 0 : i32
    %138 = arith.sitofp %c0_i32_88 : i32 to bf16
    %139 = vector.shape_cast %28 : vector<1x1024xi1> to vector<1x1024xi1>
    %140 = vector.broadcast %139 : vector<1x1024xi1> to vector<16x1024xi1>
    %141 = vector.broadcast %138 : bf16 to vector<16x1024xbf16>
    %142 = arith.select %140, %137, %141 : vector<16x1024xi1>, vector<16x1024xbf16>
    %c3_89 = arith.constant 3 : index
    %c0_90 = arith.constant 0 : index
    %c0_91 = arith.constant 0 : index
    %143 = vector.load %arg4[%c3_89, %c0_90, %c0_91] : memref<9x16x16xbf16, #tpu.memory_space<vmem>>, vector<1x16x16xbf16>
    %144 = vector.shape_cast %143 : vector<1x16x16xbf16> to vector<16x16xbf16>
    %cst_92 = arith.constant dense<0.000000e+00> : vector<16x1024xf32>
    %145 = tpu.matmul %144, %142, %cst_92 {dimension_numbers = #tpu.dot_dimension_numbers<[1], [0], [0], [1], [0, 0, 1, 1], [], []>} : vector<16x16xbf16>, vector<16x1024xbf16>, vector<16x1024xf32> -> vector<16x1024xf32>
    %146 = arith.addf %136, %145 : vector<16x1024xf32>
    %c16_93 = arith.constant 16 : index
    %c33_94 = arith.constant 33 : index
    %147 = vector.load %arg7[%c16_93, %c33_94] : memref<32x1090xbf16, #tpu.memory_space<vmem>>, vector<16x1024xbf16>
    %c4_95 = arith.constant 4 : index
    %c0_96 = arith.constant 0 : index
    %c0_97 = arith.constant 0 : index
    %148 = vector.load %arg4[%c4_95, %c0_96, %c0_97] : memref<9x16x16xbf16, #tpu.memory_space<vmem>>, vector<1x16x16xbf16>
    %149 = vector.shape_cast %148 : vector<1x16x16xbf16> to vector<16x16xbf16>
    %cst_98 = arith.constant dense<0.000000e+00> : vector<16x1024xf32>
    %150 = tpu.matmul %149, %147, %cst_98 {dimension_numbers = #tpu.dot_dimension_numbers<[1], [0], [0], [1], [0, 0, 1, 1], [], []>} : vector<16x16xbf16>, vector<16x1024xbf16>, vector<16x1024xf32> -> vector<16x1024xf32>
    %151 = arith.addf %146, %150 : vector<16x1024xf32>
    %c16_99 = arith.constant 16 : index
    %c34_100 = arith.constant 34 : index
    %152 = vector.load %arg7[%c16_99, %c34_100] : memref<32x1090xbf16, #tpu.memory_space<vmem>>, vector<16x1024xbf16>
    %c0_i32_101 = arith.constant 0 : i32
    %153 = arith.sitofp %c0_i32_101 : i32 to bf16
    %154 = vector.shape_cast %30 : vector<1x1024xi1> to vector<1x1024xi1>
    %155 = vector.broadcast %154 : vector<1x1024xi1> to vector<16x1024xi1>
    %156 = vector.broadcast %153 : bf16 to vector<16x1024xbf16>
    %157 = arith.select %155, %152, %156 : vector<16x1024xi1>, vector<16x1024xbf16>
    %c5_102 = arith.constant 5 : index
    %c0_103 = arith.constant 0 : index
    %c0_104 = arith.constant 0 : index
    %158 = vector.load %arg4[%c5_102, %c0_103, %c0_104] : memref<9x16x16xbf16, #tpu.memory_space<vmem>>, vector<1x16x16xbf16>
    %159 = vector.shape_cast %158 : vector<1x16x16xbf16> to vector<16x16xbf16>
    %cst_105 = arith.constant dense<0.000000e+00> : vector<16x1024xf32>
    %160 = tpu.matmul %159, %157, %cst_105 {dimension_numbers = #tpu.dot_dimension_numbers<[1], [0], [0], [1], [0, 0, 1, 1], [], []>} : vector<16x16xbf16>, vector<16x1024xbf16>, vector<16x1024xf32> -> vector<16x1024xf32>
    %161 = arith.addf %151, %160 : vector<16x1024xf32>
    %c16_106 = arith.constant 16 : index
    %c64_107 = arith.constant 64 : index
    %162 = vector.load %arg7[%c16_106, %c64_107] : memref<32x1090xbf16, #tpu.memory_space<vmem>>, vector<16x1024xbf16>
    %c0_i32_108 = arith.constant 0 : i32
    %163 = arith.sitofp %c0_i32_108 : i32 to bf16
    %164 = vector.shape_cast %28 : vector<1x1024xi1> to vector<1x1024xi1>
    %165 = vector.broadcast %164 : vector<1x1024xi1> to vector<16x1024xi1>
    %166 = vector.broadcast %163 : bf16 to vector<16x1024xbf16>
    %167 = arith.select %165, %162, %166 : vector<16x1024xi1>, vector<16x1024xbf16>
    %c6_109 = arith.constant 6 : index
    %c0_110 = arith.constant 0 : index
    %c0_111 = arith.constant 0 : index
    %168 = vector.load %arg4[%c6_109, %c0_110, %c0_111] : memref<9x16x16xbf16, #tpu.memory_space<vmem>>, vector<1x16x16xbf16>
    %169 = vector.shape_cast %168 : vector<1x16x16xbf16> to vector<16x16xbf16>
    %cst_112 = arith.constant dense<0.000000e+00> : vector<16x1024xf32>
    %170 = tpu.matmul %169, %167, %cst_112 {dimension_numbers = #tpu.dot_dimension_numbers<[1], [0], [0], [1], [0, 0, 1, 1], [], []>} : vector<16x16xbf16>, vector<16x1024xbf16>, vector<16x1024xf32> -> vector<16x1024xf32>
    %171 = arith.addf %161, %170 : vector<16x1024xf32>
    %c16_113 = arith.constant 16 : index
    %c65_114 = arith.constant 65 : index
    %172 = vector.load %arg7[%c16_113, %c65_114] : memref<32x1090xbf16, #tpu.memory_space<vmem>>, vector<16x1024xbf16>
    %c7_115 = arith.constant 7 : index
    %c0_116 = arith.constant 0 : index
    %c0_117 = arith.constant 0 : index
    %173 = vector.load %arg4[%c7_115, %c0_116, %c0_117] : memref<9x16x16xbf16, #tpu.memory_space<vmem>>, vector<1x16x16xbf16>
    %174 = vector.shape_cast %173 : vector<1x16x16xbf16> to vector<16x16xbf16>
    %cst_118 = arith.constant dense<0.000000e+00> : vector<16x1024xf32>
    %175 = tpu.matmul %174, %172, %cst_118 {dimension_numbers = #tpu.dot_dimension_numbers<[1], [0], [0], [1], [0, 0, 1, 1], [], []>} : vector<16x16xbf16>, vector<16x1024xbf16>, vector<16x1024xf32> -> vector<16x1024xf32>
    %176 = arith.addf %171, %175 : vector<16x1024xf32>
    %c16_119 = arith.constant 16 : index
    %c66_120 = arith.constant 66 : index
    %177 = vector.load %arg7[%c16_119, %c66_120] : memref<32x1090xbf16, #tpu.memory_space<vmem>>, vector<16x1024xbf16>
    %c0_i32_121 = arith.constant 0 : i32
    %178 = arith.sitofp %c0_i32_121 : i32 to bf16
    %179 = vector.shape_cast %30 : vector<1x1024xi1> to vector<1x1024xi1>
    %180 = vector.broadcast %179 : vector<1x1024xi1> to vector<16x1024xi1>
    %181 = vector.broadcast %178 : bf16 to vector<16x1024xbf16>
    %182 = arith.select %180, %177, %181 : vector<16x1024xi1>, vector<16x1024xbf16>
    %c8_122 = arith.constant 8 : index
    %c0_123 = arith.constant 0 : index
    %c0_124 = arith.constant 0 : index
    %183 = vector.load %arg4[%c8_122, %c0_123, %c0_124] : memref<9x16x16xbf16, #tpu.memory_space<vmem>>, vector<1x16x16xbf16>
    %184 = vector.shape_cast %183 : vector<1x16x16xbf16> to vector<16x16xbf16>
    %cst_125 = arith.constant dense<0.000000e+00> : vector<16x1024xf32>
    %185 = tpu.matmul %184, %182, %cst_125 {dimension_numbers = #tpu.dot_dimension_numbers<[1], [0], [0], [1], [0, 0, 1, 1], [], []>} : vector<16x16xbf16>, vector<16x1024xbf16>, vector<16x1024xf32> -> vector<16x1024xf32>
    %186 = arith.addf %176, %185 : vector<16x1024xf32>
    %187 = vector.broadcast %31 : vector<16x1xf32> to vector<16x1024xf32>
    %188 = arith.addf %186, %187 : vector<16x1024xf32>
    %c16_126 = arith.constant 16 : index
    %c0_127 = arith.constant 0 : index
    %189 = vector.load %arg6[%c16_126, %c0_127] : memref<32x1024xf32, #tpu.memory_space<vmem>>, vector<16x1024xf32>
    tpu.vector_store %arg6[%c16_126, %c0_127], %188 {strides = array<i32>} : memref<32x1024xf32, #tpu.memory_space<vmem>>, vector<16x1024xf32>,
    return
  }
  func.func @transform_0(%arg0: i32) -> (i32, i32) {
    %c0_i32 = arith.constant 0 : i32
    %c0_i32_0 = arith.constant 0 : i32
    %c0_i32_1 = arith.constant 0 : i32
    return %c0_i32, %c0_i32_0 : i32, i32
  }
  func.func @transform_1(%arg0: i32) -> (i32, i32) {
    %c0_i32 = arith.constant 0 : i32
    %c0_i32_0 = arith.constant 0 : i32
    %c0_i32_1 = arith.constant 0 : i32
    return %c0_i32, %c0_i32_0 : i32, i32
  }
  func.func @transform_2(%arg0: i32) -> (i32, i32) {
    %c0_i32 = arith.constant 0 : i32
    %c0_i32_0 = arith.constant 0 : i32
    %c0_i32_1 = arith.constant 0 : i32
    return %c0_i32, %c0_i32_0 : i32, i32
  }
  func.func @transform_3(%arg0: i32) -> (i32, i32, i32) {
    %c0_i32 = arith.constant 0 : i32
    %c0_i32_0 = arith.constant 0 : i32
    %c0_i32_1 = arith.constant 0 : i32
    %c0_i32_2 = arith.constant 0 : i32
    return %c0_i32, %c0_i32_0, %c0_i32_1 : i32, i32, i32
  }
  func.func @transform_4(%arg0: i32) -> (i32, i32) {
    %c0_i32 = arith.constant 0 : i32
    %c0_i32_0 = arith.constant 0 : i32
    %c0_i32_1 = arith.constant 0 : i32
    return %c0_i32, %c0_i32_0 : i32, i32
  }
  func.func @transform_5(%arg0: i32) -> (i32, i32) {
    %c0_i32 = arith.constant 0 : i32
    %c0_i32_0 = arith.constant 0 : i32
    %c0_i32_1 = arith.constant 0 : i32
    return %c0_i32, %c0_i32_0 : i32, i32
  }
}

</mosaic_0001>

<bundles_post_ra>
// kernel: conv_upsample_x2.1
= control target key start
LH: loop header
LB: loop body
LE: loop exit
PB: predicated region body
PF: predicated region fallthrough
CT: control target
= control target key end

     0   :  { %10 = vsyncpa [#allocation4], 0  ;;  %s8605_s18 = smov [#allocation3]   ;;  %s11349_s0 = inlined_call_operand.vmem [shape: bf16[256,512], index: 0, kind: input, shape index: {}]   ;;  %s11350_s1 = inlined_call_operand.hbm [shape: bf16[512,1024], index: 1, kind: input, shape index: {}]   ;;  %s11351_s2 = inlined_call_operand.vmem [shape: bf16[32,256], index: 2, kind: input, shape index: {}]   ;;  %s11352_s3 = inlined_call_operand.vmem [shape: bf16[9,16,16], index: 3, kind: input, shape index: {}]   ;;  %s11353_s4 = inlined_call_operand.vmem [shape: f32[16,1], index: 4, kind: input, shape index: {}]   ;;  %s11354_s5 = inlined_call_operand.vmem [shape: f32[32,1024], index: 5, kind: output, shape index: {}]  }
   0x1   :  { %s18_s19 = sshll.u32 %s8605_s18, 4  ;;  %s19_s19 = int_to_ptr.vmem [resolvable:$true] %s18_s19 }
   0x2   :  { %s8591_s20 = scalar_lea.vmem %s19_s19, 32768  ;;  %p8596_p1 = scmp.lt.s32.totalorder %s19_s19, %s19_s19 }
   0x3   :  { %p8592_p0 = scmp.ne.s32.totalorder %s19_s19, %s8591_s20  ;;  %p8597_p2 = scmp.lt.s32.totalorder %s8591_s20, %s8591_s20 }
   0x5   :  { %p8598_p3 = por %p8597_p2, %p8596_p1 }
   0x7   :  { %p8599_p4 = pnand %p8598_p3, %p8592_p0 }
   0x9   :  { %8602 = shalt.err (!%p8599_p4)
}
   0xa   :  { %s8606_s21 = smov 512   ;;  %s8607_s22 = smov 32  }
   0xb   :  { %24 = dma.hbm_to_vmem [thread:$0]  %s11350_s1, 32768, %s19_s19, [#allocation4], %s8606_s21, %s8606_s21, %s8607_s22  }
   0xc   :  { %8603 = dma.done.wait [#allocation4], 32768  }
   0xd   :  { %8604 = vsyncadd [#allocation4], 4294934528  ;;  %v8457_v0 = vld [vmem:[%s11349_s0 + $0xe4] ss:$16 sps:$4 sm:$0xff]   ;;  %v8459_v1 = vld [vmem:[%s11349_s0 + $0xec] ss:$16 sps:$4 sm:$0xff]  }
   0xe   :  { %445 = vmatprep.subr.bf16.mxu0 %v8457_v0  ;;  %v8461_v2 = vld [vmem:[%s11349_s0 + $0xe0] ss:$16 sps:$4 sm:$0xff]   ;;  %v8462_v3 = vld [vmem:[%s11349_s0 + $0xe8] ss:$16 sps:$4 sm:$0xff]   ;;  %498 = vmatprep.subr.bf16.mxu1 %v8459_v1  ;;  %v8463_v4 = vld [vmem:[%s11349_s0 + $0xc4] ss:$16 sps:$4 sm:$0xff]  }
   0xf   :  { %446 = vmatpush1.bf16.msra.mxu0 %v8461_v2  ;;  %499 = vmatpush1.bf16.msra.mxu1 %v8462_v3  ;;  %v8465_v5 = vld [vmem:[%s11349_s0 + $0xcc] ss:$16 sps:$4 sm:$0xff]   ;;  %v8467_v6 = vld [vmem:[%s11349_s0 + $0xc0] ss:$16 sps:$4 sm:$0xff]   ;;  %v8468_v7 = vld [vmem:[%s11349_s0 + $0xc8] ss:$16 sps:$4 sm:$0xff]  }
  0x10   :  { %447 = vmatprep.subr.bf16.mxu0 %v8463_v4  ;;  %500 = vmatprep.subr.bf16.mxu1 %v8465_v5  ;;  %v8469_v8 = vld [vmem:[%s11349_s0 + $0xa4] ss:$16 sps:$4 sm:$0xff]   ;;  %v8471_v9 = vld [vmem:[%s11349_s0 + $0xac] ss:$16 sps:$4 sm:$0xff]   ;;  %v8473_v10 = vld [vmem:[%s11349_s0 + $0xa0] ss:$16 sps:$4 sm:$0xff]  }
  0x11   :  { %v8474_v11 = vld [vmem:[%s11349_s0 + $0xa8] ss:$16 sps:$4 sm:$0xff]   ;;  %v8475_v12 = vld [vmem:[%s11349_s0 + $0x84] ss:$16 sps:$4 sm:$0xff]   ;;  %v8477_v13 = vld [vmem:[%s11349_s0 + $0x8c] ss:$16 sps:$4 sm:$0xff]  }
  0x12   :  { %v8479_v14 = vld [vmem:[%s11349_s0 + $0x80] ss:$16 sps:$4 sm:$0xff]   ;;  %v8480_v15 = vld [vmem:[%s11349_s0 + $0x88] ss:$16 sps:$4 sm:$0xff]   ;;  %v8481_v16 = vld [vmem:[%s11349_s0 + $0x64] ss:$16 sps:$4 sm:$0xff]  }
  0x13   :  { %448 = vmatpush1.bf16.msra.mxu0 %v8467_v6  ;;  %501 = vmatpush1.bf16.msra.mxu1 %v8468_v7  ;;  %v8483_v17 = vld [vmem:[%s11349_s0 + $0x6c] ss:$16 sps:$4 sm:$0xff]   ;;  %v8485_v18 = vld [vmem:[%s11349_s0 + $0x60] ss:$16 sps:$4 sm:$0xff]   ;;  %v8486_v19 = vld [vmem:[%s11349_s0 + $0x68] ss:$16 sps:$4 sm:$0xff]  }
  0x14   :  { %449 = vmatprep.subr.bf16.mxu0 %v8469_v8  ;;  %502 = vmatprep.subr.bf16.mxu1 %v8471_v9  ;;  %v8487_v20 = vld [vmem:[%s11349_s0 + $0x44] ss:$16 sps:$4 sm:$0xff]   ;;  %v8489_v21 = vld [vmem:[%s11349_s0 + $0x4c] ss:$16 sps:$4 sm:$0xff]   ;;  %v8491_v22 = vld [vmem:[%s11349_s0 + $0x40] ss:$16 sps:$4 sm:$0xff]  }
  0x15   :  { %v8492_v23 = vld [vmem:[%s11349_s0 + $0x48] ss:$16 sps:$4 sm:$0xff]   ;;  %v8493_v24 = vld [vmem:[%s11349_s0 + $0x24] ss:$16 sps:$4 sm:$0xff]   ;;  %v8495_v25 = vld [vmem:[%s11349_s0 + $0x2c] ss:$16 sps:$4 sm:$0xff]  }
  0x16   :  { %v8497_v26 = vld [vmem:[%s11349_s0 + $0x20] ss:$16 sps:$4 sm:$0xff]   ;;  %v8498_v27 = vld [vmem:[%s11349_s0 + $0x28] ss:$16 sps:$4 sm:$0xff]   ;;  %v8499_v28 = vld [vmem:[%s11349_s0 + $0x4] ss:$16 sps:$4 sm:$0xff]  }
  0x17   :  { %450 = vmatpush1.bf16.msra.mxu0 %v8473_v10  ;;  %503 = vmatpush1.bf16.msra.mxu1 %v8474_v11  ;;  %v8501_v29 = vld [vmem:[%s11349_s0 + $0xc] ss:$16 sps:$4 sm:$0xff]   ;;  %v8503_v30 = vld [vmem:[%s11349_s0] ss:$16 sps:$4 sm:$0xff]   ;;  %v8504_v31 = vld [vmem:[%s11349_s0 + $0x8] ss:$16 sps:$4 sm:$0xff]  }
  0x18   :  { %451 = vmatprep.subr.bf16.mxu0 %v8475_v12  ;;  %504 = vmatprep.subr.bf16.mxu1 %v8477_v13  ;;  %v8505_v32 = vld [vmem:[%s11349_s0 + $0x1e4] ss:$16 sps:$4 sm:$0xff]   ;;  %v8507_v33 = vld [vmem:[%s11349_s0 + $0x1ec] ss:$16 sps:$4 sm:$0xff]   ;;  %v8509_v34 = vld [vmem:[%s11349_s0 + $0x1e0] ss:$16 sps:$4 sm:$0xff]  }
  0x19   :  { %v8510_v35 = vld [vmem:[%s11349_s0 + $0x1e8] ss:$16 sps:$4 sm:$0xff]   ;;  %v8511_v36 = vld [vmem:[%s11349_s0 + $0x1c4] ss:$16 sps:$4 sm:$0xff]   ;;  %v8513_v37 = vld [vmem:[%s11349_s0 + $0x1cc] ss:$16 sps:$4 sm:$0xff]  }
  0x1a   :  { %v8515_v38 = vld [vmem:[%s11349_s0 + $0x1c0] ss:$16 sps:$4 sm:$0xff]   ;;  %v8516_v39 = vld [vmem:[%s11349_s0 + $0x1c8] ss:$16 sps:$4 sm:$0xff]   ;;  %v8517_v40 = vld [vmem:[%s11349_s0 + $0x1a4] ss:$16 sps:$4 sm:$0xff]  }
  0x1b   :  { %452 = vmatpush1.bf16.msra.mxu0 %v8479_v14  ;;  %505 = vmatpush1.bf16.msra.mxu1 %v8480_v15  ;;  %v8519_v41 = vld [vmem:[%s11349_s0 + $0x1ac] ss:$16 sps:$4 sm:$0xff]   ;;  %v8521_v42 = vld [vmem:[%s11349_s0 + $0x1a0] ss:$16 sps:$4 sm:$0xff]   ;;  %v8522_v43 = vld [vmem:[%s11349_s0 + $0x1a8] ss:$16 sps:$4 sm:$0xff]  }
  0x1c   :  { %453 = vmatprep.subr.bf16.mxu0 %v8481_v16  ;;  %506 = vmatprep.subr.bf16.mxu1 %v8483_v17  ;;  %v8523_v44 = vld [vmem:[%s11349_s0 + $0x184] ss:$16 sps:$4 sm:$0xff]   ;;  %v8525_v45 = vld [vmem:[%s11349_s0 + $0x18c] ss:$16 sps:$4 sm:$0xff]   ;;  %v8527_v46 = vld [vmem:[%s11349_s0 + $0x180] ss:$16 sps:$4 sm:$0xff]  }
  0x1d   :  { %v8555_v47 = vld [vmem:[%s11351_s2 + $0x4] ss:$8 sps:$4 sm:$0xff]   ;;  %v8528_v48 = vld [vmem:[%s11349_s0 + $0x188] ss:$16 sps:$4 sm:$0xff]   ;;  %v8533_v51 = vld [vmem:[%s11349_s0 + $0x160] ss:$16 sps:$4 sm:$0xff]  }
  0x1e   :  { %v8529_v49 = vld [vmem:[%s11349_s0 + $0x164] ss:$16 sps:$4 sm:$0xff]   ;;  %v8531_v50 = vld [vmem:[%s11349_s0 + $0x16c] ss:$16 sps:$4 sm:$0xff]   ;;  %477 = vmatprep.mubr.bf16.mxu0 %v8555_v47  ;;  %530 = vmatprep.mubr.bf16.mxu1 %v8555_v47  ;;  %v8534_v52 = vld [vmem:[%s11349_s0 + $0x168] ss:$16 sps:$4 sm:$0xff]  }
  0x1f   :  { %454 = vmatpush1.bf16.msra.mxu0 %v8485_v18  ;;  %507 = vmatpush1.bf16.msra.mxu1 %v8486_v19  ;;  %v8535_v53 = vld [vmem:[%s11349_s0 + $0x144] ss:$16 sps:$4 sm:$0xff]   ;;  %v8537_v54 = vld [vmem:[%s11349_s0 + $0x14c] ss:$16 sps:$4 sm:$0xff]   ;;  %v8539_v55 = vld [vmem:[%s11349_s0 + $0x140] ss:$16 sps:$4 sm:$0xff]  }
  0x20   :  { %455 = vmatprep.subr.bf16.mxu0 %v8487_v20  ;;  %508 = vmatprep.subr.bf16.mxu1 %v8489_v21  ;;  %v8540_v56 = vld [vmem:[%s11349_s0 + $0x148] ss:$16 sps:$4 sm:$0xff]   ;;  %v8541_v57 = vld [vmem:[%s11349_s0 + $0x124] ss:$16 sps:$4 sm:$0xff]   ;;  %v8543_v58 = vld [vmem:[%s11349_s0 + $0x12c] ss:$16 sps:$4 sm:$0xff]  }
  0x21   :  { %v8545_v59 = vld [vmem:[%s11349_s0 + $0x120] ss:$16 sps:$4 sm:$0xff]   ;;  %v8546_v60 = vld [vmem:[%s11349_s0 + $0x128] ss:$16 sps:$4 sm:$0xff]   ;;  %v8547_v61 = vld [vmem:[%s11349_s0 + $0x104] ss:$16 sps:$4 sm:$0xff]  }
  0x22   :  { %v8549_v62 = vld [vmem:[%s11349_s0 + $0x10c] ss:$16 sps:$4 sm:$0xff]   ;;  %v615_v63 = vld [vmem:[#allocation3 + $0x1c0] sm:$0xff]  ;;  %v8552_v4 = vld [vmem:[%s11349_s0 + $0x108] ss:$16 sps:$4 sm:$0xff]   ;;  %s8610_s9 = smov 2  }
  0x23   :  { %456 = vmatpush1.bf16.msra.mxu0 %v8491_v22  ;;  %509 = vmatpush1.bf16.msra.mxu1 %v8492_v23  ;;  %v619_v0 = vld [vmem:[#allocation3 + $0x1e0] sm:$0xff]  ;;  %v8553_v7 = vld [vmem:[%s11351_s2] ss:$8 sps:$4 sm:$0xff]   ;;  %vm2718_vm6 = vcmask 1043720   ;;  %vm2719_vm7 = vcmask 1047556   ;;  %vm11390_vm8 = vcmask 269312  }
  0x24   :  { %457 = vmatprep.subr.bf16.mxu0 %v8493_v24  ;;  %510 = vmatprep.subr.bf16.mxu1 %v8495_v25  ;;  %v743_v1 = vld [vmem:[#allocation3 + $0x5c0] sm:$0xff]  ;;  %v7962_v5 = vcombine.high %v615_v63, %v619_v0  ;;  %v7961_v13 = vcombine.low %v615_v63, %v619_v0  ;;  %vm8964_vm9 = vmor %vm2719_vm7, %vm2718_vm6  ;;  %vm2523_vm10 = vcmask 535552   ;;  %vm2670_vm11 = vcmask 1043456   ;;  %s8611_s10 = smov 127   ;;  %s8612_s11 = smov 34  }
  0x25   :  { %v747_v2 = vld [vmem:[#allocation3 + $0x5e0] sm:$0xff]  ;;  %s8614_s12 = smov 126   ;;  %s8615_s13 = smov 96  }
  0x26   :  { %v8551_v3 = vld [vmem:[%s11349_s0 + $0x100] ss:$16 sps:$4 sm:$0xff]   ;;  %v8090_v6 = vcombine.high %v743_v1, %v747_v2  ;;  %v8556_v8 = vld [vmem:[%s11351_s2 + $0x14] ss:$8 sps:$4 sm:$0xff]   ;;  %v8089_v14 = vcombine.low %v743_v1, %v747_v2  ;;  %s8616_s16 = smov 66   ;;  %s8617_s17 = smov 95  }
  0x27   :  { %458 = vmatpush1.bf16.msra.mxu0 %v8497_v26  ;;  %511 = vmatpush1.bf16.msra.mxu1 %v8498_v27  ;;  %v607_v9 = vld [vmem:[#allocation3 + $0x180] sm:$0xff]  ;;  %s8618_s18 = smov 94   ;;  %s8619_s19 = smov 63  }
  0x28   :  { %459 = vmatprep.subr.bf16.mxu0 %v8499_v28  ;;  %512 = vmatprep.subr.bf16.mxu1 %v8501_v29  ;;  %v611_v10 = vld [vmem:[#allocation3 + $0x1a0] sm:$0xff]  ;;  %s8620_s23 = smov 62  }
  0x29   :  { %v735_v11 = vld [vmem:[#allocation3 + $0x580] sm:$0xff]  ;;  %v7954_v19 = vcombine.high %v607_v9, %v611_v10  ;;  %v7953_v22 = vcombine.low %v607_v9, %v611_v10 }
  0x2a   :  { %v739_v12 = vld [vmem:[#allocation3 + $0x5a0] sm:$0xff] }
  0x2b   :  { %460 = vmatpush1.bf16.msra.mxu0 %v8503_v30  ;;  %513 = vmatpush1.bf16.msra.mxu1 %v8504_v31  ;;  %v599_v15 = vld [vmem:[#allocation3 + $0x140] sm:$0xff]  ;;  %v8082_v20 = vcombine.high %v735_v11, %v739_v12  ;;  %v8081_v23 = vcombine.low %v735_v11, %v739_v12 }
  0x2c   :  { %461 = vmatprep.subr.bf16.mxu0 %v8505_v32  ;;  %514 = vmatprep.subr.bf16.mxu1 %v8507_v33  ;;  %v603_v16 = vld [vmem:[#allocation3 + $0x160] sm:$0xff] }
  0x2d   :  { %v727_v17 = vld [vmem:[#allocation3 + $0x540] sm:$0xff]  ;;  %v7946_v28 = vcombine.high %v599_v15, %v603_v16  ;;  %v7945_v30 = vcombine.low %v599_v15, %v603_v16 }
  0x2e   :  { %v731_v18 = vld [vmem:[#allocation3 + $0x560] sm:$0xff] }
  0x2f   :  { %462 = vmatpush2.bf16.msra.mxu0 %v8509_v34  ;;  %515 = vmatpush2.bf16.msra.mxu1 %v8510_v35  ;;  %v8558_v21 = vld [vmem:[%s11351_s2 + $0x10] ss:$8 sps:$4 sm:$0xff]   ;;  %v8074_v29 = vcombine.high %v727_v17, %v731_v18  ;;  %v8073_v31 = vcombine.low %v727_v17, %v731_v18  ;;  %s8609_s2 = smov 33  }
  0x30   :  { %463 = vmatprep.subr.bf16.mxu0 %v8511_v36  ;;  %516 = vmatprep.subr.bf16.mxu1 %v8513_v37  ;;  %v591_v24 = vld [vmem:[#allocation3 + $0x100] sm:$0xff] }
  0x31   :  { %v595_v25 = vld [vmem:[#allocation3 + $0x120] sm:$0xff] }
  0x32   :  { %v719_v26 = vld [vmem:[#allocation3 + $0x500] sm:$0xff]  ;;  %v7938_v36 = vcombine.high %v591_v24, %v595_v25 }
  0x33   :  { %464 = vmatpush2.bf16.msra.mxu0 %v8515_v38  ;;  %517 = vmatpush2.bf16.msra.mxu1 %v8516_v39  ;;  %v723_v27 = vld [vmem:[#allocation3 + $0x520] sm:$0xff]  ;;  %v7937_v38 = vcombine.low %v591_v24, %v595_v25 }
  0x34   :  { %465 = vmatprep.subr.bf16.mxu0 %v8517_v40  ;;  %518 = vmatprep.subr.bf16.mxu1 %v8519_v41  ;;  %v583_v32 = vld [vmem:[#allocation3 + $0xc0] sm:$0xff]  ;;  %v8066_v37 = vcombine.high %v719_v26, %v723_v27  ;;  %v8065_v39 = vcombine.low %v719_v26, %v723_v27 }
  0x35   :  { %v587_v33 = vld [vmem:[#allocation3 + $0xe0] sm:$0xff] }
  0x36   :  { %v711_v34 = vld [vmem:[#allocation3 + $0x4c0] sm:$0xff]  ;;  %v7930_v40 = vcombine.high %v583_v32, %v587_v33 }
  0x37   :  { %466 = vmatpush2.bf16.msra.mxu0 %v8521_v42  ;;  %519 = vmatpush2.bf16.msra.mxu1 %v8522_v43  ;;  %v715_v35 = vld [vmem:[#allocation3 + $0x4e0] sm:$0xff] }
  0x38   :  { %467 = vmatprep.subr.bf16.mxu0 %v8523_v44  ;;  %520 = vmatprep.subr.bf16.mxu1 %v8525_v45  ;;  %v8058_v41 = vcombine.high %v711_v34, %v715_v35  ;;  %v575_v42 = vld [vmem:[#allocation3 + $0x80] sm:$0xff]  ;;  %v8057_v47 = vcombine.low %v711_v34, %v715_v35 }
  0x39   :  { %v579_v43 = vld [vmem:[#allocation3 + $0xa0] sm:$0xff] }
  0x3a   :  { %v703_v44 = vld [vmem:[#allocation3 + $0x480] sm:$0xff] }
  0x3b   :  { %468 = vmatpush2.bf16.msra.mxu0 %v8527_v46  ;;  %521 = vmatpush2.bf16.msra.mxu1 %v8528_v48  ;;  %v707_v45 = vld [vmem:[#allocation3 + $0x4a0] sm:$0xff]  ;;  %v7929_v46 = vcombine.low %v583_v32, %v587_v33  ;;  %v7922_v48 = vcombine.high %v575_v42, %v579_v43 }
  0x3c   :  { %469 = vmatprep.subr.bf16.mxu0 %v8529_v49  ;;  %522 = vmatprep.subr.bf16.mxu1 %v8531_v50  ;;  %v8050_v49 = vcombine.high %v703_v44, %v707_v45  ;;  %v567_v50 = vld [vmem:[#allocation3 + $0x40] sm:$0xff] }
  0x3d   :  { %v679_v2 = vld [vmem:[#allocation3 + $0x3c0] sm:$0xff] }
  0x3e   :  { %v671_v10 = vld [vmem:[#allocation3 + $0x380] sm:$0xff] }
  0x3f   :  { %470 = vmatpush2.bf16.msra.mxu0 %v8533_v51  ;;  %523 = vmatpush2.bf16.msra.mxu1 %v8534_v52  ;;  %v571_v51 = vld [vmem:[#allocation3 + $0x60] sm:$0xff] }
  0x40   :  { %471 = vmatprep.subr.bf16.mxu0 %v8535_v53  ;;  %524 = vmatprep.subr.bf16.mxu1 %v8537_v54  ;;  %v695_v52 = vld [vmem:[#allocation3 + $0x440] sm:$0xff]  ;;  %v7921_v54 = vcombine.low %v575_v42, %v579_v43 }
  0x41   :  { %v699_v53 = vld [vmem:[#allocation3 + $0x460] sm:$0xff] }
  0x42   :  { %v8041_v63 = vcombine.low %v695_v52, %v699_v53  ;;  %v675_v11 = vld [vmem:[#allocation3 + $0x3a0] sm:$0xff] }
  0x43   :  { %472 = vmatpush2.bf16.msra.mxu0 %v8539_v55  ;;  %525 = vmatpush2.bf16.msra.mxu1 %v8540_v56  ;;  %v8049_v55 = vcombine.low %v703_v44, %v707_v45  ;;  %v7914_v56 = vcombine.high %v567_v50, %v571_v51  ;;  %v799_v12 = vld [vmem:[#allocation3 + $0x780] sm:$0xff]  ;;  %v8018_v16 = vcombine.high %v671_v10, %v675_v11 }
  0x44   :  { %473 = vmatprep.subr.bf16.mxu0 %v8541_v57  ;;  %526 = vmatprep.subr.bf16.mxu1 %v8543_v58  ;;  %v8042_v57 = vcombine.high %v695_v52, %v699_v53  ;;  %v559_v58 = vld [vmem:[#allocation3] sm:$0xff] }
  0x45   :  { %v663_v18 = vld [vmem:[#allocation3 + $0x340] sm:$0xff] }
  0x46   :  { %v655_v26 = vld [vmem:[#allocation3 + $0x300] sm:$0xff] }
  0x47   :  { %474 = vmatpush2.bf16.msra.mxu0 %v8545_v59  ;;  %527 = vmatpush2.bf16.msra.mxu1 %v8546_v60  ;;  %v563_v59 = vld [vmem:[#allocation3 + $0x20] sm:$0xff] }
  0x48   :  { %475 = vmatprep.subr.bf16.mxu0 %v8547_v61  ;;  %528 = vmatprep.subr.bf16.mxu1 %v8549_v62  ;;  %v687_v60 = vld [vmem:[#allocation3 + $0x400] sm:$0xff]  ;;  %v7913_v62 = vcombine.low %v567_v50, %v571_v51  ;;  %v7906_v0 = vcombine.high %v559_v58, %v563_v59 }
  0x49   :  { %v691_v61 = vld [vmem:[#allocation3 + $0x420] sm:$0xff] }
  0x4a   :  { %v8034_v1 = vcombine.high %v687_v60, %v691_v61  ;;  %v659_v27 = vld [vmem:[#allocation3 + $0x320] sm:$0xff] }
  0x4b   :  { %476 = vmatpush2.bf16.msra.mxu0 %v8551_v3  ;;  %529 = vmatpush2.bf16.msra.mxu1 %v8552_v4  ;;  %v683_v3 = vld [vmem:[#allocation3 + $0x3e0] sm:$0xff]  ;;  %v8002_v32 = vcombine.high %v655_v26, %v659_v27 }
  0x4c   :  { %2095 = vmatprep.subr.bf16.mxu0 %v7962_v5  ;;  %2148 = vmatprep.subr.bf16.mxu1 %v8090_v6  ;;  %v807_v4 = vld [vmem:[#allocation3 + $0x7c0] sm:$0xff]  ;;  %v7905_v6 = vcombine.low %v559_v58, %v563_v59 }
  0x4d   :  { %v811_v5 = vld [vmem:[#allocation3 + $0x7e0] sm:$0xff] }
  0x4e   :  { %478 = vmatmul.mubr.bf16.vlgmr.msra.gmra.mxu0 %v8553_v7  ;;  %531 = vmatmul.mubr.bf16.vlgmr.msra.gmra.mxu1 %v8553_v7  ;;  %v8033_v7 = vcombine.low %v687_v60, %v691_v61  ;;  %v8154_v9 = vcombine.high %v807_v4, %v811_v5  ;;  %v8153_v15 = vcombine.low %v807_v4, %v811_v5  ;;  %v647_v34 = vld [vmem:[#allocation3 + $0x2c0] sm:$0xff]  ;;  %v616_v4 = vld [vmem:[#allocation3 + $0x1c8] sm:$0xff] }
  0x4f   :  { %487 = vmatprep.mubr.bf16.mxu0 %v8556_v8  ;;  %540 = vmatprep.mubr.bf16.mxu1 %v8556_v8  ;;  %v8026_v8 = vcombine.high %v679_v2, %v683_v3  ;;  %v651_v35 = vld [vmem:[#allocation3 + $0x2e0] sm:$0xff]  ;;  %v620_v5 = vld [vmem:[#allocation3 + $0x1e8] sm:$0xff] }
  0x50   :  { %2096 = vmatpush1.bf16.msra.mxu0 %v7961_v13  ;;  %2149 = vmatpush1.bf16.msra.mxu1 %v8089_v14  ;;  %v803_v13 = vld [vmem:[#allocation3 + $0x7a0] sm:$0xff]  ;;  %v8025_v14 = vcombine.low %v679_v2, %v683_v3 }
  0x51   :  { %2097 = vmatprep.subr.bf16.mxu0 %v7954_v19  ;;  %2150 = vmatprep.subr.bf16.mxu1 %v8082_v20  ;;  %v8146_v17 = vcombine.high %v799_v12, %v803_v13  ;;  %v667_v19 = vld [vmem:[#allocation3 + $0x360] sm:$0xff] }
  0x52   :  { %v791_v20 = vld [vmem:[#allocation3 + $0x740] sm:$0xff]  ;;  %v8010_v24 = vcombine.high %v663_v18, %v667_v19 }
  0x53   :  { %v639_v42 = vld [vmem:[#allocation3 + $0x280] sm:$0xff] }
  0x54   :  { %2098 = vmatpush1.bf16.msra.mxu0 %v7953_v22  ;;  %2151 = vmatpush1.bf16.msra.mxu1 %v8081_v23  ;;  %v8017_v22 = vcombine.low %v671_v10, %v675_v11  ;;  %v8145_v23 = vcombine.low %v799_v12, %v803_v13  ;;  %v643_v43 = vld [vmem:[#allocation3 + $0x2a0] sm:$0xff] }
  0x55   :  { %2099 = vmatprep.subr.bf16.mxu0 %v7946_v28  ;;  %2152 = vmatprep.subr.bf16.mxu1 %v8074_v29  ;;  %v783_v28 = vld [vmem:[#allocation3 + $0x700] sm:$0xff]  ;;  %v7985_v50 = vcombine.low %v639_v42, %v643_v43 }
  0x56   :  { %488 = vmatmul.mubr.bf16.gmra.mxu0 %v8558_v21  ;;  %541 = vmatmul.mubr.bf16.gmra.mxu1 %v8558_v21  ;;  %v795_v21 = vld [vmem:[#allocation3 + $0x760] sm:$0xff] }
  0x57   :  { %v8138_v25 = vcombine.high %v791_v20, %v795_v21  ;;  %v787_v29 = vld [vmem:[#allocation3 + $0x720] sm:$0xff] }
  0x58   :  { %2100 = vmatpush1.bf16.msra.mxu0 %v7945_v30  ;;  %2153 = vmatpush1.bf16.msra.mxu1 %v8073_v31  ;;  %v8009_v30 = vcombine.low %v663_v18, %v667_v19  ;;  %v8137_v31 = vcombine.low %v791_v20, %v795_v21  ;;  %v8130_v33 = vcombine.high %v783_v28, %v787_v29  ;;  %v767_v44 = vld [vmem:[#allocation3 + $0x680] sm:$0xff]  ;;  %v608_v18 = vld [vmem:[#allocation3 + $0x188] sm:$0xff] }
  0x59   :  { %2101 = vmatprep.subr.bf16.mxu0 %v7938_v36  ;;  %2154 = vmatprep.subr.bf16.mxu1 %v8066_v37  ;;  %v775_v36 = vld [vmem:[#allocation3 + $0x6c0] sm:$0xff]  ;;  %v612_v19 = vld [vmem:[#allocation3 + $0x1a8] sm:$0xff] }
  0x5a   :  { %v779_v37 = vld [vmem:[#allocation3 + $0x6e0] sm:$0xff]  ;;  %v736_v20 = vld [vmem:[#allocation3 + $0x588] sm:$0xff] }
  0x5b   :  { %v771_v45 = vld [vmem:[#allocation3 + $0x6a0] sm:$0xff]  ;;  %v740_v21 = vld [vmem:[#allocation3 + $0x5a8] sm:$0xff] }
  0x5c   :  { %2102 = vmatpush1.bf16.msra.mxu0 %v7937_v38  ;;  %2155 = vmatpush1.bf16.msra.mxu1 %v8065_v39  ;;  %v8001_v38 = vcombine.low %v655_v26, %v659_v27  ;;  %v8129_v39 = vcombine.low %v783_v28, %v787_v29  ;;  %v8113_v51 = vcombine.low %v767_v44, %v771_v45  ;;  %v631_v52 = vld [vmem:[#allocation3 + $0x240] sm:$0xff] }
  0x5d   :  { %2103 = vmatprep.subr.bf16.mxu0 %v7930_v40  ;;  %2156 = vmatprep.subr.bf16.mxu1 %v8058_v41  ;;  %v7994_v40 = vcombine.high %v647_v34, %v651_v35  ;;  %v8122_v41 = vcombine.high %v775_v36, %v779_v37  ;;  %v635_v53 = vld [vmem:[#allocation3 + $0x260] sm:$0xff] }
  0x5e   :  { %v623_v60 = vld [vmem:[#allocation3 + $0x200] sm:$0xff] }
  0x5f   :  { %v627_v61 = vld [vmem:[#allocation3 + $0x220] sm:$0xff] }
  0x60   :  { %2104 = vmatpush1.bf16.msra.mxu0 %v7929_v46  ;;  %2157 = vmatpush1.bf16.msra.mxu1 %v8057_v47  ;;  %v7993_v46 = vcombine.low %v647_v34, %v651_v35  ;;  %v8121_v47 = vcombine.low %v775_v36, %v779_v37  ;;  %v728_v34 = vld [vmem:[#allocation3 + $0x548] sm:$0xff] }
  0x61   :  { %2105 = vmatprep.subr.bf16.mxu0 %v7922_v48  ;;  %2158 = vmatprep.subr.bf16.mxu1 %v8050_v49  ;;  %v7986_v48 = vcombine.high %v639_v42, %v643_v43  ;;  %v8114_v49 = vcombine.high %v767_v44, %v771_v45  ;;  %v732_v35 = vld [vmem:[#allocation3 + $0x568] sm:$0xff] }
  0x62   :  { %v8076_v43 = vcombine.high %v728_v34, %v732_v35  ;;  %v592_v44 = vld [vmem:[#allocation3 + $0x108] sm:$0xff] }
  0x64   :  { %2106 = vmatpush1.bf16.msra.mxu0 %v7921_v54  ;;  %2159 = vmatpush1.bf16.msra.mxu1 %v8049_v55  ;;  %v759_v54 = vld [vmem:[#allocation3 + $0x640] sm:$0xff]  ;;  %v7978_v55 = vcombine.high %v631_v52, %v635_v53 }
  0x65   :  { %2107 = vmatprep.subr.bf16.mxu0 %v7914_v56  ;;  %2160 = vmatprep.subr.bf16.mxu1 %v8042_v57  ;;  %v763_v56 = vld [vmem:[#allocation3 + $0x660] sm:$0xff]  ;;  %v7977_v57 = vcombine.low %v631_v52, %v635_v53  ;;  %v724_v52 = vld [vmem:[#allocation3 + $0x528] sm:$0xff] }
  0x66   :  { %v8105_v58 = vcombine.low %v759_v54, %v763_v56  ;;  %v8106_v59 = vcombine.high %v759_v54, %v763_v56  ;;  %v584_v56 = vld [vmem:[#allocation3 + $0xc8] sm:$0xff] }
  0x68   :  { %2108 = vmatpush1.bf16.msra.mxu0 %v7913_v62  ;;  %2161 = vmatpush1.bf16.msra.mxu1 %v8041_v63  ;;  %v751_v62 = vld [vmem:[#allocation3 + $0x600] sm:$0xff]  ;;  %v7970_v63 = vcombine.high %v623_v60, %v627_v61 }
  0x69   :  { %2109 = vmatprep.subr.bf16.mxu0 %v7906_v0  ;;  %2162 = vmatprep.subr.bf16.mxu1 %v8034_v1  ;;  %v755_v0 = vld [vmem:[#allocation3 + $0x620] sm:$0xff]  ;;  %v7969_v1 = vcombine.low %v623_v60, %v627_v61  ;;  %v712_v60 = vld [vmem:[#allocation3 + $0x4c8] sm:$0xff] }
  0x6a   :  { %v8097_v2 = vcombine.low %v751_v62, %v755_v0  ;;  %v8098_v3 = vcombine.high %v751_v62, %v755_v0  ;;  %v716_v61 = vld [vmem:[#allocation3 + $0x4e8] sm:$0xff] }
  0x6c   :  { %2110 = vmatpush1.bf16.msra.mxu0 %v7905_v6  ;;  %2163 = vmatpush1.bf16.msra.mxu1 %v8033_v7  ;;  %v744_v6 = vld [vmem:[#allocation3 + $0x5c8] sm:$0xff]  ;;  %v7964_v7 = vcombine.high %v616_v4, %v620_v5 }
  0x6d   :  { %2111 = vmatprep.subr.bf16.mxu0 %v8026_v8  ;;  %2164 = vmatprep.subr.bf16.mxu1 %v8154_v9  ;;  %v748_v8 = vld [vmem:[#allocation3 + $0x5e8] sm:$0xff]  ;;  %v7963_v9 = vcombine.low %v616_v4, %v620_v5 }
  0x6e   :  { %v8091_v10 = vcombine.low %v744_v6, %v748_v8  ;;  %v8092_v11 = vcombine.high %v744_v6, %v748_v8  ;;  %v704_v4 = vld [vmem:[#allocation3 + $0x488] sm:$0xff] }
  0x6f   :  { %v708_v5 = vld [vmem:[#allocation3 + $0x4a8] sm:$0xff] }
  0x70   :  { %2112 = vmatpush2.bf16.msra.mxu0 %v8025_v14  ;;  %2165 = vmatpush2.bf16.msra.mxu1 %v8153_v15 }
  0x71   :  { %2113 = vmatprep.subr.bf16.mxu0 %v8018_v16  ;;  %2166 = vmatprep.subr.bf16.mxu1 %v8146_v17 }
  0x74   :  { %2114 = vmatpush2.bf16.msra.mxu0 %v8017_v22  ;;  %2167 = vmatpush2.bf16.msra.mxu1 %v8145_v23 }
  0x75   :  { %2115 = vmatprep.subr.bf16.mxu0 %v8010_v24  ;;  %2168 = vmatprep.subr.bf16.mxu1 %v8138_v25 }
  0x78   :  { %2116 = vmatpush2.bf16.msra.mxu0 %v8009_v30  ;;  %2169 = vmatpush2.bf16.msra.mxu1 %v8137_v31  ;;  %v7956_v30 = vcombine.high %v608_v18, %v612_v19  ;;  %v8084_v31 = vcombine.high %v736_v20, %v740_v21 }
  0x79   :  { %2117 = vmatprep.subr.bf16.mxu0 %v8002_v32  ;;  %2170 = vmatprep.subr.bf16.mxu1 %v8130_v33  ;;  %v600_v32 = vld [vmem:[#allocation3 + $0x148] sm:$0xff] }
  0x7a   :  { %v604_v33 = vld [vmem:[#allocation3 + $0x168] sm:$0xff] }
  0x7b   :  { %v7948_v42 = vcombine.high %v600_v32, %v604_v33 }
  0x7c   :  { %2118 = vmatpush2.bf16.msra.mxu0 %v8001_v38  ;;  %2171 = vmatpush2.bf16.msra.mxu1 %v8129_v39  ;;  %v7955_v38 = vcombine.low %v608_v18, %v612_v19  ;;  %v8083_v39 = vcombine.low %v736_v20, %v740_v21  ;;  %v560_v18 = vld [vmem:[#allocation3 + $0x8] sm:$0xff] }
  0x7d   :  { %2119 = vmatprep.subr.bf16.mxu0 %v7994_v40  ;;  %2172 = vmatprep.subr.bf16.mxu1 %v8122_v41  ;;  %v564_v19 = vld [vmem:[#allocation3 + $0x28] sm:$0xff] }
  0x7e   :  { %v688_v20 = vld [vmem:[#allocation3 + $0x408] sm:$0xff] }
  0x7f   :  { %v692_v21 = vld [vmem:[#allocation3 + $0x428] sm:$0xff] }
  0x80   :  { %2120 = vmatpush2.bf16.msra.mxu0 %v7993_v46  ;;  %2173 = vmatpush2.bf16.msra.mxu1 %v8121_v47 }
  0x81   :  { %2121 = vmatprep.subr.bf16.mxu0 %v7986_v48  ;;  %2174 = vmatprep.subr.bf16.mxu1 %v8114_v49  ;;  %v7947_v49 = vcombine.low %v600_v32, %v604_v33  ;;  %v808_v32 = vld [vmem:[#allocation3 + $0x7c8] sm:$0xff] }
  0x82   :  { %v812_v33 = vld [vmem:[#allocation3 + $0x7e8] sm:$0xff] }
  0x84   :  { %2122 = vmatpush2.bf16.msra.mxu0 %v7985_v50  ;;  %2175 = vmatpush2.bf16.msra.mxu1 %v8113_v51  ;;  %v596_v50 = vld [vmem:[#allocation3 + $0x128] sm:$0xff] }
  0x85   :  { %2123 = vmatprep.subr.bf16.mxu0 %v7978_v55  ;;  %2176 = vmatprep.subr.bf16.mxu1 %v8106_v59  ;;  %v720_v51 = vld [vmem:[#allocation3 + $0x508] sm:$0xff]  ;;  %v8075_v55 = vcombine.low %v728_v34, %v732_v35  ;;  %v7939_v62 = vcombine.low %v592_v44, %v596_v50  ;;  %v7907_v34 = vcombine.low %v560_v18, %v564_v19 }
  0x86   :  { %v588_v59 = vld [vmem:[#allocation3 + $0xe8] sm:$0xff]  ;;  %v8035_v35 = vcombine.low %v688_v20, %v692_v21 }
  0x87   :  { %v7932_v0 = vcombine.high %v584_v56, %v588_v59  ;;  %v7931_v6 = vcombine.low %v584_v56, %v588_v59  ;;  %v660_v59 = vld [vmem:[#allocation3 + $0x328] sm:$0xff] }
  0x88   :  { %2124 = vmatpush2.bf16.msra.mxu0 %v7977_v57  ;;  %2177 = vmatpush2.bf16.msra.mxu1 %v8105_v58  ;;  %v7940_v57 = vcombine.high %v592_v44, %v596_v50  ;;  %v8068_v58 = vcombine.high %v720_v51, %v724_v52  ;;  %v792_v50 = vld [vmem:[#allocation3 + $0x748] sm:$0xff] }
  0x89   :  { %2125 = vmatprep.subr.bf16.mxu0 %v7970_v63  ;;  %2178 = vmatprep.subr.bf16.mxu1 %v8098_v3  ;;  %v8067_v63 = vcombine.low %v720_v51, %v724_v52  ;;  %v580_v3 = vld [vmem:[#allocation3 + $0xa8] sm:$0xff] }
  0x8a   :  { %v796_v51 = vld [vmem:[#allocation3 + $0x768] sm:$0xff] }
  0x8c   :  { %2126 = vmatpush2.bf16.msra.mxu0 %v7969_v1  ;;  %2179 = vmatpush2.bf16.msra.mxu1 %v8097_v2  ;;  %v8060_v1 = vcombine.high %v712_v60, %v716_v61  ;;  %v576_v2 = vld [vmem:[#allocation3 + $0x88] sm:$0xff] }
  0x8d   :  { %2201 = vmatprep.subr.bf16.mxu0 %v7964_v7  ;;  %2254 = vmatprep.subr.bf16.mxu1 %v8092_v11  ;;  %v8059_v7 = vcombine.low %v712_v60, %v716_v61  ;;  %v7924_v8 = vcombine.high %v576_v2, %v580_v3  ;;  %v572_v11 = vld [vmem:[#allocation3 + $0x68] sm:$0xff] }
  0x8e   :  { %v784_v60 = vld [vmem:[#allocation3 + $0x708] sm:$0xff] }
  0x8f   :  { %v788_v61 = vld [vmem:[#allocation3 + $0x728] sm:$0xff] }
 0x10e   :  { %v479_v12 = vpop.f32.mrf.mxu0  ;;  %v532_v13 = vpop.f32.mrf.mxu1 }
 0x110   :  { %v481_v14 = vpop.f32.mrf.mxu0  ;;  %v534_v15 = vpop.f32.mrf.mxu1 }
 0x112   :  { %v483_v16 = vpop.f32.mrf.mxu0  ;;  %v536_v17 = vpop.f32.mrf.mxu1 }
 0x113   :  { %v8863_v26 = vpack.c.bf16 %v483_v16, %v479_v12  ;;  %v8865_v27 = vpack.c.bf16 %v536_v17, %v532_v13  ;;  %v696_v12 = vld [vmem:[#allocation3 + $0x448] sm:$0xff] }
 0x114   :  { %v485_v22 = vpop.f32.mrf.mxu0  ;;  %v538_v23 = vpop.f32.mrf.mxu1  ;;  %v700_v13 = vld [vmem:[#allocation3 + $0x468] sm:$0xff] }
 0x115   :  { %v8859_v24 = vpack.c.bf16 %v485_v22, %v481_v14  ;;  %v8861_v25 = vpack.c.bf16 %v538_v23, %v534_v15  ;;  %v7923_v14 = vcombine.low %v576_v2, %v580_v3  ;;  %v8051_v15 = vcombine.low %v704_v4, %v708_v5  ;;  %v648_v2 = vld [vmem:[#allocation3 + $0x2c8] sm:$0xff] }
 0x116   :  { %v489_v28 = vpop.f32.mrf.mxu0  ;;  %v542_v29 = vpop.f32.mrf.mxu1  ;;  %v8044_v17 = vcombine.high %v696_v12, %v700_v13  ;;  %v8043_v23 = vcombine.low %v696_v12, %v700_v13  ;;  %v652_v3 = vld [vmem:[#allocation3 + $0x2e8] sm:$0xff] }
 0x117   :  { %2127 = vmatprep.mubr.bf16.mxu0 %v8859_v24  ;;  %2180 = vmatprep.mubr.bf16.mxu1 %v8861_v25  ;;  %v768_v12 = vld [vmem:[#allocation3 + $0x688] sm:$0xff] }
 0x118   :  { %v491_v36 = vpop.f32.mrf.mxu0  ;;  %v544_v37 = vpop.f32.mrf.mxu1  ;;  %2128 = vmatmul.mubr.bf16.vlgmr.msra.gmra.mxu0 %v8863_v26  ;;  %2181 = vmatmul.mubr.bf16.vlgmr.msra.gmra.mxu1 %v8865_v27  ;;  %v772_v13 = vld [vmem:[#allocation3 + $0x6a8] sm:$0xff] }
 0x119   :  { %2202 = vmatpush1.bf16.msra.mxu0 %v7963_v9  ;;  %2255 = vmatpush1.bf16.msra.mxu1 %v8091_v10  ;;  %v8052_v9 = vcombine.high %v704_v4, %v708_v5  ;;  %v568_v10 = vld [vmem:[#allocation3 + $0x48] sm:$0xff] }
 0x11a   :  { %v493_v40 = vpop.f32.mrf.mxu0  ;;  %v546_v41 = vpop.f32.mrf.mxu1  ;;  %2203 = vmatprep.subr.bf16.mxu0 %v7956_v30  ;;  %2256 = vmatprep.subr.bf16.mxu1 %v8084_v31  ;;  %v7916_v16 = vcombine.high %v568_v10, %v572_v11  ;;  %v7915_v22 = vcombine.low %v568_v10, %v572_v11  ;;  %v680_v30 = vld [vmem:[#allocation3 + $0x3c8] sm:$0xff] }
 0x11b   :  { %v8871_v45 = vpack.c.bf16 %v493_v40, %v489_v28  ;;  %v8873_v46 = vpack.c.bf16 %v546_v41, %v542_v29  ;;  %v7908_v28 = vcombine.high %v560_v18, %v564_v19  ;;  %v8036_v29 = vcombine.high %v688_v20, %v692_v21  ;;  %v684_v31 = vld [vmem:[#allocation3 + $0x3e8] sm:$0xff] }
 0x11c   :  { %v495_v47 = vpop.f32.mrf.mxu0  ;;  %v548_v48 = vpop.f32.mrf.mxu1  ;;  %v800_v40 = vld [vmem:[#allocation3 + $0x788] sm:$0xff] }
 0x11d   :  { %v8875_v53 = vpack.c.bf16 %v495_v47, %v491_v36  ;;  %v8877_v54 = vpack.c.bf16 %v548_v48, %v544_v37  ;;  %2204 = vmatpush1.bf16.msra.mxu0 %v7955_v38  ;;  %2257 = vmatpush1.bf16.msra.mxu1 %v8083_v39  ;;  %v8028_v36 = vcombine.high %v680_v30, %v684_v31  ;;  %v672_v38 = vld [vmem:[#allocation3 + $0x388] sm:$0xff] }
 0x11e   :  { %2205 = vmatprep.subr.bf16.mxu0 %v7948_v42  ;;  %2258 = vmatprep.subr.bf16.mxu1 %v8076_v43  ;;  %v8156_v37 = vcombine.high %v808_v32, %v812_v33  ;;  %v676_v39 = vld [vmem:[#allocation3 + $0x3a8] sm:$0xff]  ;;  %v8027_v42 = vcombine.low %v680_v30, %v684_v31  ;;  %v8155_v43 = vcombine.low %v808_v32, %v812_v33 }
 0x11f   :  { %2137 = vmatprep.mubr.bf16.mxu0 %v8875_v53  ;;  %2190 = vmatprep.mubr.bf16.mxu1 %v8877_v54  ;;  %v804_v41 = vld [vmem:[#allocation3 + $0x7a8] sm:$0xff]  ;;  %v8020_v44 = vcombine.high %v672_v38, %v676_v39  ;;  %v8019_v52 = vcombine.low %v672_v38, %v676_v39  ;;  %v617_v38 = vld [vmem:[#allocation3 + $0x1d0] sm:$0xff] }
 0x120   :  { %2138 = vmatmul.mubr.bf16.gmra.mxu0 %v8871_v45  ;;  %2191 = vmatmul.mubr.bf16.gmra.mxu1 %v8873_v46  ;;  %v8148_v47 = vcombine.high %v800_v40, %v804_v41  ;;  %v664_v48 = vld [vmem:[#allocation3 + $0x348] sm:$0xff]  ;;  %v621_v39 = vld [vmem:[#allocation3 + $0x1f0] sm:$0xff] }
 0x121   :  { %2206 = vmatpush1.bf16.msra.mxu0 %v7947_v49  ;;  %2259 = vmatpush1.bf16.msra.mxu1 %v8075_v55  ;;  %v668_v49 = vld [vmem:[#allocation3 + $0x368] sm:$0xff]  ;;  %v8147_v55 = vcombine.low %v800_v40, %v804_v41  ;;  %v745_v40 = vld [vmem:[#allocation3 + $0x5d0] sm:$0xff] }
 0x122   :  { %2233 = vmatprep.mubr.bf16.mxu0 %v8859_v24  ;;  %2286 = vmatprep.mubr.bf16.mxu1 %v8861_v25  ;;  %v8012_v56 = vcombine.high %v664_v48, %v668_v49  ;;  %v776_v4 = vld [vmem:[#allocation3 + $0x6c8] sm:$0xff]  ;;  %v749_v41 = vld [vmem:[#allocation3 + $0x5f0] sm:$0xff] }
 0x123   :  { %2207 = vmatprep.subr.bf16.mxu0 %v7940_v57  ;;  %2260 = vmatprep.subr.bf16.mxu1 %v8068_v58  ;;  %v8140_v57 = vcombine.high %v792_v50, %v796_v51  ;;  %v656_v58 = vld [vmem:[#allocation3 + $0x308] sm:$0xff] }
 0x124   :  { %v780_v5 = vld [vmem:[#allocation3 + $0x6e8] sm:$0xff] }
 0x125   :  { %2208 = vmatpush1.bf16.msra.mxu0 %v7939_v62  ;;  %2261 = vmatpush1.bf16.msra.mxu1 %v8067_v63  ;;  %v8011_v62 = vcombine.low %v664_v48, %v668_v49  ;;  %v8139_v63 = vcombine.low %v792_v50, %v796_v51  ;;  %v640_v10 = vld [vmem:[#allocation3 + $0x288] sm:$0xff]  ;;  %v609_v48 = vld [vmem:[#allocation3 + $0x190] sm:$0xff] }
 0x126   :  { %2209 = vmatprep.subr.bf16.mxu0 %v7932_v0  ;;  %2262 = vmatprep.subr.bf16.mxu1 %v8060_v1  ;;  %v8004_v0 = vcombine.high %v656_v58, %v660_v59  ;;  %v8132_v1 = vcombine.high %v784_v60, %v788_v61  ;;  %v644_v11 = vld [vmem:[#allocation3 + $0x2a8] sm:$0xff]  ;;  %v613_v49 = vld [vmem:[#allocation3 + $0x1b0] sm:$0xff] }
 0x127   :  { %v632_v18 = vld [vmem:[#allocation3 + $0x248] sm:$0xff]  ;;  %v737_v50 = vld [vmem:[#allocation3 + $0x590] sm:$0xff] }
 0x128   :  { %v636_v19 = vld [vmem:[#allocation3 + $0x268] sm:$0xff]  ;;  %v741_v51 = vld [vmem:[#allocation3 + $0x5b0] sm:$0xff] }
 0x129   :  { %2210 = vmatpush1.bf16.msra.mxu0 %v7931_v6  ;;  %2263 = vmatpush1.bf16.msra.mxu1 %v8059_v7  ;;  %v8003_v6 = vcombine.low %v656_v58, %v660_v59  ;;  %v8131_v7 = vcombine.low %v784_v60, %v788_v61  ;;  %v760_v20 = vld [vmem:[#allocation3 + $0x648] sm:$0xff]  ;;  %v601_v58 = vld [vmem:[#allocation3 + $0x150] sm:$0xff] }
 0x12a   :  { %2211 = vmatprep.subr.bf16.mxu0 %v7924_v8  ;;  %2264 = vmatprep.subr.bf16.mxu1 %v8052_v9  ;;  %v7996_v8 = vcombine.high %v648_v2, %v652_v3  ;;  %v8124_v9 = vcombine.high %v776_v4, %v780_v5  ;;  %v764_v21 = vld [vmem:[#allocation3 + $0x668] sm:$0xff]  ;;  %v605_v59 = vld [vmem:[#allocation3 + $0x170] sm:$0xff] }
 0x12b   :  { %v624_v30 = vld [vmem:[#allocation3 + $0x208] sm:$0xff]  ;;  %v729_v60 = vld [vmem:[#allocation3 + $0x550] sm:$0xff] }
 0x12c   :  { %v628_v31 = vld [vmem:[#allocation3 + $0x228] sm:$0xff]  ;;  %v733_v61 = vld [vmem:[#allocation3 + $0x570] sm:$0xff] }
 0x12d   :  { %2212 = vmatpush1.bf16.msra.mxu0 %v7923_v14  ;;  %2265 = vmatpush1.bf16.msra.mxu1 %v8051_v15  ;;  %v7995_v14 = vcombine.low %v648_v2, %v652_v3  ;;  %v8123_v15 = vcombine.low %v776_v4, %v780_v5  ;;  %v752_v32 = vld [vmem:[#allocation3 + $0x608] sm:$0xff]  ;;  %v593_v2 = vld [vmem:[#allocation3 + $0x110] sm:$0xff] }
 0x12e   :  { %2213 = vmatprep.subr.bf16.mxu0 %v7916_v16  ;;  %2266 = vmatprep.subr.bf16.mxu1 %v8044_v17  ;;  %v7988_v16 = vcombine.high %v640_v10, %v644_v11  ;;  %v8116_v17 = vcombine.high %v768_v12, %v772_v13  ;;  %v756_v33 = vld [vmem:[#allocation3 + $0x628] sm:$0xff]  ;;  %v597_v3 = vld [vmem:[#allocation3 + $0x130] sm:$0xff] }
 0x12f   :  { %v721_v4 = vld [vmem:[#allocation3 + $0x510] sm:$0xff] }
 0x130   :  { %v725_v5 = vld [vmem:[#allocation3 + $0x530] sm:$0xff] }
 0x131   :  { %2214 = vmatpush1.bf16.msra.mxu0 %v7915_v22  ;;  %2267 = vmatpush1.bf16.msra.mxu1 %v8043_v23  ;;  %v7987_v22 = vcombine.low %v640_v10, %v644_v11  ;;  %v8115_v23 = vcombine.low %v768_v12, %v772_v13  ;;  %v585_v10 = vld [vmem:[#allocation3 + $0xd0] sm:$0xff] }
 0x132   :  { %2215 = vmatprep.subr.bf16.mxu0 %v7908_v28  ;;  %2268 = vmatprep.subr.bf16.mxu1 %v8036_v29  ;;  %v7980_v28 = vcombine.high %v632_v18, %v636_v19  ;;  %v8108_v29 = vcombine.high %v760_v20, %v764_v21  ;;  %v589_v11 = vld [vmem:[#allocation3 + $0xf0] sm:$0xff] }
 0x133   :  { %v713_v12 = vld [vmem:[#allocation3 + $0x4d0] sm:$0xff] }
 0x134   :  { %v717_v13 = vld [vmem:[#allocation3 + $0x4f0] sm:$0xff] }
 0x135   :  { %2216 = vmatpush1.bf16.msra.mxu0 %v7907_v34  ;;  %2269 = vmatpush1.bf16.msra.mxu1 %v8035_v35  ;;  %v7979_v34 = vcombine.low %v632_v18, %v636_v19  ;;  %v8107_v35 = vcombine.low %v760_v20, %v764_v21  ;;  %v577_v18 = vld [vmem:[#allocation3 + $0x90] sm:$0xff] }
 0x136   :  { %2217 = vmatprep.subr.bf16.mxu0 %v8028_v36  ;;  %2270 = vmatprep.subr.bf16.mxu1 %v8156_v37  ;;  %v7972_v36 = vcombine.high %v624_v30, %v628_v31  ;;  %v8100_v37 = vcombine.high %v752_v32, %v756_v33  ;;  %v581_v19 = vld [vmem:[#allocation3 + $0xb0] sm:$0xff] }
 0x137   :  { %v705_v20 = vld [vmem:[#allocation3 + $0x490] sm:$0xff] }
 0x138   :  { %v709_v21 = vld [vmem:[#allocation3 + $0x4b0] sm:$0xff] }
 0x139   :  { %2218 = vmatpush2.bf16.msra.mxu0 %v8027_v42  ;;  %2271 = vmatpush2.bf16.msra.mxu1 %v8155_v43  ;;  %v7971_v42 = vcombine.low %v624_v30, %v628_v31  ;;  %v8099_v43 = vcombine.low %v752_v32, %v756_v33  ;;  %v569_v30 = vld [vmem:[#allocation3 + $0x50] sm:$0xff] }
 0x13a   :  { %2219 = vmatprep.subr.bf16.mxu0 %v8020_v44  ;;  %2272 = vmatprep.subr.bf16.mxu1 %v8148_v47  ;;  %v7966_v44 = vcombine.high %v617_v38, %v621_v39  ;;  %v8094_v47 = vcombine.high %v745_v40, %v749_v41  ;;  %v573_v31 = vld [vmem:[#allocation3 + $0x70] sm:$0xff] }
 0x13b   :  { %v697_v32 = vld [vmem:[#allocation3 + $0x450] sm:$0xff] }
 0x13c   :  { %v701_v33 = vld [vmem:[#allocation3 + $0x470] sm:$0xff] }
 0x13d   :  { %2220 = vmatpush2.bf16.msra.mxu0 %v8019_v52  ;;  %2273 = vmatpush2.bf16.msra.mxu1 %v8147_v55  ;;  %v7965_v52 = vcombine.low %v617_v38, %v621_v39  ;;  %v8093_v55 = vcombine.low %v745_v40, %v749_v41  ;;  %v561_v38 = vld [vmem:[#allocation3 + $0x10] sm:$0xff] }
 0x13e   :  { %2221 = vmatprep.subr.bf16.mxu0 %v8012_v56  ;;  %2274 = vmatprep.subr.bf16.mxu1 %v8140_v57  ;;  %v7958_v56 = vcombine.high %v609_v48, %v613_v49  ;;  %v8086_v57 = vcombine.high %v737_v50, %v741_v51  ;;  %v565_v39 = vld [vmem:[#allocation3 + $0x30] sm:$0xff] }
 0x13f   :  { %v689_v40 = vld [vmem:[#allocation3 + $0x410] sm:$0xff] }
 0x140   :  { %v693_v41 = vld [vmem:[#allocation3 + $0x430] sm:$0xff] }
 0x141   :  { %2222 = vmatpush2.bf16.msra.mxu0 %v8011_v62  ;;  %2275 = vmatpush2.bf16.msra.mxu1 %v8139_v63  ;;  %v7957_v62 = vcombine.low %v609_v48, %v613_v49  ;;  %v8085_v63 = vcombine.low %v737_v50, %v741_v51  ;;  %v681_v48 = vld [vmem:[#allocation3 + $0x3d0] sm:$0xff] }
 0x142   :  { %2223 = vmatprep.subr.bf16.mxu0 %v8004_v0  ;;  %2276 = vmatprep.subr.bf16.mxu1 %v8132_v1  ;;  %v7950_v0 = vcombine.high %v601_v58, %v605_v59  ;;  %v8078_v1 = vcombine.high %v729_v60, %v733_v61  ;;  %v685_v49 = vld [vmem:[#allocation3 + $0x3f0] sm:$0xff] }
 0x143   :  { %v809_v50 = vld [vmem:[#allocation3 + $0x7d0] sm:$0xff] }
 0x144   :  { %v813_v51 = vld [vmem:[#allocation3 + $0x7f0] sm:$0xff] }
 0x145   :  { %2224 = vmatpush2.bf16.msra.mxu0 %v8003_v6  ;;  %2277 = vmatpush2.bf16.msra.mxu1 %v8131_v7  ;;  %v7949_v6 = vcombine.low %v601_v58, %v605_v59  ;;  %v8077_v7 = vcombine.low %v729_v60, %v733_v61  ;;  %v673_v58 = vld [vmem:[#allocation3 + $0x390] sm:$0xff] }
 0x146   :  { %2225 = vmatprep.subr.bf16.mxu0 %v7996_v8  ;;  %2278 = vmatprep.subr.bf16.mxu1 %v8124_v9  ;;  %v7942_v8 = vcombine.high %v593_v2, %v597_v3  ;;  %v8070_v9 = vcombine.high %v721_v4, %v725_v5  ;;  %v677_v59 = vld [vmem:[#allocation3 + $0x3b0] sm:$0xff] }
 0x147   :  { %v801_v60 = vld [vmem:[#allocation3 + $0x790] sm:$0xff] }
 0x148   :  { %v805_v61 = vld [vmem:[#allocation3 + $0x7b0] sm:$0xff] }
 0x149   :  { %2226 = vmatpush2.bf16.msra.mxu0 %v7995_v14  ;;  %2279 = vmatpush2.bf16.msra.mxu1 %v8123_v15  ;;  %v7941_v14 = vcombine.low %v593_v2, %v597_v3  ;;  %v8069_v15 = vcombine.low %v721_v4, %v725_v5  ;;  %v665_v2 = vld [vmem:[#allocation3 + $0x350] sm:$0xff] }
 0x14a   :  { %2227 = vmatprep.subr.bf16.mxu0 %v7988_v16  ;;  %2280 = vmatprep.subr.bf16.mxu1 %v8116_v17  ;;  %v7934_v16 = vcombine.high %v585_v10, %v589_v11  ;;  %v8062_v17 = vcombine.high %v713_v12, %v717_v13  ;;  %v669_v3 = vld [vmem:[#allocation3 + $0x370] sm:$0xff] }
 0x14b   :  { %v793_v4 = vld [vmem:[#allocation3 + $0x750] sm:$0xff] }
 0x14c   :  { %v797_v5 = vld [vmem:[#allocation3 + $0x770] sm:$0xff] }
 0x14d   :  { %2228 = vmatpush2.bf16.msra.mxu0 %v7987_v22  ;;  %2281 = vmatpush2.bf16.msra.mxu1 %v8115_v23  ;;  %v7933_v22 = vcombine.low %v585_v10, %v589_v11  ;;  %v8061_v23 = vcombine.low %v713_v12, %v717_v13  ;;  %v657_v10 = vld [vmem:[#allocation3 + $0x310] sm:$0xff] }
 0x14e   :  { %2229 = vmatprep.subr.bf16.mxu0 %v7980_v28  ;;  %2282 = vmatprep.subr.bf16.mxu1 %v8108_v29  ;;  %v7926_v28 = vcombine.high %v577_v18, %v581_v19  ;;  %v8054_v29 = vcombine.high %v705_v20, %v709_v21  ;;  %v661_v11 = vld [vmem:[#allocation3 + $0x330] sm:$0xff] }
 0x14f   :  { %v785_v12 = vld [vmem:[#allocation3 + $0x710] sm:$0xff] }
 0x150   :  { %v789_v13 = vld [vmem:[#allocation3 + $0x730] sm:$0xff] }
 0x151   :  { %2230 = vmatpush2.bf16.msra.mxu0 %v7979_v34  ;;  %2283 = vmatpush2.bf16.msra.mxu1 %v8107_v35  ;;  %v7925_v34 = vcombine.low %v577_v18, %v581_v19  ;;  %v8053_v35 = vcombine.low %v705_v20, %v709_v21  ;;  %v649_v18 = vld [vmem:[#allocation3 + $0x2d0] sm:$0xff] }
 0x152   :  { %2231 = vmatprep.subr.bf16.mxu0 %v7972_v36  ;;  %2284 = vmatprep.subr.bf16.mxu1 %v8100_v37  ;;  %v7918_v36 = vcombine.high %v569_v30, %v573_v31  ;;  %v8046_v37 = vcombine.high %v697_v32, %v701_v33  ;;  %v653_v19 = vld [vmem:[#allocation3 + $0x2f0] sm:$0xff] }
 0x153   :  { %v777_v20 = vld [vmem:[#allocation3 + $0x6d0] sm:$0xff] }
 0x154   :  { %v781_v21 = vld [vmem:[#allocation3 + $0x6f0] sm:$0xff] }
 0x155   :  { %2232 = vmatpush2.bf16.msra.mxu0 %v7971_v42  ;;  %2285 = vmatpush2.bf16.msra.mxu1 %v8099_v43  ;;  %v7917_v42 = vcombine.low %v569_v30, %v573_v31  ;;  %v8045_v43 = vcombine.low %v697_v32, %v701_v33  ;;  %v641_v30 = vld [vmem:[#allocation3 + $0x290] sm:$0xff] }
 0x156   :  { %2307 = vmatprep.subr.bf16.mxu0 %v7966_v44  ;;  %2360 = vmatprep.subr.bf16.mxu1 %v8094_v47  ;;  %v7910_v44 = vcombine.high %v561_v38, %v565_v39  ;;  %v8038_v47 = vcombine.high %v689_v40, %v693_v41  ;;  %v645_v31 = vld [vmem:[#allocation3 + $0x2b0] sm:$0xff] }
 0x157   :  { %v769_v32 = vld [vmem:[#allocation3 + $0x690] sm:$0xff] }
 0x158   :  { %2234 = vmatmul.mubr.bf16.vlgmr.msra.gmra.mxu0 %v8863_v26  ;;  %2287 = vmatmul.mubr.bf16.vlgmr.msra.gmra.mxu1 %v8865_v27  ;;  %v773_v33 = vld [vmem:[#allocation3 + $0x6b0] sm:$0xff] }
 0x159   :  { %2243 = vmatprep.mubr.bf16.mxu0 %v8875_v53  ;;  %2296 = vmatprep.mubr.bf16.mxu1 %v8877_v54 }
 0x15a   :  { %2308 = vmatpush1.bf16.msra.mxu0 %v7965_v52  ;;  %2361 = vmatpush1.bf16.msra.mxu1 %v8093_v55  ;;  %v7909_v52 = vcombine.low %v561_v38, %v565_v39  ;;  %v8037_v55 = vcombine.low %v689_v40, %v693_v41  ;;  %v633_v38 = vld [vmem:[#allocation3 + $0x250] sm:$0xff] }
 0x15b   :  { %2309 = vmatprep.subr.bf16.mxu0 %v7958_v56  ;;  %2362 = vmatprep.subr.bf16.mxu1 %v8086_v57  ;;  %v8030_v56 = vcombine.high %v681_v48, %v685_v49  ;;  %v8158_v57 = vcombine.high %v809_v50, %v813_v51  ;;  %v637_v39 = vld [vmem:[#allocation3 + $0x270] sm:$0xff] }
 0x15c   :  { %v761_v40 = vld [vmem:[#allocation3 + $0x650] sm:$0xff] }
 0x15d   :  { %v765_v41 = vld [vmem:[#allocation3 + $0x670] sm:$0xff] }
 0x15e   :  { %2310 = vmatpush1.bf16.msra.mxu0 %v7957_v62  ;;  %2363 = vmatpush1.bf16.msra.mxu1 %v8085_v63  ;;  %v8029_v62 = vcombine.low %v681_v48, %v685_v49  ;;  %v8157_v63 = vcombine.low %v809_v50, %v813_v51  ;;  %v625_v48 = vld [vmem:[#allocation3 + $0x210] sm:$0xff] }
 0x15f   :  { %2311 = vmatprep.subr.bf16.mxu0 %v7950_v0  ;;  %2364 = vmatprep.subr.bf16.mxu1 %v8078_v1  ;;  %v8022_v0 = vcombine.high %v673_v58, %v677_v59  ;;  %v8150_v1 = vcombine.high %v801_v60, %v805_v61  ;;  %v629_v49 = vld [vmem:[#allocation3 + $0x230] sm:$0xff] }
 0x160   :  { %2244 = vmatmul.mubr.bf16.gmra.mxu0 %v8871_v45  ;;  %2297 = vmatmul.mubr.bf16.gmra.mxu1 %v8873_v46  ;;  %v753_v50 = vld [vmem:[#allocation3 + $0x610] sm:$0xff] }
 0x161   :  { %2339 = vmatprep.mubr.bf16.mxu0 %v8859_v24  ;;  %2392 = vmatprep.mubr.bf16.mxu1 %v8861_v25  ;;  %v757_v51 = vld [vmem:[#allocation3 + $0x630] sm:$0xff] }
 0x162   :  { %2312 = vmatpush1.bf16.msra.mxu0 %v7949_v6  ;;  %2365 = vmatpush1.bf16.msra.mxu1 %v8077_v7  ;;  %v8021_v6 = vcombine.low %v673_v58, %v677_v59  ;;  %v8149_v7 = vcombine.low %v801_v60, %v805_v61  ;;  %v618_v58 = vld [vmem:[#allocation3 + $0x1d8] sm:$0xff] }
 0x163   :  { %2313 = vmatprep.subr.bf16.mxu0 %v7942_v8  ;;  %2366 = vmatprep.subr.bf16.mxu1 %v8070_v9  ;;  %v8014_v8 = vcombine.high %v665_v2, %v669_v3  ;;  %v8142_v9 = vcombine.high %v793_v4, %v797_v5  ;;  %v622_v59 = vld [vmem:[#allocation3 + $0x1f8] sm:$0xff] }
 0x164   :  { %v746_v60 = vld [vmem:[#allocation3 + $0x5d8] sm:$0xff] }
 0x165   :  { %v750_v61 = vld [vmem:[#allocation3 + $0x5f8] sm:$0xff] }
 0x166   :  { %2314 = vmatpush1.bf16.msra.mxu0 %v7941_v14  ;;  %2367 = vmatpush1.bf16.msra.mxu1 %v8069_v15  ;;  %v8013_v14 = vcombine.low %v665_v2, %v669_v3  ;;  %v8141_v15 = vcombine.low %v793_v4, %v797_v5  ;;  %v610_v2 = vld [vmem:[#allocation3 + $0x198] sm:$0xff] }
 0x167   :  { %2315 = vmatprep.subr.bf16.mxu0 %v7934_v16  ;;  %2368 = vmatprep.subr.bf16.mxu1 %v8062_v17  ;;  %v8006_v16 = vcombine.high %v657_v10, %v661_v11  ;;  %v8134_v17 = vcombine.high %v785_v12, %v789_v13  ;;  %v614_v3 = vld [vmem:[#allocation3 + $0x1b8] sm:$0xff] }
 0x168   :  { %v738_v4 = vld [vmem:[#allocation3 + $0x598] sm:$0xff] }
 0x169   :  { %v742_v5 = vld [vmem:[#allocation3 + $0x5b8] sm:$0xff] }
 0x16a   :  { %2316 = vmatpush1.bf16.msra.mxu0 %v7933_v22  ;;  %2369 = vmatpush1.bf16.msra.mxu1 %v8061_v23  ;;  %v8005_v22 = vcombine.low %v657_v10, %v661_v11  ;;  %v8133_v23 = vcombine.low %v785_v12, %v789_v13  ;;  %v602_v10 = vld [vmem:[#allocation3 + $0x158] sm:$0xff] }
 0x16b   :  { %2317 = vmatprep.subr.bf16.mxu0 %v7926_v28  ;;  %2370 = vmatprep.subr.bf16.mxu1 %v8054_v29  ;;  %v7998_v28 = vcombine.high %v649_v18, %v653_v19  ;;  %v8126_v29 = vcombine.high %v777_v20, %v781_v21  ;;  %v606_v11 = vld [vmem:[#allocation3 + $0x178] sm:$0xff] }
 0x16c   :  { %v730_v12 = vld [vmem:[#allocation3 + $0x558] sm:$0xff] }
 0x16d   :  { %v734_v13 = vld [vmem:[#allocation3 + $0x578] sm:$0xff] }
 0x16e   :  { %2318 = vmatpush1.bf16.msra.mxu0 %v7925_v34  ;;  %2371 = vmatpush1.bf16.msra.mxu1 %v8053_v35  ;;  %v7997_v34 = vcombine.low %v649_v18, %v653_v19  ;;  %v8125_v35 = vcombine.low %v777_v20, %v781_v21  ;;  %v594_v18 = vld [vmem:[#allocation3 + $0x118] sm:$0xff] }
 0x16f   :  { %2319 = vmatprep.subr.bf16.mxu0 %v7918_v36  ;;  %2372 = vmatprep.subr.bf16.mxu1 %v8046_v37  ;;  %v7990_v36 = vcombine.high %v641_v30, %v645_v31  ;;  %v8118_v37 = vcombine.high %v769_v32, %v773_v33  ;;  %v598_v19 = vld [vmem:[#allocation3 + $0x138] sm:$0xff] }
 0x170   :  { %v722_v20 = vld [vmem:[#allocation3 + $0x518] sm:$0xff] }
 0x171   :  { %v726_v21 = vld [vmem:[#allocation3 + $0x538] sm:$0xff] }
 0x172   :  { %2320 = vmatpush1.bf16.msra.mxu0 %v7917_v42  ;;  %2373 = vmatpush1.bf16.msra.mxu1 %v8045_v43  ;;  %v7989_v42 = vcombine.low %v641_v30, %v645_v31  ;;  %v8117_v43 = vcombine.low %v769_v32, %v773_v33  ;;  %v586_v30 = vld [vmem:[#allocation3 + $0xd8] sm:$0xff] }
 0x173   :  { %2321 = vmatprep.subr.bf16.mxu0 %v7910_v44  ;;  %2374 = vmatprep.subr.bf16.mxu1 %v8038_v47  ;;  %v7982_v44 = vcombine.high %v633_v38, %v637_v39  ;;  %v8110_v47 = vcombine.high %v761_v40, %v765_v41  ;;  %v590_v31 = vld [vmem:[#allocation3 + $0xf8] sm:$0xff] }
 0x174   :  { %v714_v32 = vld [vmem:[#allocation3 + $0x4d8] sm:$0xff] }
 0x175   :  { %v718_v33 = vld [vmem:[#allocation3 + $0x4f8] sm:$0xff] }
 0x176   :  { %2322 = vmatpush1.bf16.msra.mxu0 %v7909_v52  ;;  %2375 = vmatpush1.bf16.msra.mxu1 %v8037_v55  ;;  %v7981_v52 = vcombine.low %v633_v38, %v637_v39  ;;  %v8109_v55 = vcombine.low %v761_v40, %v765_v41  ;;  %v578_v38 = vld [vmem:[#allocation3 + $0x98] sm:$0xff] }
 0x177   :  { %2323 = vmatprep.subr.bf16.mxu0 %v8030_v56  ;;  %2376 = vmatprep.subr.bf16.mxu1 %v8158_v57  ;;  %v7974_v56 = vcombine.high %v625_v48, %v629_v49  ;;  %v8102_v57 = vcombine.high %v753_v50, %v757_v51  ;;  %v582_v39 = vld [vmem:[#allocation3 + $0xb8] sm:$0xff] }
 0x178   :  { %v706_v40 = vld [vmem:[#allocation3 + $0x498] sm:$0xff] }
 0x179   :  { %v710_v41 = vld [vmem:[#allocation3 + $0x4b8] sm:$0xff] }
 0x17a   :  { %2324 = vmatpush2.bf16.msra.mxu0 %v8029_v62  ;;  %2377 = vmatpush2.bf16.msra.mxu1 %v8157_v63  ;;  %v7973_v62 = vcombine.low %v625_v48, %v629_v49  ;;  %v8101_v63 = vcombine.low %v753_v50, %v757_v51  ;;  %v574_v48 = vld [vmem:[#allocation3 + $0x78] sm:$0xff]  ;;  %v7927_v51 = vcombine.low %v578_v38, %v582_v39 }
 0x17b   :  { %2325 = vmatprep.subr.bf16.mxu0 %v8022_v0  ;;  %2378 = vmatprep.subr.bf16.mxu1 %v8150_v1  ;;  %v7968_v0 = vcombine.high %v618_v58, %v622_v59  ;;  %v8096_v1 = vcombine.high %v746_v60, %v750_v61  ;;  %v698_v49 = vld [vmem:[#allocation3 + $0x458] sm:$0xff] }
 0x17c   :  { %v702_v50 = vld [vmem:[#allocation3 + $0x478] sm:$0xff] }
 0x17e   :  { %2326 = vmatpush2.bf16.msra.mxu0 %v8021_v6  ;;  %2379 = vmatpush2.bf16.msra.mxu1 %v8149_v7  ;;  %v7967_v6 = vcombine.low %v618_v58, %v622_v59  ;;  %v8095_v7 = vcombine.low %v746_v60, %v750_v61  ;;  %v566_v58 = vld [vmem:[#allocation3 + $0x38] sm:$0xff] }
 0x17f   :  { %2327 = vmatprep.subr.bf16.mxu0 %v8014_v8  ;;  %2380 = vmatprep.subr.bf16.mxu1 %v8142_v9  ;;  %v7960_v8 = vcombine.high %v610_v2, %v614_v3  ;;  %v8088_v9 = vcombine.high %v738_v4, %v742_v5  ;;  %v690_v59 = vld [vmem:[#allocation3 + $0x418] sm:$0xff] }
 0x180   :  { %v694_v60 = vld [vmem:[#allocation3 + $0x438] sm:$0xff] }
 0x182   :  { %2328 = vmatpush2.bf16.msra.mxu0 %v8013_v14  ;;  %2381 = vmatpush2.bf16.msra.mxu1 %v8141_v15  ;;  %v7959_v14 = vcombine.low %v610_v2, %v614_v3  ;;  %v8087_v15 = vcombine.low %v738_v4, %v742_v5  ;;  %v686_v2 = vld [vmem:[#allocation3 + $0x3f8] sm:$0xff] }
 0x183   :  { %2329 = vmatprep.subr.bf16.mxu0 %v8006_v16  ;;  %2382 = vmatprep.subr.bf16.mxu1 %v8134_v17  ;;  %v7952_v16 = vcombine.high %v602_v10, %v606_v11  ;;  %v8080_v17 = vcombine.high %v730_v12, %v734_v13  ;;  %v810_v3 = vld [vmem:[#allocation3 + $0x7d8] sm:$0xff] }
 0x184   :  { %v814_v4 = vld [vmem:[#allocation3 + $0x7f8] sm:$0xff] }
 0x186   :  { %2330 = vmatpush2.bf16.msra.mxu0 %v8005_v22  ;;  %2383 = vmatpush2.bf16.msra.mxu1 %v8133_v23  ;;  %v7951_v22 = vcombine.low %v602_v10, %v606_v11  ;;  %v8079_v23 = vcombine.low %v730_v12, %v734_v13  ;;  %v678_v10 = vld [vmem:[#allocation3 + $0x3b8] sm:$0xff] }
 0x187   :  { %2331 = vmatprep.subr.bf16.mxu0 %v7998_v28  ;;  %2384 = vmatprep.subr.bf16.mxu1 %v8126_v29  ;;  %v7944_v28 = vcombine.high %v594_v18, %v598_v19  ;;  %v8072_v29 = vcombine.high %v722_v20, %v726_v21  ;;  %v802_v11 = vld [vmem:[#allocation3 + $0x798] sm:$0xff] }
 0x188   :  { %v806_v12 = vld [vmem:[#allocation3 + $0x7b8] sm:$0xff] }
 0x18a   :  { %2332 = vmatpush2.bf16.msra.mxu0 %v7997_v34  ;;  %2385 = vmatpush2.bf16.msra.mxu1 %v8125_v35  ;;  %v7943_v34 = vcombine.low %v594_v18, %v598_v19  ;;  %v8071_v35 = vcombine.low %v722_v20, %v726_v21  ;;  %v670_v18 = vld [vmem:[#allocation3 + $0x378] sm:$0xff] }
 0x18b   :  { %2333 = vmatprep.subr.bf16.mxu0 %v7990_v36  ;;  %2386 = vmatprep.subr.bf16.mxu1 %v8118_v37  ;;  %v7936_v36 = vcombine.high %v586_v30, %v590_v31  ;;  %v8064_v37 = vcombine.high %v714_v32, %v718_v33  ;;  %v794_v19 = vld [vmem:[#allocation3 + $0x758] sm:$0xff] }
 0x18c   :  { %v798_v20 = vld [vmem:[#allocation3 + $0x778] sm:$0xff] }
 0x18e   :  { %2334 = vmatpush2.bf16.msra.mxu0 %v7989_v42  ;;  %2387 = vmatpush2.bf16.msra.mxu1 %v8117_v43  ;;  %v7935_v42 = vcombine.low %v586_v30, %v590_v31  ;;  %v8063_v43 = vcombine.low %v714_v32, %v718_v33  ;;  %v662_v30 = vld [vmem:[#allocation3 + $0x338] sm:$0xff] }
 0x18f   :  { %2335 = vmatprep.subr.bf16.mxu0 %v7982_v44  ;;  %2388 = vmatprep.subr.bf16.mxu1 %v8110_v47  ;;  %v570_v44 = vld [vmem:[#allocation3 + $0x58] sm:$0xff]  ;;  %v11358_v47 = vmov 0  }
 0x190   :  { %2519 = vst [vmem:[#allocation2] sm:$0xff] %v11358_v47  ;;  %2525 = vst [vmem:[#allocation2 + $0x24] sm:$0xff] %v11358_v47  ;;  %8455 = vset.pattern.permute.xlu0 %v11358_v47  ;;  %8456 = vset.pattern.permute.xlu1 %v11358_v47  ;;  %v7919_v61 = vcombine.low %v570_v44, %v574_v48  ;;  %v786_v31 = vld [vmem:[#allocation3 + $0x718] sm:$0xff] }
 0x191   :  { %2530 = vst [vmem:[#allocation2 + $0x48] sm:$0xff] %v11358_v47  ;;  %2535 = vst [vmem:[#allocation2 + $0x6c] sm:$0xff] %v11358_v47  ;;  %v790_v32 = vld [vmem:[#allocation3 + $0x738] sm:$0xff] }
 0x192   :  { %2336 = vmatpush2.bf16.msra.mxu0 %v7981_v52  ;;  %2389 = vmatpush2.bf16.msra.mxu1 %v8109_v55  ;;  %v8055_v52 = vcombine.low %v706_v40, %v710_v41  ;;  %v7920_v55 = vcombine.high %v570_v44, %v574_v48  ;;  %v646_v44 = vld [vmem:[#allocation3 + $0x2b8] sm:$0xff]  ;;  %2524 = vst.msk [vmem:[#allocation2 + $0x20] sm:$0xf] %vm2523_vm10, %v11358_v47  ;;  %2529 = vst.msk [vmem:[#allocation2 + $0x44] sm:$0xf] %vm2523_vm10, %v11358_v47 }
 0x193   :  { %2337 = vmatprep.subr.bf16.mxu0 %v7974_v56  ;;  %2390 = vmatprep.subr.bf16.mxu1 %v8102_v57  ;;  %v8048_v56 = vcombine.high %v698_v49, %v702_v50  ;;  %v562_v57 = vld [vmem:[#allocation3 + $0x18] sm:$0xff]  ;;  %2534 = vst.msk [vmem:[#allocation2 + $0x68] sm:$0xf] %vm2523_vm10, %v11358_v47  ;;  %2539 = vst.msk [vmem:[#allocation2 + $0x8c] sm:$0xf] %vm2523_vm10, %v11358_v47 }
 0x194   :  { %v7911_v5 = vcombine.low %v562_v57, %v566_v58  ;;  %v770_v48 = vld [vmem:[#allocation3 + $0x698] sm:$0xff] }
 0x196   :  { %2338 = vmatpush2.bf16.msra.mxu0 %v7973_v62  ;;  %2391 = vmatpush2.bf16.msra.mxu1 %v8101_v63  ;;  %v8047_v62 = vcombine.low %v698_v49, %v702_v50  ;;  %v7912_v63 = vcombine.high %v562_v57, %v566_v58  ;;  %v774_v49 = vld [vmem:[#allocation3 + $0x6b8] sm:$0xff] }
 0x197   :  { %2413 = vmatprep.subr.bf16.mxu0 %v7968_v0  ;;  %2466 = vmatprep.subr.bf16.mxu1 %v8096_v1  ;;  %v8040_v0 = vcombine.high %v690_v59, %v694_v60  ;;  %v682_v1 = vld [vmem:[#allocation3 + $0x3d8] sm:$0xff] }
 0x198   :  { %v8031_v13 = vcombine.low %v682_v1, %v686_v2  ;;  %v638_v57 = vld [vmem:[#allocation3 + $0x278] sm:$0xff] }
 0x199   :  { %2340 = vmatmul.mubr.bf16.vlgmr.msra.gmra.mxu0 %v8863_v26  ;;  %2393 = vmatmul.mubr.bf16.vlgmr.msra.gmra.mxu1 %v8865_v27  ;;  %v762_v58 = vld [vmem:[#allocation3 + $0x658] sm:$0xff] }
 0x19a   :  { %2349 = vmatprep.mubr.bf16.mxu0 %v8875_v53  ;;  %2402 = vmatprep.mubr.bf16.mxu1 %v8877_v54 }
 0x19b   :  { %2414 = vmatpush1.bf16.msra.mxu0 %v7967_v6  ;;  %2467 = vmatpush1.bf16.msra.mxu1 %v8095_v7  ;;  %v8039_v6 = vcombine.low %v690_v59, %v694_v60  ;;  %v8032_v7 = vcombine.high %v682_v1, %v686_v2  ;;  %v766_v59 = vld [vmem:[#allocation3 + $0x678] sm:$0xff] }
 0x19c   :  { %2415 = vmatprep.subr.bf16.mxu0 %v7960_v8  ;;  %2468 = vmatprep.subr.bf16.mxu1 %v8088_v9  ;;  %v8160_v8 = vcombine.high %v810_v3, %v814_v4  ;;  %v674_v9 = vld [vmem:[#allocation3 + $0x398] sm:$0xff] }
 0x19d   :  { %v8023_v21 = vcombine.low %v674_v9, %v678_v10  ;;  %v630_v1 = vld [vmem:[#allocation3 + $0x238] sm:$0xff] }
 0x19e   :  { %v754_v2 = vld [vmem:[#allocation3 + $0x618] sm:$0xff] }
 0x19f   :  { %2416 = vmatpush1.bf16.msra.mxu0 %v7959_v14  ;;  %2469 = vmatpush1.bf16.msra.mxu1 %v8087_v15  ;;  %v8159_v14 = vcombine.low %v810_v3, %v814_v4  ;;  %v8024_v15 = vcombine.high %v674_v9, %v678_v10  ;;  %v758_v3 = vld [vmem:[#allocation3 + $0x638] sm:$0xff] }
 0x1a0   :  { %2417 = vmatprep.subr.bf16.mxu0 %v7952_v16  ;;  %2470 = vmatprep.subr.bf16.mxu1 %v8080_v17  ;;  %v8152_v16 = vcombine.high %v802_v11, %v806_v12  ;;  %v666_v17 = vld [vmem:[#allocation3 + $0x358] sm:$0xff]  ;;  %v8103_v10 = vcombine.low %v754_v2, %v758_v3 }
 0x1a1   :  { %2350 = vmatmul.mubr.bf16.gmra.mxu0 %v8871_v45  ;;  %2403 = vmatmul.mubr.bf16.gmra.mxu1 %v8873_v46  ;;  %v8015_v33 = vcombine.low %v666_v17, %v670_v18 }
 0x1a2   :  { %2445 = vmatprep.mubr.bf16.mxu0 %v8859_v24  ;;  %2498 = vmatprep.mubr.bf16.mxu1 %v8861_v25  ;;  %v7928_v24 = vcombine.high %v578_v38, %v582_v39  ;;  %v8056_v25 = vcombine.high %v706_v40, %v710_v41  ;;  %v654_v38 = vld [vmem:[#allocation3 + $0x2f8] sm:$0xff] }
 0x1a3   :  { %2418 = vmatpush1.bf16.msra.mxu0 %v7951_v22  ;;  %2471 = vmatpush1.bf16.msra.mxu1 %v8079_v23  ;;  %v8151_v22 = vcombine.low %v802_v11, %v806_v12  ;;  %v8016_v23 = vcombine.high %v666_v17, %v670_v18  ;;  %v778_v39 = vld [vmem:[#allocation3 + $0x6d8] sm:$0xff] }
 0x1a4   :  { %2419 = vmatprep.subr.bf16.mxu0 %v7944_v28  ;;  %2472 = vmatprep.subr.bf16.mxu1 %v8072_v29  ;;  %v8144_v28 = vcombine.high %v794_v19, %v798_v20  ;;  %v658_v29 = vld [vmem:[#allocation3 + $0x318] sm:$0xff] }
 0x1a5   :  { %v782_v40 = vld [vmem:[#allocation3 + $0x6f8] sm:$0xff]  ;;  %v8007_v41 = vcombine.low %v658_v29, %v662_v30 }
 0x1a7   :  { %2420 = vmatpush1.bf16.msra.mxu0 %v7943_v34  ;;  %2473 = vmatpush1.bf16.msra.mxu1 %v8071_v35  ;;  %v8143_v34 = vcombine.low %v794_v19, %v798_v20  ;;  %v8008_v35 = vcombine.high %v658_v29, %v662_v30 }
 0x1a8   :  { %2421 = vmatprep.subr.bf16.mxu0 %v7936_v36  ;;  %2474 = vmatprep.subr.bf16.mxu1 %v8064_v37  ;;  %v8136_v36 = vcombine.high %v786_v31, %v790_v32  ;;  %v650_v37 = vld [vmem:[#allocation3 + $0x2d8] sm:$0xff] }
 0x1a9   :  { %v7999_v50 = vcombine.low %v650_v37, %v654_v38 }
 0x1ab   :  { %2422 = vmatpush1.bf16.msra.mxu0 %v7935_v42  ;;  %2475 = vmatpush1.bf16.msra.mxu1 %v8063_v43  ;;  %v8135_v42 = vcombine.low %v786_v31, %v790_v32  ;;  %v8000_v43 = vcombine.high %v650_v37, %v654_v38 }
 0x1ac   :  { %2423 = vmatprep.subr.bf16.mxu0 %v7928_v24  ;;  %2476 = vmatprep.subr.bf16.mxu1 %v8056_v25  ;;  %v8128_v24 = vcombine.high %v778_v39, %v782_v40  ;;  %v642_v25 = vld [vmem:[#allocation3 + $0x298] sm:$0xff] }
 0x1ad   :  { %v7991_v60 = vcombine.low %v642_v25, %v646_v44 }
 0x1af   :  { %2424 = vmatpush1.bf16.msra.mxu0 %v7927_v51  ;;  %2477 = vmatpush1.bf16.msra.mxu1 %v8055_v52  ;;  %v8127_v51 = vcombine.low %v778_v39, %v782_v40  ;;  %v7992_v52 = vcombine.high %v642_v25, %v646_v44 }
 0x1b0   :  { %2425 = vmatprep.subr.bf16.mxu0 %v7920_v55  ;;  %2478 = vmatprep.subr.bf16.mxu1 %v8048_v56  ;;  %v8120_v55 = vcombine.high %v770_v48, %v774_v49  ;;  %v634_v56 = vld [vmem:[#allocation3 + $0x258] sm:$0xff] }
 0x1b1   :  { %v7983_v4 = vcombine.low %v634_v56, %v638_v57 }
 0x1b3   :  { %2426 = vmatpush1.bf16.msra.mxu0 %v7919_v61  ;;  %2479 = vmatpush1.bf16.msra.mxu1 %v8047_v62  ;;  %v8119_v61 = vcombine.low %v770_v48, %v774_v49  ;;  %v7984_v62 = vcombine.high %v634_v56, %v638_v57 }
 0x1b4   :  { %2427 = vmatprep.subr.bf16.mxu0 %v7912_v63  ;;  %2480 = vmatprep.subr.bf16.mxu1 %v8040_v0  ;;  %v8112_v63 = vcombine.high %v762_v58, %v766_v59  ;;  %v626_v0 = vld [vmem:[#allocation3 + $0x218] sm:$0xff] }
 0x1b5   :  { %v7975_v9 = vcombine.low %v626_v0, %v630_v1 }
 0x1b7   :  { %2428 = vmatpush1.bf16.msra.mxu0 %v7911_v5  ;;  %2481 = vmatpush1.bf16.msra.mxu1 %v8039_v6  ;;  %v8111_v5 = vcombine.low %v762_v58, %v766_v59  ;;  %v7976_v6 = vcombine.high %v626_v0, %v630_v1 }
 0x1b8   :  { %2429 = vmatprep.subr.bf16.mxu0 %v8032_v7  ;;  %2482 = vmatprep.subr.bf16.mxu1 %v8160_v8  ;;  %v8104_v7 = vcombine.high %v754_v2, %v758_v3  ;;  %v2742_v8 = vlaneseq }
 0x1ba   :  { %v8907_v11 = vand.u32 127, %v2742_v8 }
 0x1bb   :  { %2430 = vmatpush2.bf16.msra.mxu0 %v8031_v13  ;;  %2483 = vmatpush2.bf16.msra.mxu1 %v8159_v14 }
 0x1bc   :  { %2431 = vmatprep.subr.bf16.mxu0 %v8024_v15  ;;  %2484 = vmatprep.subr.bf16.mxu1 %v8152_v16  ;;  %v2744_v14 = vadd.s32 128, %v8907_v11 }
 0x1bf   :  { %2432 = vmatpush2.bf16.msra.mxu0 %v8023_v21  ;;  %2485 = vmatpush2.bf16.msra.mxu1 %v8151_v22  ;;  %v2755_v21 = vand.u32 31, %v8907_v11  ;;  %v2762_v22 = vand.u32 31, %v2744_v14 }
 0x1c0   :  { %2433 = vmatprep.subr.bf16.mxu0 %v8016_v23  ;;  %2486 = vmatprep.subr.bf16.mxu1 %v8144_v28 }
 0x1c1   :  { %vm2847_vm0 = vcmp.ne.s32.totalorder %v2755_v21, 0  ;;  %vm2848_vm1 = vcmp.ne.s32.totalorder %v2762_v22, 0  ;;  %vm8937_vm3 = vcmp.ne.s32.totalorder %v2755_v21, 31  ;;  %vm8941_vm4 = vcmp.ne.s32.totalorder %v2762_v22, 31 }
 0x1c2   :  { %vm8916_vm2 = vmpackc.low %vm2848_vm1, %vm2847_vm0 }
 0x1c3   :  { %2434 = vmatpush2.bf16.msra.mxu0 %v8015_v33  ;;  %2487 = vmatpush2.bf16.msra.mxu1 %v8143_v34  ;;  %vm3397_vm5 = vmpackc.low %vm8941_vm4, %vm8937_vm3 }
 0x1c4   :  { %2435 = vmatprep.subr.bf16.mxu0 %v8008_v35  ;;  %2488 = vmatprep.subr.bf16.mxu1 %v8136_v36  ;;  %v8956_v3 = vsel %vm3397_vm5, 65537, %v11358_v47 }
 0x1c7   :  { %2436 = vmatpush2.bf16.msra.mxu0 %v8007_v41  ;;  %2489 = vmatpush2.bf16.msra.mxu1 %v8135_v42 }
 0x1c8   :  { %2437 = vmatprep.subr.bf16.mxu0 %v8000_v43  ;;  %2490 = vmatprep.subr.bf16.mxu1 %v8128_v24 }
 0x1cb   :  { %2438 = vmatpush2.bf16.msra.mxu0 %v7999_v50  ;;  %2491 = vmatpush2.bf16.msra.mxu1 %v8127_v51 }
 0x1cc   :  { %2439 = vmatprep.subr.bf16.mxu0 %v7992_v52  ;;  %2492 = vmatprep.subr.bf16.mxu1 %v8120_v55 }
 0x1cf   :  { %2440 = vmatpush2.bf16.msra.mxu0 %v7991_v60  ;;  %2493 = vmatpush2.bf16.msra.mxu1 %v8119_v61 }
 0x1d0   :  { %2441 = vmatprep.subr.bf16.mxu0 %v7984_v62  ;;  %2494 = vmatprep.subr.bf16.mxu1 %v8112_v63 }
 0x1d3   :  { %2442 = vmatpush2.bf16.msra.mxu0 %v7983_v4  ;;  %2495 = vmatpush2.bf16.msra.mxu1 %v8111_v5 }
 0x1d4   :  { %2443 = vmatprep.subr.bf16.mxu0 %v7976_v6  ;;  %2496 = vmatprep.subr.bf16.mxu1 %v8104_v7  ;;  %v11440_v7 = vmov 0 }
 0x1d5   :  { %v11441_v7 = vsel %vm8964_vm9, 4294967295, %v11440_v7 }
 0x1d6   :  { %11442 = vst [vmem:[#allocation6_spill] sm:$0xff] %v11441_v7 }
 0x1d7   :  { %2444 = vmatpush2.bf16.msra.mxu0 %v7975_v9  ;;  %2497 = vmatpush2.bf16.msra.mxu1 %v8103_v10 }
 0x1d8   :  { %v2129_v12 = vpop.f32.mrf.mxu0  ;;  %v2182_v13 = vpop.f32.mrf.mxu1 }
 0x1d9   :  { %v2183_v17 = vadd.f32 %v2182_v13, %v2129_v12 }
 0x1da   :  { %2446 = vmatmul.mubr.bf16.vlgmr.msra.gmra.mxu0 %v8863_v26  ;;  %2499 = vmatmul.mubr.bf16.vlgmr.msra.gmra.mxu1 %v8865_v27  ;;  %v2131_v15 = vpop.f32.mrf.mxu0  ;;  %v2184_v16 = vpop.f32.mrf.mxu1 }
 0x1db   :  { %2455 = vmatprep.mubr.bf16.mxu0 %v8875_v53  ;;  %2508 = vmatprep.mubr.bf16.mxu1 %v8877_v54  ;;  %v2185_v18 = vadd.f32 %v2184_v16, %v2131_v15  ;;  %v10026_v53 = vld [vmem:[%s11352_s3 + $0x20] sm:$0xff]  }
 0x1dc   :  { %v2133_v19 = vpop.f32.mrf.mxu0  ;;  %v2186_v20 = vpop.f32.mrf.mxu1 }
 0x1dd   :  { %v8423_v23 = vpack.c.bf16 %v2185_v18, %v2183_v17  ;;  %v2187_v26 = vadd.f32 %v2186_v20, %v2133_v19 }
 0x1de   :  { %v2135_v28 = vpop.f32.mrf.mxu0  ;;  %v2188_v29 = vpop.f32.mrf.mxu1 }
 0x1df   :  { %v2189_v27 = vadd.f32 %v2188_v29, %v2135_v28  ;;  %2620 = vrot.lane.b32.xlu0 %v8423_v23, %s8609_s2 }
 0x1e0   :  { %v2139_v54 = vpop.f32.mrf.mxu0  ;;  %v2192_v30 = vpop.f32.mrf.mxu1 }
 0x1e1   :  { %v8427_v31 = vpack.c.bf16 %v2189_v27, %v2187_v26  ;;  %v8920_v32 = vadd.f32 %v2192_v30, %v2139_v54 }
 0x1e2   :  { %2509 = vmatmul.mubr.bf16.gmra.mxu1 %v8873_v46  ;;  %2456 = vmatmul.mubr.bf16.gmra.mxu0 %v8871_v45  ;;  %v2141_v33 = vpop.f32.mrf.mxu0  ;;  %v2194_v34 = vpop.f32.mrf.mxu1 }
 0x1e3   :  { %2628 = vrot.lane.b32.xlu1 %v8427_v31, %s8609_s2  ;;  %v8925_v35 = vadd.f32 %v2194_v34, %v2141_v33  ;;  %3021 = vmatprep.mubr.bf16.mxu0 %v11358_v47 }
 0x1e4   :  { %v2143_v36 = vpop.f32.mrf.mxu0  ;;  %v2196_v37 = vpop.f32.mrf.mxu1  ;;  %3064 = vmatprep.mubr.bf16.mxu1 %v11358_v47 }
 0x1e5   :  { %v8931_v39 = vadd.f32 %v2196_v37, %v2143_v36 }
 0x1e6   :  { %v8933_v46 = vpop.f32.mrf.mxu0  ;;  %v8935_v45 = vpop.f32.mrf.mxu1 }
 0x218   :  { %v2235_v40 = vpop.f32.mrf.mxu0  ;;  %v2288_v41 = vpop.f32.mrf.mxu1 }
 0x219   :  { %v2289_v24 = vadd.f32 %v2288_v41, %v2235_v40 }
 0x21a   :  { %v2237_v42 = vpop.f32.mrf.mxu0  ;;  %v2290_v43 = vpop.f32.mrf.mxu1 }
 0x21b   :  { %v2291_v25 = vadd.f32 %v2290_v43, %v2237_v42 }
 0x21c   :  { %v2239_v44 = vpop.f32.mrf.mxu0  ;;  %v2292_v48 = vpop.f32.mrf.mxu1 }
 0x21d   :  { %v8424_v49 = vpack.c.bf16 %v2291_v25, %v2289_v24  ;;  %v2293_v56 = vadd.f32 %v2292_v48, %v2239_v44 }
 0x21e   :  { %v2241_v50 = vpop.f32.mrf.mxu0  ;;  %v2294_v51 = vpop.f32.mrf.mxu1 }
 0x21f   :  { %v2295_v57 = vadd.f32 %v2294_v51, %v2241_v50  ;;  %2622 = vrot.lane.b32.xlu0 %v8424_v49, %s8609_s2  ;;  %v2747_v49 = vadd.s32 512, %v8907_v11  ;;  %v2748_v50 = vadd.s32 640, %v8907_v11 }
 0x220   :  { %v2245_v58 = vpop.f32.mrf.mxu0  ;;  %v2298_v59 = vpop.f32.mrf.mxu1 }
 0x221   :  { %v8428_v60 = vpack.c.bf16 %v2295_v57, %v2293_v56  ;;  %v8946_v61 = vadd.f32 %v2298_v59, %v2245_v58  ;;  %v2783_v59 = vand.u32 31, %v2747_v49 }
 0x222   :  { %v2247_v62 = vpop.f32.mrf.mxu0  ;;  %v2300_v63 = vpop.f32.mrf.mxu1 }
 0x223   :  { %v8952_v0 = vadd.f32 %v2300_v63, %v2247_v62  ;;  %2630 = vrot.lane.b32.xlu0 %v8428_v60, %s8609_s2  ;;  %v2790_v60 = vand.u32 31, %v2748_v50  ;;  %vm9020_vm12 = vcmp.ne.s32.totalorder %v2783_v59, 31  ;;  %vm2851_vm3 = vcmp.ne.s32.totalorder %v2783_v59, 0 }
 0x224   :  { %v2249_v1 = vpop.f32.mrf.mxu0  ;;  %v2302_v2 = vpop.f32.mrf.mxu1 }
 0x225   :  { %v8960_v5 = vadd.f32 %v2302_v2, %v2249_v1  ;;  %v2745_v2 = vadd.s32 256, %v8907_v11  ;;  %vm9024_vm13 = vcmp.ne.s32.totalorder %v2790_v60, 31  ;;  %vm2852_vm4 = vcmp.ne.s32.totalorder %v2790_v60, 0 }
 0x226   :  { %v8971_v13 = vpop.f32.mrf.mxu0  ;;  %v8973_v14 = vpop.f32.mrf.mxu1  ;;  %vm3399_vm14 = vmpackc.low %vm9024_vm13, %vm9020_vm12 }
 0x227   :  { %3405 = vrot.lane.b32.xlu0 %v8956_v3, %s8610_s9  ;;  %vm9059_vm7 = vmpackc.low %vm2852_vm4, %vm2851_vm3  ;;  %vm3417_vm3 = vcmask 15360  }
 0x251   :  { %v2621_v6 = vpop.permute.xlu0 %2620 }
 0x252   :  { %v2652_v8 = vrot.slane %v2621_v6, 4 }
 0x254   :  { %v2669_v9 = vsel %vm11390_vm8, %v2652_v8, %v2621_v6  ;;  %v2746_v6 = vadd.s32 384, %v8907_v11 }
 0x255   :  { %2721 = vst.msk [vmem:[#allocation2] sm:$0xff] %vm8964_vm9, %v2669_v9  ;;  %v2629_v10 = vpop.permute.xlu1 %2628 }
 0x256   :  { %v2656_v12 = vrot.slane %v2629_v10, 4 }
 0x258   :  { %v2677_v15 = vsel %vm11390_vm8, %v2656_v12, %v2629_v10 }
 0x259   :  { %2727 = vst.msk [vmem:[#allocation2 + $0x24] sm:$0xff] %vm8964_vm9, %v2677_v15  ;;  %v2341_v16 = vpop.f32.mrf.mxu0  ;;  %v2394_v17 = vpop.f32.mrf.mxu1  ;;  %v2749_v15 = vadd.s32 768, %v8907_v11 }
 0x25a   :  { %v2395_v20 = vadd.f32 %v2394_v17, %v2341_v16  ;;  %v2750_v16 = vadd.s32 896, %v8907_v11 }
 0x25b   :  { %v2343_v18 = vpop.f32.mrf.mxu0  ;;  %v2396_v19 = vpop.f32.mrf.mxu1 }
 0x25c   :  { %v2397_v21 = vadd.f32 %v2396_v19, %v2343_v18  ;;  %v9081_v59 = vld [vmem:[#allocation2] sm:$0xff] }
 0x25d   :  { %v2345_v22 = vpop.f32.mrf.mxu0  ;;  %v2398_v23 = vpop.f32.mrf.mxu1 }
 0x25e   :  { %v8425_v28 = vpack.c.bf16 %v2397_v21, %v2395_v20  ;;  %v2399_v27 = vadd.f32 %v2398_v23, %v2345_v22  ;;  %v2769_v21 = vand.u32 31, %v2745_v2  ;;  %v2776_v22 = vand.u32 31, %v2746_v6 }
 0x25f   :  { %v2347_v29 = vpop.f32.mrf.mxu0  ;;  %v2400_v26 = vpop.f32.mrf.mxu1 }
 0x260   :  { %v2401_v54 = vadd.f32 %v2400_v26, %v2347_v29  ;;  %2624 = vrot.lane.b32.xlu1 %v8425_v28, %s8609_s2  ;;  %vm9034_vm15 = vcmp.ne.s32.totalorder %v2769_v21, 31  ;;  %vm9038_vm0 = vcmp.ne.s32.totalorder %v2776_v22, 31  ;;  %vm2849_vm12 = vcmp.ne.s32.totalorder %v2769_v21, 0  ;;  %v9072_v50 = vld [vmem:[#allocation2 + $0x24] sm:$0xff] }
 0x261   :  { %v2351_v30 = vpop.f32.mrf.mxu0  ;;  %v2404_v31 = vpop.f32.mrf.mxu1  ;;  %vm3398_vm1 = vmpackc.low %vm9038_vm0, %vm9034_vm15  ;;  %vm2850_vm13 = vcmp.ne.s32.totalorder %v2776_v22, 0 }
 0x262   :  { %v8429_v33 = vpack.c.bf16 %v2401_v54, %v2399_v27  ;;  %v8983_v34 = vadd.f32 %v2404_v31, %v2351_v30  ;;  %v2797_v27 = vand.u32 31, %v2749_v15  ;;  %v2804_v54 = vand.u32 31, %v2750_v16  ;;  %vm9077_vm0 = vmpackc.low %vm2850_vm13, %vm2849_vm12 }
 0x263   :  { %v2353_v36 = vpop.f32.mrf.mxu0  ;;  %v2406_v37 = vpop.f32.mrf.mxu1  ;;  %v3712_v60 = vsel %vm9077_vm0, 65537, %v11358_v47 }
 0x264   :  { %v8985_v40 = vadd.f32 %v2406_v37, %v2353_v36  ;;  %2632 = vrot.lane.b32.xlu1 %v8429_v33, %s8609_s2  ;;  %v9044_v33 = vsel %vm3399_vm14, 65537, %v11358_v47  ;;  %vm2861_vm5 = vcmp.ne.s32.totalorder %v2797_v27, 31  ;;  %vm2862_vm6 = vcmp.ne.s32.totalorder %v2804_v54, 31 }
 0x265   :  { %v2355_v41 = vpop.f32.mrf.mxu0  ;;  %v2408_v42 = vpop.f32.mrf.mxu1  ;;  %v3711_v37 = vsel %vm8916_vm2, 65537, %v11358_v47  ;;  %vm3400_vm10 = vmpackc.low %vm2862_vm6, %vm2861_vm5  ;;  %vm2853_vm14 = vcmp.ne.s32.totalorder %v2797_v27, 0  ;;  %vm2854_vm15 = vcmp.ne.s32.totalorder %v2804_v54, 0  ;;  %vm11386_vm5 = vcmask 265216  }
 0x266   :  { %v8990_v24 = vadd.f32 %v2408_v42, %v2355_v41  ;;  %v9057_v41 = vsel %vm3398_vm1, 65537, %v11358_v47  ;;  %v9070_v49 = vsel %vm3400_vm10, 65537, %v11358_v47  ;;  %vm9090_vm1 = vmpackc.low %vm2854_vm15, %vm2853_vm14  ;;  %vm3727_vm6 = vcmask 261120  }
 0x267   :  { %v9007_v56 = vpop.f32.mrf.mxu0  ;;  %v9009_v57 = vpop.f32.mrf.mxu1  ;;  %v3714_v2 = vsel %vm9090_vm1, 65537, %v11358_v47 }
 0x291   :  { %v8992_v25 = vpop.permute.xlu0 %2622 }
 0x292   :  { %v2653_v44 = vrot.slane %v8992_v25, 4 }
 0x294   :  { %v2671_v48 = vsel %vm2670_vm11, %v2652_v8, %v2653_v44 }
 0x295   :  { %v9002_v51 = vsel %vm11390_vm8, %v2671_v48, %v8992_v25  ;;  %v9004_v52 = vpop.permute.xlu0 %2630  ;;  %v3713_v48 = vsel %vm9059_vm7, 65537, %v11358_v47 }
 0x296   :  { %v2657_v55 = vrot.slane %v9004_v52, 4 }
 0x298   :  { %v2678_v58 = vsel %vm2670_vm11, %v2656_v12, %v2657_v55 }
 0x299   :  { %v9016_v62 = vsel %vm11390_vm8, %v2678_v58, %v9004_v52  ;;  %v3406_v6 = vpop.permute.xlu0 %3405 }
 0x29a   :  { %v2447_v63 = vpop.f32.mrf.mxu0  ;;  %v2500_v1 = vpop.f32.mrf.mxu1 }
 0x29b   :  { %v2501_v17 = vadd.f32 %v2500_v1, %v2447_v63  ;;  %v9088_v63 = vcombine.high %v9081_v59, %v9072_v50  ;;  %v11455_v1 = vmov 0 }
 0x29c   :  { %v2449_v8 = vpop.f32.mrf.mxu0  ;;  %v2502_v9 = vpop.f32.mrf.mxu1  ;;  %v11456_v1 = vsel %vm9090_vm1, 4294967295, %v11455_v1 }
 0x29d   :  { %v2503_v18 = vadd.f32 %v2502_v9, %v2449_v8  ;;  %11457 = vst [vmem:[#allocation7_spill] sm:$0xff] %v11456_v1  ;;  %v9102_v8 = vcombine.low %v9081_v59, %v9072_v50  ;;  %v3413_v9 = vrot.slane %v3406_v6, 4 }
 0x29e   :  { %v2451_v19 = vpop.f32.mrf.mxu0  ;;  %v2504_v20 = vpop.f32.mrf.mxu1 }
 0x29f   :  { %v8426_v23 = vpack.c.bf16 %v2503_v18, %v2501_v17  ;;  %v2505_v30 = vadd.f32 %v2504_v20, %v2451_v19  ;;  %v9110_v10 = vsel %vm3417_vm3, %v3413_v9, %v3406_v6  ;;  %v9129_v18 = vcombine.low %v9002_v51, %v9016_v62 }
 0x2a0   :  { %v2453_v28 = vpop.f32.mrf.mxu0  ;;  %v2506_v29 = vpop.f32.mrf.mxu1  ;;  %11458 = vst [vmem:[#allocation8_spill] sm:$0xff] %v9110_v10  ;;  %vm11385_vm4 = vcmp.ne.s16.totalorder %v9110_v10, 0 }
 0x2a1   :  { %v2507_v31 = vadd.f32 %v2506_v29, %v2453_v28  ;;  %2626 = vrot.lane.b32.xlu0 %v8426_v23, %s8609_s2  ;;  %v3430_v12 = vsel %vm11385_vm4, %v9081_v59, 0  ;;  %v3435_v15 = vsel %vm11385_vm4, %v9072_v50, 0  ;;  %vm11394_vm4 = vcmask 523264  }
 0x2a2   :  { %v8210_v16 = vcombine.high %v3430_v12, %v3435_v15  ;;  %v8209_v17 = vcombine.low %v3430_v12, %v3435_v15 }
 0x2a3   :  { %v8430_v36 = vpack.c.bf16 %v2507_v31, %v2505_v30 }
 0x2a5   :  { %3409 = vrot.lane.b32.xlu0 %v9044_v33, %s8610_s9  ;;  %2634 = vrot.lane.b32.xlu1 %v8430_v36, %s8609_s2 }
 0x2a9   :  { %3715 = vrot.lane.b32.xlu0 %v3711_v37, %s8607_s22  ;;  %3407 = vrot.lane.b32.xlu1 %v9057_v41, %s8610_s9 }
 0x2ad   :  { %3719 = vrot.lane.b32.xlu0 %v3713_v48, %s8607_s22  ;;  %3411 = vrot.lane.b32.xlu1 %v9070_v49, %s8610_s9 }
 0x2b1   :  { %2952 = vrot.lane.b32.xlu0 %v9088_v63, %s8611_s10  ;;  %3717 = vrot.lane.b32.xlu1 %v3712_v60, %s8607_s22 }
 0x2b5   :  { %2950 = vrot.lane.b32.xlu0 %v9102_v8, %s8611_s10  ;;  %3721 = vrot.lane.b32.xlu1 %v3714_v2, %s8607_s22  ;;  %s8613_s22 = smov 64  }
 0x2b9   :  { %4257 = vrot.lane.b32.xlu0 %v9057_v41, %s8612_s11  ;;  %4255 = vrot.lane.b32.xlu1 %v8956_v3, %s8612_s11 }
 0x2bd   :  { %4261 = vrot.lane.b32.xlu0 %v9070_v49, %s8612_s11  ;;  %4259 = vrot.lane.b32.xlu1 %v9044_v33, %s8612_s11 }
 0x2c1   :  { %4563 = vrot.lane.b32.xlu0 %v3712_v60, %s8613_s22  ;;  %4561 = vrot.lane.b32.xlu1 %v3711_v37, %s8613_s22 }
 0x2c5   :  { %3487 = vrot.lane.b32.xlu0 %v8210_v16, %s8614_s12  ;;  %4565 = vrot.lane.b32.xlu1 %v3713_v48, %s8613_s22 }
 0x2c9   :  { %3485 = vrot.lane.b32.xlu0 %v8209_v17, %s8614_s12  ;;  %4567 = vrot.lane.b32.xlu1 %v3714_v2, %s8613_s22 }
 0x2cd   :  { %2954 = vrot.lane.b32.xlu1 %v9129_v18, %s8611_s10 }
 0x2d2   :  { %v2625_v19 = vpop.permute.xlu1 %2624 }
 0x2d3   :  { %v2654_v20 = vrot.slane %v2625_v19, 4 }
 0x2d5   :  { %v2673_v21 = vsel %vm2670_vm11, %v2653_v44, %v2654_v20 }
 0x2d6   :  { %v9137_v22 = vsel %vm11390_vm8, %v2673_v21, %v2625_v19  ;;  %v2633_v23 = vpop.permute.xlu1 %2632 }
 0x2d7   :  { %v2658_v28 = vrot.slane %v2633_v23, 4 }
 0x2d9   :  { %v2680_v29 = vsel %vm2670_vm11, %v2657_v55, %v2658_v28 }
 0x2da   :  { %v9143_v26 = vsel %vm11390_vm8, %v2680_v29, %v2633_v23 }
 0x313   :  { %v2627_v11 = vpop.permute.xlu0 %2626 }
 0x314   :  { %v2655_v27 = vrot.slane %v2627_v11, 4 }
 0x316   :  { %v2675_v54 = vsel %vm2670_vm11, %v2654_v20, %v2655_v27  ;;  %2726 = vst.msk [vmem:[#allocation2 + $0x20] sm:$0xf] %vm11386_vm5, %v2655_v27 }
 0x317   :  { %v9148_v25 = vsel %vm11390_vm8, %v2675_v54, %v2627_v11  ;;  %v9150_v44 = vpop.permute.xlu0 %3409  ;;  %v2635_v30 = vpop.permute.xlu1 %2634 }
 0x318   :  { %v2659_v31 = vrot.slane %v2635_v30, 4  ;;  %v11357_v29 = vrot.slane %v9150_v44, 4 }
 0x31a   :  { %v2682_v52 = vsel %vm2670_vm11, %v2658_v28, %v2659_v31  ;;  %2731 = vst.msk [vmem:[#allocation2 + $0x44] sm:$0xf] %vm11386_vm5, %v2659_v31 }
 0x31b   :  { %v9155_v55 = vsel %vm11390_vm8, %v2682_v52, %v2635_v30  ;;  %v3716_v36 = vpop.permute.xlu0 %3715  ;;  %v3408_v37 = vpop.permute.xlu1 %3407 }
 0x31c   :  { %v3723_v48 = vrot.slane %v3716_v36, 4  ;;  %v3414_v60 = vrot.slane %v3408_v37, 4 }
 0x31e   :  { %v9158_v2 = vsel %vm3727_vm6, %v3723_v48, %v3716_v36  ;;  %v3419_v6 = vsel %vm2670_vm11, %v3413_v9, %v3414_v60 }
 0x31f   :  { %11459 = vst [vmem:[#allocation9_spill] sm:$0xff] %v9158_v2  ;;  %vm11356_vm10 = vcmp.ne.s16.totalorder %v9158_v2, 0  ;;  %v9163_v12 = vsel %vm3417_vm3, %v3419_v6, %v3408_v37  ;;  %v9165_v15 = vpop.permute.xlu1 %3411  ;;  %v9191_v31 = vpop.permute.xlu0 %3719  ;;  %v3421_v37 = vsel %vm2670_vm11, %v3414_v60, %v11357_v29  ;;  %v9205_v6 = vcombine.high %v9002_v51, %v9016_v62 }
 0x320   :  { %11460 = vst [vmem:[#allocation10_spill] sm:$0xff] %v9163_v12  ;;  %vm11382_vm12 = vcmp.ne.s16.totalorder %v9163_v12, 0  ;;  %v3740_v16 = vsel %vm11356_vm10, %v9081_v59, 0  ;;  %v3745_v17 = vsel %vm11356_vm10, %v9072_v50, 0 }
 0x321   :  { %v3431_v9 = vsel %vm11382_vm12, %v9002_v51, 0  ;;  %v3436_v19 = vsel %vm11382_vm12, %v9016_v62, 0  ;;  %v8226_v20 = vcombine.high %v3740_v16, %v3745_v17  ;;  %v8225_v27 = vcombine.low %v3740_v16, %v3745_v17 }
 0x322   :  { %v8211_v21 = vcombine.low %v3431_v9, %v3436_v19 }
 0x323   :  { %v3718_v23 = vpop.permute.xlu1 %3717  ;;  %3797 = vrot.lane.b32.xlu0 %v8226_v20, %s8615_s13  ;;  %v9214_v20 = vsel %vm3417_vm3, %v3421_v37, %v9150_v44  ;;  %v2953_v38 = vpop.permute.xlu0 %2952 }
 0x324   :  { %v3724_v28 = vrot.slane %v3718_v23, 4  ;;  %3489 = vrot.lane.b32.xlu1 %v8211_v21, %s8614_s12  ;;  %11462 = vst [vmem:[#allocation12_spill] sm:$0xff] %v9214_v20  ;;  %v8212_v21 = vcombine.high %v3431_v9, %v3436_v19  ;;  %vm11381_vm14 = vcmp.ne.s16.totalorder %v9214_v20, 0  ;;  %v9235_v9 = vcombine.high %v9137_v22, %v9143_v26 }
 0x325   :  { %v9290_v20 = vcombine.low %v9148_v25, %v9155_v55 }
 0x326   :  { %v3729_v11 = vsel %vm2670_vm11, %v3723_v48, %v3724_v28  ;;  %v11355_v48 = vrot.slane %v9191_v31, 4 }
 0x327   :  { %v9185_v54 = vsel %vm3727_vm6, %v3729_v11, %v3718_v23  ;;  %v9187_v30 = vpop.permute.xlu1 %3721  ;;  %3795 = vrot.lane.b32.xlu0 %v8225_v27, %s8615_s13  ;;  %v9221_v23 = vcombine.low %v9137_v22, %v9143_v26 }
 0x328   :  { %11461 = vst [vmem:[#allocation11_spill] sm:$0xff] %v9185_v54  ;;  %vm11366_vm13 = vcmp.ne.s16.totalorder %v9185_v54, 0  ;;  %v3731_v60 = vsel %vm2670_vm11, %v3724_v28, %v11355_v48  ;;  %v3432_v28 = vsel %vm11381_vm14, %v9137_v22, 0  ;;  %v9252_v48 = vld [vmem:[#allocation2 + $0x44] sm:$0xf]  ;;  %v3726_v29 = vrot.slane %v9187_v30, 4 }
 0x329   :  { %v3741_v52 = vsel %vm11366_vm13, %v9002_v51, 0  ;;  %v3746_v36 = vsel %vm11366_vm13, %v9016_v62, 0  ;;  %v9231_v27 = vsel %vm3727_vm6, %v3731_v60, %v9191_v31  ;;  %vm11393_vm13 = vcmask 1039360  }
 0x32a   :  { %v8227_v16 = vcombine.low %v3741_v52, %v3746_v36  ;;  %11463 = vst [vmem:[#allocation13_spill] sm:$0xff] %v9231_v27  ;;  %v8228_v37 = vcombine.high %v3741_v52, %v3746_v36  ;;  %vm11365_vm15 = vcmp.ne.s16.totalorder %v9231_v27, 0 }
 0x32b   :  { %v9207_v17 = vpop.permute.xlu1 %4255  ;;  %2956 = vrot.lane.b32.xlu0 %v9205_v6, %s8611_s10  ;;  %v3742_v4 = vsel %vm11365_vm15, %v9137_v22, 0  ;;  %v3747_v43 = vsel %vm11365_vm15, %v9143_v26, 0  ;;  %vm9281_vm15 = vcmp.ne.s16.totalorder %v3726_v29, 0 }
 0x32c   :  { %3799 = vrot.lane.b32.xlu1 %v8227_v16, %s8615_s13  ;;  %v3437_v16 = vsel %vm11381_vm14, %v9143_v26, 0  ;;  %v8229_v47 = vcombine.low %v3742_v4, %v3747_v43  ;;  %v3749_v7 = vsel %vm9281_vm15, %v9252_v48, 0  ;;  %vm11400_vm14 = vcmask 130048  }
 0x32d   :  { %v8214_v52 = vcombine.high %v3432_v28, %v3437_v16  ;;  %v8213_v36 = vcombine.low %v3432_v28, %v3437_v16  ;;  %v9267_v28 = vld [vmem:[#allocation2 + $0x20] sm:$0xf] }
 0x32e   :  { %v9271_v16 = vcombine.low %v9267_v28, %v9252_v48 }
 0x32f   :  { %v9223_v11 = vpop.permute.xlu1 %4259  ;;  %3491 = vrot.lane.b32.xlu0 %v8212_v21, %s8614_s12  ;;  %v3416_v21 = vrot.slane %v9165_v15, 4 }
 0x330   :  { %2958 = vrot.lane.b32.xlu1 %v9221_v23, %s8611_s10 }
 0x331   :  { %vm9260_vm10 = vcmp.ne.s16.totalorder %v3416_v21, 0 }
 0x332   :  { %v3434_v2 = vsel %vm9260_vm10, %v9267_v28, 0  ;;  %v3439_v54 = vsel %vm9260_vm10, %v9252_v48, 0 }
 0x333   :  { %v9237_v19 = vpop.permute.xlu1 %4561  ;;  %3801 = vrot.lane.b32.xlu0 %v8228_v37, %s8615_s13  ;;  %v11464_v37 = vmov 0  ;;  %v8217_v12 = vcombine.low %v3434_v2, %v3439_v54  ;;  %v9309_v54 = vld [vmem:[%s11352_s3 + $0x8] sm:$0xff]  }
 0x334   :  { %2960 = vrot.lane.b32.xlu1 %v9235_v9, %s8611_s10  ;;  %v11465_v37 = vsel %vm9260_vm10, 4294967295, %v11464_v37 }
 0x335   :  { %11466 = vst [vmem:[#allocation14_spill] sm:$0xff] %v11465_v37  ;;  %v3744_v37 = vsel %vm9281_vm15, %v9267_v28, 0 }
 0x336   :  { %v8233_v1 = vcombine.low %v3744_v37, %v3749_v7 }
 0x337   :  { %v9250_v60 = vpop.permute.xlu1 %4565  ;;  %3495 = vrot.lane.b32.xlu0 %v8214_v52, %s8614_s12  ;;  %v11467_v52 = vmov 0 }
 0x338   :  { %3493 = vrot.lane.b32.xlu1 %v8213_v36, %s8614_s12  ;;  %v11468_v52 = vsel %vm9281_vm15, 4294967295, %v11467_v52  ;;  %v2951_v36 = vpop.permute.xlu0 %2950 }
 0x339   :  { %11469 = vst [vmem:[#allocation15_spill] sm:$0xff] %v11468_v52  ;;  %v2969_v2 = vsel %vm11393_vm13, %v2951_v36, %v2953_v38  ;;  %v9313_v52 = vcombine.high %v9148_v25, %v9155_v55 }
 0x33b   :  { %v9273_v27 = vpop.permute.xlu1 %4567  ;;  %2966 = vrot.lane.b32.xlu0 %v9271_v16, %s8611_s10 }
 0x33c   :  { %3803 = vrot.lane.b32.xlu1 %v8229_v47, %s8615_s13 }
 0x33f   :  { %v9292_v10 = vpop.permute.xlu1 %2954  ;;  %2962 = vrot.lane.b32.xlu0 %v9290_v20, %s8611_s10 }
 0x340   :  { %3501 = vrot.lane.b32.xlu1 %v8217_v12, %s8614_s12  ;;  %v2970_v47 = vsel %vm11393_vm13, %v2953_v38, %v9292_v10  ;;  %v8230_v38 = vcombine.high %v3742_v4, %v3747_v43  ;;  %v11470_v12 = vmov 0   ;;  %v11471_v4 = vrot.slane %v9150_v44, 4 }
 0x341   :  { %3003 = vmatprep.subr.bf16.mxu0 %v2970_v47  ;;  %v11474_v44 = vpack.c.bf16 %v8952_v0, %v8946_v61  ;;  %v2510_v0 = vpop.f32.mrf.mxu1 }
 0x342   :  { %3004 = vmatpush1.bf16.msra.mxu0 %v2969_v2  ;;  %v3423_v7 = vsel %vm2670_vm11, %v11471_v4, %v3416_v21 }
 0x343   :  { %3811 = vrot.lane.b32.xlu0 %v8233_v1, %s8615_s13  ;;  %v9338_v43 = vsel %vm3417_vm3, %v3423_v7, %v9165_v15  ;;  %v11473_v1 = vpack.c.bf16 %v8985_v40, %v8983_v34  ;;  %v2199_v15 = vadd.f32 %v8935_v45, %v8933_v46  ;;  %v11475_v34 = vrot.slane %v9191_v31, 4  ;;  %v2457_v45 = vpop.f32.mrf.mxu0  ;;  %v2512_v31 = vpop.f32.mrf.mxu1 }
 0x344   :  { %2964 = vrot.lane.b32.xlu1 %v9313_v52, %s8611_s10  ;;  %vm11384_vm12 = vcmp.ne.s16.totalorder %v9338_v43, 0  ;;  %v2411_v46 = vadd.f32 %v9009_v57, %v9007_v56  ;;  %v2511_v4 = vadd.f32 %v2510_v0, %v2457_v45 }
 0x345   :  { %8189 = vmatmul.mubr.msk.bf16.vlgmr.msra.gmra.mxu0 %vm11400_vm14, %v9309_v54  ;;  %v3733_v40 = vsel %vm2670_vm11, %v11475_v34, %v3726_v29  ;;  %v8435_v61 = vpack.c.bf16 %v2199_v15, %v8931_v39  ;;  %v2514_v2 = vpop.f32.mrf.mxu1 }
 0x346   :  { %3107 = vmatprep.mubr.bf16.mxu0 %v11470_v12  ;;  %v8437_v29 = vpack.c.bf16 %v2411_v46, %v8990_v24 }
 0x347   :  { %5102 = vrot.lane.b32.xlu0 %v9057_v41, %s8616_s16  ;;  %v3438_v41 = vsel %vm11384_vm12, %v9155_v55, 0 }
 0x348   :  { %3805 = vrot.lane.b32.xlu1 %v8230_v38, %s8615_s13 }
 0x34b   :  { %4031 = vrot.lane.b32.xlu0 %v9088_v63, %s8617_s17 }
 0x34c   :  { %5100 = vrot.lane.b32.xlu1 %v8956_v3, %s8616_s16  ;;  %v11472_v3 = vpack.c.bf16 %v8925_v35, %v8920_v32  ;;  %v2305_v32 = vadd.f32 %v8973_v14, %v8971_v13  ;;  %v9375_v13 = vsel %vm3727_vm6, %v3733_v40, %v9187_v30  ;;  %v4263_v14 = vrot.slane %v9207_v17, 4  ;;  %v2459_v30 = vpop.f32.mrf.mxu0 }
 0x34d   :  { %vm11383_vm3 = vcmp.ne.s16.totalorder %v9375_v13, 0  ;;  %vm4267_vm6 = vcmask 277504   ;;  %v2513_v36 = vadd.f32 %v2512_v31, %v2459_v30  ;;  %v4569_v40 = vrot.slane %v9237_v19, 4 }
 0x34e   :  { %v8436_v21 = vpack.c.bf16 %v2305_v32, %v8960_v5  ;;  %v4258_v5 = vpop.permute.xlu0 %4257  ;;  %v3743_v56 = vsel %vm11383_vm3, %v9148_v25, 0  ;;  %v3748_v57 = vsel %vm11383_vm3, %v9155_v55, 0  ;;  %v9397_v24 = vsel %vm4267_vm6, %v4263_v14, %v9207_v17  ;;  %v2461_v47 = vpop.f32.mrf.mxu0 }
 0x34f   :  { %4035 = vrot.lane.b32.xlu0 %v9205_v6, %s8617_s17  ;;  %v4264_v39 = vrot.slane %v4258_v5, 4  ;;  %v8231_v12 = vcombine.low %v3743_v56, %v3748_v57  ;;  %vm11387_vm3 = vcmp.ne.s16.totalorder %v9397_v24, 0  ;;  %v8434_v17 = vpack.c.bf16 %v2513_v36, %v2511_v4 }
 0x350   :  { %5104 = vrot.lane.b32.xlu1 %v9044_v33, %s8616_s16  ;;  %v3433_v33 = vsel %vm11384_vm12, %v9148_v25, 0  ;;  %v4571_v30 = vrot.slane %v9250_v60, 4  ;;  %v9465_v4 = vsel %vm11394_vm4, %v4569_v40, %v9237_v19 }
 0x351   :  { %v8216_v35 = vcombine.high %v3433_v33, %v3438_v41  ;;  %v4269_v38 = vsel %vm2670_vm11, %v4263_v14, %v4264_v39 }
 0x352   :  { %v9399_v37 = vpop.permute.xlu0 %4261  ;;  %v9407_v7 = vsel %vm4267_vm6, %v4269_v38, %v4258_v5 }
 0x353   :  { %4029 = vrot.lane.b32.xlu0 %v9102_v8, %s8617_s17  ;;  %vm11388_vm12 = vcmp.ne.s16.totalorder %v9407_v7, 0  ;;  %v4266_v0 = vrot.slane %v9399_v37, 4 }
 0x354   :  { %4033 = vrot.lane.b32.xlu1 %v9129_v18, %s8617_s17  ;;  %v4281_v46 = vsel %vm11388_vm12, %v9002_v51, 0  ;;  %v4286_v45 = vsel %vm11388_vm12, %v9016_v62, 0 }
 0x355   :  { %v8251_v31 = vcombine.high %v4281_v46, %v4286_v45  ;;  %vm9437_vm5 = vcmp.ne.s16.totalorder %v4266_v0, 0  ;;  %v8250_v36 = vcombine.low %v4281_v46, %v4286_v45  ;;  %v4572_v45 = vrot.slane %v9273_v27, 4 }
 0x356   :  { %v4564_v32 = vpop.permute.xlu0 %4563 }
 0x357   :  { %2636 = vrot.lane.b32.xlu0 %v11472_v3, %s8609_s2  ;;  %v2463_v3 = vpop.f32.mrf.mxu0  ;;  %v4570_v34 = vrot.slane %v4564_v32, 4 }
 0x358   :  { %4037 = vrot.lane.b32.xlu1 %v9221_v23, %s8617_s17 }
 0x35a   :  { %v9507_v46 = vpop.permute.xlu0 %3487 }
 0x35b   :  { %2640 = vrot.lane.b32.xlu0 %v11473_v1, %s8609_s2  ;;  %v8232_v1 = vcombine.high %v3743_v56, %v3748_v57 }
 0x35c   :  { %5106 = vrot.lane.b32.xlu1 %v9070_v49, %s8616_s16  ;;  %v8215_v49 = vcombine.low %v3433_v33, %v3438_v41  ;;  %v2516_v33 = vpop.f32.mrf.mxu1  ;;  %v4265_v41 = vrot.slane %v9223_v11, 4 }
 0x35d   :  { %v2517_v15 = vadd.f32 %v2516_v33, %v2463_v3 }
 0x35e   :  { %v4273_v3 = vsel %vm2670_vm11, %v4265_v41, %v4266_v0 }
 0x35f   :  { %3499 = vrot.lane.b32.xlu0 %v8216_v35, %s8614_s12  ;;  %v4280_v35 = vsel %vm11387_vm3, %v9081_v59, 0  ;;  %v9484_v19 = vsel %vm4267_vm6, %v4273_v3, %v9399_v37 }
 0x360   :  { %2638 = vrot.lane.b32.xlu1 %v11474_v44, %s8609_s2  ;;  %v4285_v44 = vsel %vm11387_vm3, %v9072_v50, 0 }
 0x361   :  { %v8248_v57 = vcombine.low %v4280_v35, %v4285_v44 }
 0x363   :  { %2646 = vrot.lane.b32.xlu0 %v8436_v21, %s8609_s2  ;;  %v4271_v21 = vsel %vm2670_vm11, %v4264_v39, %v4265_v41 }
 0x364   :  { %3497 = vrot.lane.b32.xlu1 %v8215_v49, %s8614_s12  ;;  %v8249_v49 = vcombine.high %v4280_v35, %v4285_v44  ;;  %v9433_v14 = vsel %vm4267_vm6, %v4271_v21, %v9223_v11  ;;  %v4577_v11 = vsel %vm2670_vm11, %v4570_v34, %v4571_v30  ;;  %vm11391_vm6 = vcmp.ne.s16.totalorder %v9484_v19, 0 }
 0x365   :  { %vm11389_vm3 = vcmp.ne.s16.totalorder %v9433_v14, 0 }
 0x366   :  { %v4282_v38 = vsel %vm11389_vm3, %v9137_v22, 0 }
 0x367   :  { %4039 = vrot.lane.b32.xlu0 %v9235_v9, %s8617_s17 }
 0x368   :  { %2644 = vrot.lane.b32.xlu1 %v8435_v61, %s8609_s2  ;;  %v2515_v61 = vadd.f32 %v2514_v2, %v2461_v47  ;;  %v4284_v47 = vsel %vm9437_vm5, %v9267_v28, 0  ;;  %v4289_v2 = vsel %vm9437_vm5, %v9252_v48, 0 }
 0x369   :  { %v8256_v33 = vcombine.low %v4284_v47, %v4289_v2 }
 0x36a   :  { %v8438_v5 = vpack.c.bf16 %v2517_v15, %v2515_v61  ;;  %v4288_v61 = vsel %vm11391_vm6, %v9155_v55, 0 }
 0x36b   :  { %4043 = vrot.lane.b32.xlu0 %v9313_v52, %s8617_s17 }
 0x36c   :  { %2648 = vrot.lane.b32.xlu1 %v8437_v29, %s8609_s2  ;;  %v4575_v29 = vsel %vm2670_vm11, %v4569_v40, %v4570_v34 }
 0x36d   :  { %v9445_v56 = vsel %vm11394_vm4, %v4575_v29, %v4564_v32  ;;  %v9514_v29 = vpop.permute.xlu0 %3485 }
 0x36e   :  { %vm11396_vm12 = vcmp.ne.s16.totalorder %v9445_v56, 0 }
 0x36f   :  { %3807 = vrot.lane.b32.xlu0 %v8231_v12, %s8615_s13  ;;  %v4287_v12 = vsel %vm11389_vm3, %v9143_v26, 0  ;;  %v4587_v32 = vsel %vm11396_vm12, %v9002_v51, 0  ;;  %v4592_v35 = vsel %vm11396_vm12, %v9016_v62, 0  ;;  %vm11397_vm3 = vcmp.ne.s16.totalorder %v9465_v4, 0 }
 0x370   :  { %4041 = vrot.lane.b32.xlu1 %v9290_v20, %s8617_s17  ;;  %v8253_v41 = vcombine.high %v4282_v38, %v4287_v12  ;;  %v4586_v21 = vsel %vm11397_vm3, %v9081_v59, 0  ;;  %v4591_v34 = vsel %vm11397_vm3, %v9072_v50, 0 }
 0x371   :  { %v8265_v40 = vcombine.high %v4586_v21, %v4591_v34 }
 0x373   :  { %2642 = vrot.lane.b32.xlu0 %v8434_v17, %s8609_s2  ;;  %v9469_v17 = vsel %vm11394_vm4, %v4577_v11, %v9250_v60  ;;  %v8266_v60 = vcombine.low %v4587_v32, %v4592_v35 }
 0x374   :  { %3809 = vrot.lane.b32.xlu1 %v8232_v1, %s8615_s13  ;;  %v8252_v1 = vcombine.low %v4282_v38, %v4287_v12  ;;  %vm11392_vm8 = vcmp.ne.s16.totalorder %v9469_v17, 0  ;;  %v8264_v38 = vcombine.low %v4586_v21, %v4591_v34 }
 0x375   :  { %v4588_v44 = vsel %vm11392_vm8, %v9137_v22, 0  ;;  %v4593_v15 = vsel %vm11392_vm8, %v9143_v26, 0 }
 0x376   :  { %v8268_v37 = vcombine.low %v4588_v44, %v4593_v15  ;;  %v8269_v11 = vcombine.high %v4588_v44, %v4593_v15 }
 0x377   :  { %4337 = vrot.lane.b32.xlu0 %v8249_v49, %s8618_s18  ;;  %v4283_v49 = vsel %vm11391_vm6, %v9148_v25, 0  ;;  %vm9517_vm6 = vcmp.ne.s16.totalorder %v4572_v45, 0 }
 0x378   :  { %4045 = vrot.lane.b32.xlu1 %v9271_v16, %s8617_s17  ;;  %v8254_v0 = vcombine.low %v4283_v49, %v4288_v61  ;;  %v4595_v12 = vsel %vm9517_vm6, %v9252_v48, 0 }
 0x37b   :  { %4341 = vrot.lane.b32.xlu0 %v8251_v31, %s8618_s18  ;;  %v4579_v31 = vsel %vm2670_vm11, %v4571_v30, %v4572_v45  ;;  %v4590_v30 = vsel %vm9517_vm6, %v9267_v28, 0 }
 0x37c   :  { %2650 = vrot.lane.b32.xlu1 %v8438_v5, %s8609_s2  ;;  %v8267_v5 = vcombine.high %v4587_v32, %v4592_v35  ;;  %v9525_v47 = vsel %vm11394_vm4, %v4579_v31, %v9273_v27  ;;  %vm11402_vm4 = vcmask 1031168  }
 0x37d   :  { %vm11395_vm8 = vcmp.ne.s16.totalorder %v9525_v47, 0 }
 0x37e   :  { %v4594_v32 = vsel %vm11395_vm8, %v9155_v55, 0 }
 0x37f   :  { %4335 = vrot.lane.b32.xlu0 %v8248_v57, %s8618_s18  ;;  %v8255_v57 = vcombine.high %v4283_v49, %v4288_v61 }
 0x380   :  { %4339 = vrot.lane.b32.xlu1 %v8250_v36, %s8618_s18 }
 0x383   :  { %4351 = vrot.lane.b32.xlu0 %v8256_v33, %s8618_s18  ;;  %v8272_v33 = vcombine.low %v4590_v30, %v4595_v12  ;;  %v2895_v12 = vsel %vm9059_vm7, %v9137_v22, 0 }
 0x384   :  { %4343 = vrot.lane.b32.xlu1 %v8252_v1, %s8618_s18  ;;  %v4589_v1 = vsel %vm11395_vm8, %v9148_v25, 0 }
 0x385   :  { %v8270_v21 = vcombine.low %v4589_v1, %v4594_v32 }
 0x387   :  { %4645 = vrot.lane.b32.xlu0 %v8266_v60, %s8613_s22  ;;  %v8271_v60 = vcombine.high %v4589_v1, %v4594_v32 }
 0x388   :  { %4345 = vrot.lane.b32.xlu1 %v8253_v41, %s8618_s18 }
 0x38b   :  { %4649 = vrot.lane.b32.xlu0 %v8268_v37, %s8613_s22 }
 0x38c   :  { %4643 = vrot.lane.b32.xlu1 %v8265_v40, %s8613_s22 }
 0x38f   :  { %4347 = vrot.lane.b32.xlu0 %v8254_v0, %s8618_s18 }
 0x390   :  { %4647 = vrot.lane.b32.xlu1 %v8267_v5, %s8613_s22  ;;  %v2898_v5 = vsel %vm9077_vm0, %v9016_v62, 0 }
 0x393   :  { %4651 = vrot.lane.b32.xlu0 %v8269_v11, %s8613_s22 }
 0x394   :  { %4349 = vrot.lane.b32.xlu1 %v8255_v57, %s8618_s18 }
 0x395   :  { %v9527_v2 = vpop.permute.xlu0 %3797 }
 0x396   :  { %v9539_v27 = vpop.permute.xlu1 %3489 }
 0x397   :  { %4876 = vrot.lane.b32.xlu0 %v9088_v63, %s8619_s19 }
 0x398   :  { %4641 = vrot.lane.b32.xlu1 %v8264_v38, %s8613_s22 }
 0x399   :  { %v9541_v3 = vpop.permute.xlu0 %3795 }
 0x39b   :  { %4880 = vrot.lane.b32.xlu0 %v9205_v6, %s8619_s19 }
 0x39c   :  { %4657 = vrot.lane.b32.xlu1 %v8272_v33, %s8613_s22  ;;  %v2894_v33 = vsel %vm9077_vm0, %v9002_v51, 0 }
 0x39d   :  { %v2957_v63 = vpop.permute.xlu0 %2956  ;;  %v8197_v32 = vcombine.high %v2894_v33, %v2898_v5 }
 0x39e   :  { %v9552_v35 = vpop.permute.xlu1 %3799  ;;  %v2971_v6 = vsel %vm11393_vm13, %v9292_v10, %v2957_v63 }
 0x39f   :  { %4655 = vrot.lane.b32.xlu0 %v8271_v60, %s8613_s22  ;;  %v2900_v60 = vsel %vm9090_vm1, %v9155_v55, 0 }
 0x3a0   :  { %4878 = vrot.lane.b32.xlu1 %v9129_v18, %s8619_s19 }
 0x3a1   :  { %v9557_v41 = vpop.permute.xlu0 %3491 }
 0x3a2   :  { %v2959_v44 = vpop.permute.xlu1 %2958 }
 0x3a3   :  { %v2972_v15 = vsel %vm11393_vm13, %v2957_v63, %v2959_v44  ;;  %4874 = vrot.lane.b32.xlu0 %v9102_v8, %s8619_s19  ;;  %v9573_v8 = vld [vmem:[#allocation2 + $0x48] sm:$0xff] }
 0x3a4   :  { %3046 = vmatprep.subr.bf16.mxu1 %v2972_v15  ;;  %4653 = vrot.lane.b32.xlu1 %v8270_v21, %s8613_s22  ;;  %v8196_v21 = vcombine.low %v2894_v33, %v2898_v5  ;;  %v3505_v5 = vsel %vm11402_vm4, %v9507_v46, %v9539_v27 }
 0x3a5   :  { %3047 = vmatpush1.bf16.msra.mxu1 %v2971_v6  ;;  %v9565_v34 = vpop.permute.xlu0 %3801  ;;  %v2896_v6 = vsel %vm9090_vm1, %v9148_v25, 0 }
 0x3a6   :  { %v2961_v37 = vpop.permute.xlu1 %2960 }
 0x3a7   :  { %4886 = vrot.lane.b32.xlu0 %v9290_v20, %s8619_s19 }
 0x3a8   :  { %8190 = vmatmul.mubr.msk.bf16.vlgmr.msra.gmra.mxu1 %vm11400_vm14, %v9309_v54  ;;  %4882 = vrot.lane.b32.xlu1 %v9221_v23, %s8619_s19  ;;  %v2897_v23 = vsel %vm8916_vm2, %v9072_v50, 0 }
 0x3a9   :  { %3150 = vmatprep.mubr.bf16.mxu1 %v9573_v8  ;;  %v9576_v10 = vpop.permute.xlu0 %3495 }
 0x3aa   :  { %v9578_v18 = vpop.permute.xlu1 %3493 }
 0x3ab   :  { %4890 = vrot.lane.b32.xlu0 %v9271_v16, %s8619_s19  ;;  %v2893_v16 = vsel %vm8916_vm2, %v9081_v59, 0 }
 0x3ac   :  { %4884 = vrot.lane.b32.xlu1 %v9235_v9, %s8619_s19  ;;  %v2973_v9 = vsel %vm11393_vm13, %v2959_v44, %v2961_v37  ;;  %v8195_v0 = vcombine.high %v2893_v16, %v2897_v23  ;;  %v8194_v11 = vcombine.low %v2893_v16, %v2897_v23 }
 0x3ad   :  { %v2967_v20 = vpop.permute.xlu0 %2966 }
 0x3ae   :  { %v9584_v40 = vpop.permute.xlu1 %3803 }
 0x3b0   :  { %4888 = vrot.lane.b32.xlu1 %v9313_v52, %s8619_s19  ;;  %v2899_v52 = vsel %vm9059_vm7, %v9143_v26, 0 }
 0x3b1   :  { %v2963_v49 = vpop.permute.xlu0 %2962  ;;  %v8199_v1 = vcombine.high %v2895_v12, %v2899_v52  ;;  %v8198_v16 = vcombine.low %v2895_v12, %v2899_v52 }
 0x3b2   :  { %v9591_v61 = vpop.permute.xlu1 %3501  ;;  %v2974_v45 = vsel %vm11393_vm13, %v2961_v37, %v2963_v49  ;;  %v8201_v37 = vcombine.high %v2896_v6, %v2900_v60 }
 0x3b3   :  { %3089 = vmatprep.subr.bf16.mxu0 %v2974_v45 }
 0x3b4   :  { %3090 = vmatpush1.bf16.msra.mxu0 %v2973_v9 }
 0x3b5   :  { %v9604_v31 = vpop.permute.xlu0 %3811  ;;  %3223 = vmatprep.subr.bf16.mxu0 %v8195_v0 }
 0x3b6   :  { %v2965_v57 = vpop.permute.xlu1 %2964 }
 0x3b7   :  { %v2976_v38 = vsel %vm11393_vm13, %v2965_v57, %v2967_v20  ;;  %v2975_v30 = vsel %vm11393_vm13, %v2963_v49, %v2965_v57  ;;  %8191 = vmatmul.mubr.msk.bf16.vlgmr.msra.gmra.mxu0 %vm11400_vm14, %v9309_v54  ;;  %v8563_v20 = vld [vmem:[%s11352_s3] sm:$0xff]   ;;  %vm5112_vm13 = vcmask 539648  }
 0x3b8   :  { %3132 = vmatprep.subr.bf16.mxu1 %v2976_v38  ;;  %3224 = vmatpush1.bf16.msra.mxu0 %v8194_v11  ;;  %v8200_v11 = vcombine.low %v2896_v6, %v2900_v60 }
 0x3b9   :  { %3133 = vmatpush1.bf16.msra.mxu1 %v2975_v30  ;;  %v5103_v44 = vpop.permute.xlu0 %5102  ;;  %3309 = vmatprep.subr.bf16.mxu0 %v8199_v1 }
 0x3ba   :  { %3266 = vmatprep.subr.bf16.mxu1 %v8197_v32  ;;  %v9619_v15 = vpop.permute.xlu1 %3805  ;;  %3241 = vmatprep.mubr.bf16.mxu0 %v9573_v8  ;;  %v5109_v23 = vrot.slane %v5103_v44, 4 }
 0x3bc   :  { %8192 = vmatmul.mubr.msk.bf16.vlgmr.msra.gmra.mxu1 %vm11400_vm14, %v9309_v54 }
 0x3bd   :  { %3267 = vmatpush1.bf16.msra.mxu1 %v8196_v21  ;;  %3284 = vmatprep.mubr.bf16.mxu1 %v9573_v8  ;;  %v9631_v49 = vpop.permute.xlu0 %4031 }
 0x3be   :  { %3352 = vmatprep.subr.bf16.mxu1 %v8201_v37  ;;  %v5101_v45 = vpop.permute.xlu1 %5100 }
 0x3bf   :  { %v5108_v9 = vrot.slane %v5101_v45, 4  ;;  %8202 = vmatmul.mubr.msk.bf16.vlgmr.msra.gmra.mxu0 %vm11400_vm14, %v8563_v20 }
 0x3c0   :  { %3310 = vmatpush1.bf16.msra.mxu0 %v8198_v16  ;;  %3327 = vmatprep.mubr.bf16.mxu0 %v9573_v8 }
 0x3c1   :  { %v9635_v54 = vsel %vm5112_vm13, %v5108_v9, %v5101_v45  ;;  %v5114_v0 = vsel %vm2670_vm11, %v5108_v9, %v5109_v23  ;;  %3537 = vmatprep.subr.bf16.mxu0 %v3505_v5  ;;  %v9646_v52 = vpop.permute.xlu0 %4035 }
 0x3c2   :  { %v9643_v57 = vsel %vm5112_vm13, %v5114_v0, %v5103_v44  ;;  %vm11403_vm8 = vcmp.ne.s16.totalorder %v9635_v54, 0  ;;  %v5105_v38 = vpop.permute.xlu1 %5104 }
 0x3c3   :  { %vm11399_vm12 = vcmp.ne.s16.totalorder %v9643_v57, 0  ;;  %v5125_v30 = vsel %vm11403_vm8, %v9081_v59, 0  ;;  %v5130_v12 = vsel %vm11403_vm8, %v9072_v50, 0  ;;  %v5110_v33 = vrot.slane %v5105_v38, 4 }
 0x3c4   :  { %8203 = vmatmul.mubr.msk.bf16.vlgmr.msra.gmra.mxu1 %vm11400_vm14, %v8563_v20  ;;  %v8288_v1 = vcombine.high %v5125_v30, %v5130_v12  ;;  %v5126_v32 = vsel %vm11399_vm12, %v9002_v51, 0  ;;  %v5131_v60 = vsel %vm11399_vm12, %v9016_v62, 0  ;;  %v3507_v59 = vsel %vm11402_vm4, %v9557_v41, %v9578_v18 }
 0x3c5   :  { %v5116_v44 = vsel %vm2670_vm11, %v5109_v23, %v5110_v33  ;;  %3353 = vmatpush1.bf16.msra.mxu1 %v8200_v11  ;;  %v8289_v50 = vcombine.low %v5126_v32, %v5131_v60  ;;  %3370 = vmatprep.mubr.bf16.mxu1 %v9573_v8  ;;  %v9670_v6 = vpop.permute.xlu0 %4029  ;;  %v3504_v62 = vsel %vm11402_vm4, %v9514_v29, %v9507_v46  ;;  %v8564_v29 = vld [vmem:[%s11352_s3 + $0x10] sm:$0xff]  }
 0x3c6   :  { %v9668_v21 = vsel %vm5112_vm13, %v5116_v44, %v5105_v38  ;;  %3580 = vmatprep.subr.bf16.mxu1 %v3507_v59  ;;  %v9672_v51 = vpop.permute.xlu1 %4033  ;;  %5182 = vrot.lane.b32.xlu1 %v8288_v1, %s8620_s23  ;;  %v8290_v45 = vcombine.high %v5126_v32, %v5131_v60 }
 0x3c7   :  { %vm11398_vm3 = vcmp.ne.s16.totalorder %v9668_v21, 0  ;;  %5184 = vrot.lane.b32.xlu0 %v8289_v50, %s8620_s23  ;;  %8204 = vmatmul.mubr.msk.bf16.vlgmr.msra.gmra.mxu0 %vm11400_vm14, %v8563_v20 }
 0x3c8   :  { %v5127_v37 = vsel %vm11398_vm3, %v9137_v22, 0  ;;  %v5132_v23 = vsel %vm11398_vm3, %v9143_v26, 0  ;;  %3538 = vmatpush1.bf16.msra.mxu0 %v3504_v62  ;;  %3555 = vmatprep.mubr.bf16.mxu0 %v9573_v8  ;;  %v3506_v22 = vsel %vm11402_vm4, %v9539_v27, %v9557_v41  ;;  %v8287_v26 = vcombine.low %v5125_v30, %v5130_v12 }
 0x3c9   :  { %v8291_v16 = vcombine.low %v5127_v37, %v5132_v23  ;;  %v2637_v9 = vpop.permute.xlu0 %2636  ;;  %vm11481_vm3 = vcmask 269312   ;;  %v8292_v11 = vcombine.high %v5127_v37, %v5132_v23 }
 0x3ca   :  { %v9688_v0 = vpop.permute.xlu1 %4037  ;;  %5186 = vrot.lane.b32.xlu1 %v8290_v45, %s8620_s23  ;;  %v2660_v46 = vrot.slane %v2637_v9, 4 }
 0x3cb   :  { %5188 = vrot.lane.b32.xlu0 %v8291_v16, %s8620_s23 }
 0x3cc   :  { %8205 = vmatmul.mubr.msk.bf16.vlgmr.msra.gmra.mxu1 %vm11400_vm14, %v8563_v20  ;;  %v2684_v5 = vsel %vm11481_vm3, %v2660_v46, %v2637_v9 }
 0x3cd   :  { %3581 = vmatpush1.bf16.msra.mxu1 %v3506_v22  ;;  %3598 = vmatprep.mubr.bf16.mxu1 %v9573_v8  ;;  %2732 = vst.msk [vmem:[#allocation2 + $0x48] sm:$0xff] %vm8964_vm9, %v2684_v5  ;;  %v9703_v1 = vpop.permute.xlu0 %2640 }
 0x3ce   :  { %v5107_v20 = vpop.permute.xlu1 %5106  ;;  %5180 = vrot.lane.b32.xlu1 %v8287_v26, %s8620_s23  ;;  %v2662_v12 = vrot.slane %v9703_v1, 4  ;;  %v3508_v26 = vsel %vm11402_vm4, %v9578_v18, %v9576_v10 }
 0x3cf   :  { %v5111_v27 = vrot.slane %v5107_v20, 4  ;;  %5190 = vrot.lane.b32.xlu0 %v8292_v11, %s8620_s23  ;;  %8218 = vmatmul.mubr.msk.bf16.vlgmr.msra.gmra.mxu0 %vm11400_vm14, %v8564_v29 }
 0x3d0   :  { %3641 = vmatprep.mubr.bf16.mxu0 %v9573_v8 }
 0x3d1   :  { %v5118_v41 = vsel %vm2670_vm11, %v5110_v33, %v5111_v27  ;;  %vm9709_vm3 = vcmp.ne.s16.totalorder %v5111_v27, 0  ;;  %v3500_v60 = vpop.permute.xlu0 %3499 }
 0x3d2   :  { %v9716_v32 = vsel %vm5112_vm13, %v5118_v41, %v5107_v20  ;;  %v2639_v44 = vpop.permute.xlu1 %2638  ;;  %v5129_v59 = vsel %vm9709_vm3, %v9267_v28, 0  ;;  %v5134_v33 = vsel %vm9709_vm3, %v9252_v48, 0  ;;  %v3511_v62 = vsel %vm11402_vm4, %v3500_v60, %v9591_v61 }
 0x3d3   :  { %vm11401_vm12 = vcmp.ne.s16.totalorder %v9716_v32, 0  ;;  %v2661_v50 = vrot.slane %v2639_v44, 4  ;;  %v8295_v37 = vcombine.low %v5129_v59, %v5134_v33  ;;  %3666 = vmatprep.subr.bf16.mxu1 %v3511_v62  ;;  %vm11485_vm13 = vcmask 269312  }
 0x3d4   :  { %8219 = vmatmul.mubr.msk.bf16.vlgmr.msra.gmra.mxu1 %vm11400_vm14, %v8564_v29  ;;  %v9731_v23 = vsel %vm11401_vm12, %v9148_v25, 0  ;;  %v9736_v28 = vsel %vm11401_vm12, %v9155_v55, 0  ;;  %vm11486_vm14 = vmmov %vm11485_vm13  ;;  %vm3813_vm12 = vcmask 785408   ;;  %v9754_v22 = vld [vmem:[#allocation2 + $0x48] sm:$0xff] }
 0x3d5   :  { %v2685_v48 = vsel %vm2670_vm11, %v2660_v46, %v2661_v50  ;;  %v2687_v61 = vsel %vm2670_vm11, %v2661_v50, %v2662_v12  ;;  %5196 = vrot.lane.b32.xlu1 %v8295_v37, %s8620_s23  ;;  %3684 = vmatprep.mubr.bf16.mxu1 %v9573_v8  ;;  %v2647_v16 = vpop.permute.xlu0 %2646  ;;  %v3817_v5 = vsel %vm3813_vm12, %v9565_v34, %v9584_v40 }
 0x3d6   :  { %v9745_v45 = vsel %vm11485_vm13, %v2685_v48, %v2639_v44  ;;  %v9749_v25 = vsel %vm11486_vm14, %v2687_v61, %v9703_v1  ;;  %v3498_v55 = vpop.permute.xlu1 %3497  ;;  %v8293_v11 = vcombine.low %v9731_v23, %v9736_v28  ;;  %v3815_v20 = vsel %vm3813_vm12, %v9527_v2, %v9552_v35 }
 0x3d7   :  { %v3509_v9 = vsel %vm11402_vm4, %v9576_v10, %v3498_v55  ;;  %v3510_v46 = vsel %vm11402_vm4, %v3498_v55, %v3500_v60  ;;  %v9773_v10 = vsel %vm11403_vm8, %v9754_v22, 0  ;;  %vm11488_vm14 = vcmp.ne.s16.totalorder %v9643_v57, 0 }
 0x3d8   :  { %3623 = vmatprep.subr.bf16.mxu0 %v3509_v9  ;;  %3667 = vmatpush1.bf16.msra.mxu1 %v3510_v46  ;;  %11487 = vst [vmem:[#allocation7_spill] sm:$0xff] %v9773_v10  ;;  %v9778_v18 = vsel %vm11488_vm14, %v9745_v45, 0  ;;  %v2665_v60 = vrot.slane %v2647_v16, 4  ;;  %vm11490_vm13 = vcmp.ne.s16.totalorder %v9668_v21, 0  ;;  %v3814_v33 = vsel %vm3813_vm12, %v9541_v3, %v9527_v2 }
 0x3d9   :  { %3624 = vmatpush1.bf16.msra.mxu0 %v3508_v26  ;;  %3890 = vmatprep.subr.bf16.mxu1 %v3817_v5  ;;  %v9767_v27 = vpop.permute.xlu0 %4039  ;;  %11489 = vst [vmem:[#allocation6_spill] sm:$0xff] %v9778_v18  ;;  %v9783_v59 = vsel %vm11490_vm13, %v9749_v25, 0  ;;  %vm11492_vm4 = vcmask 130048   ;;  %v3816_v50 = vsel %vm3813_vm12, %v9552_v35, %v9565_v34  ;;  %vm11494_vm14 = vcmask 269312  }
 0x3da   :  { %5192 = vrot.lane.b32.xlu1 %v8293_v11, %s8620_s23  ;;  %3847 = vmatprep.subr.bf16.mxu0 %v3815_v20  ;;  %v2645_v41 = vpop.permute.xlu1 %2644  ;;  %11491 = vst [vmem:[#allocation16_spill] sm:$0xff] %v9783_v59  ;;  %vm11493_vm8 = vmmov %vm11492_vm4 }
 0x3db   :  { %v2664_v44 = vrot.slane %v2645_v41, 4  ;;  %vm11495_vm13 = vmmov %vm11494_vm14 }
 0x3dc   :  { %8220 = vmatmul.mubr.msk.bf16.vlgmr.msra.gmra.mxu0 %vm11492_vm4, %v8564_v29  ;;  %8221 = vmatmul.mubr.msk.bf16.vlgmr.msra.gmra.mxu1 %vm11493_vm8, %v8564_v29  ;;  %v9814_v29 = vld [vmem:[%s11352_s3 + $0x18] sm:$0xff]   ;;  %vm11496_vm8 = vcmp.ne.s16.totalorder %v9407_v7, 0  ;;  %vm4047_vm4 = vcmask 777216  }
 0x3dd   :  { %v2691_v62 = vsel %vm11494_vm14, %v2664_v44, %v2645_v41  ;;  %v2692_v37 = vsel %vm2670_vm11, %v2664_v44, %v2665_v60  ;;  %3891 = vmatpush1.bf16.msra.mxu1 %v3816_v50  ;;  %3848 = vmatpush1.bf16.msra.mxu0 %v3814_v33  ;;  %v9800_v2 = vpop.permute.xlu0 %4043  ;;  %v9819_v38 = vsel %vm11496_vm8, %v9745_v45, 0  ;;  %vm11498_vm14 = vmmov %vm11495_vm13  ;;  %v4048_v41 = vsel %vm4047_vm4, %v9670_v6, %v9631_v49 }
 0x3de   :  { %v9796_v48 = vsel %vm11495_vm13, %v2692_v37, %v2647_v16  ;;  %2737 = vst.msk [vmem:[#allocation2 + $0x6c] sm:$0xff] %vm8964_vm9, %v2691_v62  ;;  %v9802_v3 = vpop.permute.xlu1 %2648  ;;  %3865 = vmatprep.mubr.bf16.mxu0 %v9573_v8  ;;  %3908 = vmatprep.mubr.bf16.mxu1 %v9573_v8  ;;  %vm11497_vm9 = vmmov %vm11496_vm8  ;;  %vm11499_vm13 = vcmp.ne.s16.totalorder %v9643_v57, 0  ;;  %vm11501_vm8 = vcmask 130048   ;;  %v3818_v57 = vsel %vm3813_vm12, %v9584_v40, %v9619_v15 }
 0x3df   :  { %v2666_v35 = vrot.slane %v9802_v3, 4  ;;  %v9809_v34 = vcombine.low %v9745_v45, %v9796_v48  ;;  %v9824_v61 = vsel %vm11497_vm9, %v9796_v48, 0  ;;  %v9844_v5 = vsel %vm11499_vm13, %v9796_v48, 0  ;;  %vm11502_vm9 = vmmov %vm11501_vm8 }
 0x3e0   :  { %11500 = vst [vmem:[#allocation17_spill] sm:$0xff] %v9844_v5  ;;  %v4051_v6 = vsel %vm4047_vm4, %v9646_v52, %v9688_v0  ;;  %v8294_v33 = vcombine.high %v9731_v23, %v9736_v28  ;;  %v4050_v40 = vsel %vm4047_vm4, %v9672_v51, %v9646_v52  ;;  %vm11504_vm13 = vcmp.ne.s16.totalorder %v9433_v14, 0  ;;  %v11540_v5 = vld [vmem:[#allocation10_spill] sm:$0xff] }
 0x3e1   :  { %v2694_v16 = vsel %vm2670_vm11, %v2665_v60, %v2666_v35  ;;  %5516 = vrot.lane.b32.xlu1 %v9809_v34, %s8611_s10  ;;  %v3808_v46 = vpop.permute.xlu0 %3807  ;;  %v4049_v60 = vsel %vm4047_vm4, %v9631_v49, %v9672_v51  ;;  %v9888_v23 = vsel %vm11504_vm13, %v9749_v25, 0  ;;  %v4052_v58 = vsel %vm4047_vm4, %v9688_v0, %v9767_v27 }
 0x3e2   :  { %v9835_v9 = vsel %vm11498_vm14, %v2694_v16, %v9802_v3  ;;  %v9837_v26 = vpop.permute.xlu1 %4041  ;;  %v3819_v11 = vsel %vm3813_vm12, %v9619_v15, %v3808_v46  ;;  %vm11503_vm14 = vcmp.ne.s16.totalorder %v9397_v24, 0  ;;  %v10073_v3 = vsel %vm9059_vm7, %v9749_v25, 0 }
 0x3e3   :  { %v9850_v20 = vcombine.low %v9749_v25, %v9835_v9  ;;  %3933 = vmatprep.subr.bf16.mxu0 %v3819_v11  ;;  %v9883_v62 = vsel %vm11503_vm14, %v9754_v22, 0  ;;  %v9910_v14 = vcombine.high %v9749_v25, %v9835_v9  ;;  %v4054_v0 = vsel %vm4047_vm4, %v9837_v26, %v9800_v2 }
 0x3e4   :  { %8234 = vmatmul.mubr.msk.bf16.vlgmr.msra.gmra.mxu0 %vm11501_vm8, %v9814_v29  ;;  %8235 = vmatmul.mubr.msk.bf16.vlgmr.msra.gmra.mxu1 %vm11502_vm9, %v9814_v29  ;;  %vm11505_vm8 = vmmov %vm11504_vm13  ;;  %vm11506_vm9 = vcmp.ne.s16.totalorder %v9465_v4, 0  ;;  %vm11507_vm13 = vcmp.ne.s16.totalorder %v9445_v56, 0  ;;  %v10116_v55 = vsel %vm9059_vm7, %v9835_v9, 0  ;;  %vm11538_vm7 = vcmp.ne.s16.totalorder %v9716_v32, 0 }
 0x3e5   :  { %3934 = vmatpush1.bf16.msra.mxu0 %v3818_v57  ;;  %v9865_v44 = vld [vmem:[#allocation2 + $0x6c] sm:$0xff]  ;;  %v2643_v15 = vpop.permute.xlu0 %2642  ;;  %3951 = vmatprep.mubr.bf16.mxu0 %v9573_v8  ;;  %v9893_v52 = vsel %vm11505_vm8, %v9835_v9, 0  ;;  %v9904_v16 = vsel %vm11506_vm9, %v9754_v22, 0  ;;  %vm11508_vm8 = vmmov %vm11507_vm13  ;;  %vm11509_vm9 = vcmask 265216   ;;  %11537 = vst [vmem:[#allocation25_spill] sm:$0xff] %v10116_v55 }
 0x3e6   :  { %4081 = vmatprep.subr.bf16.mxu0 %v4049_v60  ;;  %v3810_v49 = vpop.permute.xlu1 %3809  ;;  %v9877_v50 = vcombine.high %v9754_v22, %v9865_v44  ;;  %v2663_v51 = vrot.slane %v2643_v15, 4  ;;  %3994 = vmatprep.mubr.bf16.mxu1 %v9573_v8  ;;  %v9925_v11 = vsel %vm11508_vm8, %v9796_v48, 0  ;;  %vm11512_vm8 = vcmp.ne.s16.totalorder %v9465_v4, 0 }
 0x3e7   :  { %v3821_v28 = vsel %vm3813_vm12, %v3810_v49, %v9604_v31  ;;  %v3820_v37 = vsel %vm3813_vm12, %v3808_v46, %v3810_v49  ;;  %5520 = vrot.lane.b32.xlu1 %v9850_v20, %s8611_s10  ;;  %v9915_v31 = vsel %vm11503_vm14, %v9865_v44, 0  ;;  %v9920_v46 = vsel %vm11507_vm13, %v9745_v45, 0 }
 0x3e8   :  { %5514 = vrot.lane.b32.xlu0 %v9877_v50, %s8611_s10  ;;  %3976 = vmatprep.subr.bf16.mxu1 %v3821_v28  ;;  %v2689_v57 = vsel %vm2670_vm11, %v2662_v12, %v2663_v51  ;;  %2736 = vst.msk [vmem:[#allocation2 + $0x68] sm:$0xf] %vm11509_vm9, %v2663_v51  ;;  %vm11510_vm14 = vcmp.ne.s16.totalorder %v9469_v17, 0  ;;  %vm11511_vm13 = vcmask 269312   ;;  %v9982_v17 = vsel %vm8916_vm2, %v9754_v22, 0 }
 0x3e9   :  { %3977 = vmatpush1.bf16.msra.mxu1 %v3820_v37  ;;  %v9938_v49 = vsel %vm11510_vm14, %v9835_v9, 0  ;;  %v9941_v56 = vsel %vm11511_vm13, %v2689_v57, %v2643_v15  ;;  %v9943_v1 = vpop.permute.xlu0 %4337  ;;  %v9952_v37 = vsel %vm11512_vm8, %v9865_v44, 0  ;;  %v4053_v15 = vsel %vm4047_vm4, %v9767_v27, %v9837_v26  ;;  %vm11513_vm9 = vmmov %vm11510_vm14  ;;  %11515 = vst [vmem:[#allocation18_spill] sm:$0xff] %v9982_v17 }
 0x3ea   :  { %4124 = vmatprep.subr.bf16.mxu1 %v4051_v6  ;;  %v4046_v12 = vpop.permute.xlu1 %4045  ;;  %v9959_v57 = vcombine.high %v9745_v45, %v9796_v48  ;;  %v9968_v4 = vsel %vm11513_vm9, %v9749_v25, 0  ;;  %vm11514_vm14 = vcmask 130048   ;;  %vm11517_vm8 = vcmp.ne.s16.totalorder %v9635_v54, 0 }
 0x3eb   :  { %5522 = vrot.lane.b32.xlu1 %v9910_v14, %s8611_s10  ;;  %vm11516_vm13 = vmmov %vm11514_vm14  ;;  %v9995_v7 = vsel %vm11517_vm8, %v9865_v44, 0  ;;  %v10008_v54 = vsel %vm8916_vm2, %v9865_v44, 0  ;;  %vm11520_vm9 = vcmp.ne.s16.totalorder %v9668_v21, 0  ;;  %vm4353_vm2 = vcmask 769024  }
 0x3ec   :  { %8236 = vmatmul.mubr.msk.bf16.vlgmr.msra.gmra.mxu0 %vm11514_vm14, %v9814_v29  ;;  %5194 = vrot.lane.b32.xlu0 %v8294_v33, %s8620_s23  ;;  %v4055_v33 = vsel %vm4047_vm4, %v9800_v2, %v4046_v12  ;;  %11518 = vst [vmem:[#allocation19_spill] sm:$0xff] %v9995_v7  ;;  %11519 = vst [vmem:[#allocation20_spill] sm:$0xff] %v10008_v54  ;;  %v10018_v12 = vsel %vm11520_vm9, %v9835_v9, 0  ;;  %v10035_v21 = vsel %vm9077_vm0, %v9796_v48, 0  ;;  %vm11523_vm14 = vcmask 265216  }
 0x3ed   :  { %4082 = vmatpush1.bf16.msra.mxu0 %v4048_v41  ;;  %8237 = vmatmul.mubr.msk.bf16.vlgmr.msra.gmra.mxu1 %vm11516_vm13, %v9814_v29  ;;  %v9997_v6 = vpop.permute.xlu0 %4341  ;;  %11521 = vst [vmem:[#allocation21_spill] sm:$0xff] %v10018_v12  ;;  %11522 = vst [vmem:[#allocation22_spill] sm:$0xff] %v10035_v21  ;;  %v10044_v28 = vsel %vm9077_vm0, %v9745_v45, 0  ;;  %vm11525_vm13 = vcmask 269312   ;;  %v10053_v60 = vcombine.low %v9754_v22, %v9865_v44  ;;  %vm11529_vm0 = vcmask 130048  }
 0x3ee   :  { %4125 = vmatpush1.bf16.msra.mxu1 %v4050_v40  ;;  %4167 = vmatprep.subr.bf16.mxu0 %v4053_v15  ;;  %v2651_v41 = vpop.permute.xlu1 %2650  ;;  %11524 = vst [vmem:[#allocation23_spill] sm:$0xff] %v10044_v28  ;;  %vm11531_vm9 = vcmp.ne.s16.totalorder %v9484_v19, 0 }
 0x3ef   :  { %4210 = vmatprep.subr.bf16.mxu1 %v4055_v33  ;;  %v2667_v51 = vrot.slane %v2651_v41, 4  ;;  %4099 = vmatprep.mubr.bf16.mxu0 %v9573_v8  ;;  %v10126_v28 = vld [vmem:[#allocation2 + $0x68] sm:$0xf] }
 0x3f0   :  { %5518 = vrot.lane.b32.xlu0 %v9959_v57, %s8611_s10  ;;  %4142 = vmatprep.mubr.bf16.mxu1 %v9573_v8  ;;  %v6735_v7 = vsel %vm9437_vm5, %v10126_v28, 0  ;;  %v7525_v63 = vsel %vm9709_vm3, %v10126_v28, 0 }
 0x3f1   :  { %v2696_v15 = vsel %vm2670_vm11, %v2666_v35, %v2667_v51  ;;  %2741 = vst.msk [vmem:[#allocation2 + $0x8c] sm:$0xf] %vm11523_vm14, %v2667_v51  ;;  %v4336_v40 = vpop.permute.xlu0 %4335  ;;  %vm11532_vm14 = vmmov %vm11529_vm0 }
 0x3f2   :  { %v10047_v33 = vsel %vm11525_vm13, %v2696_v15, %v2651_v41  ;;  %v10049_v29 = vpop.permute.xlu1 %4339  ;;  %v11526_v41 = vld [vmem:[#allocation8_spill] sm:$0xff]  ;;  %vm11533_vm13 = vmmov %vm11531_vm9  ;;  %v4354_v32 = vsel %vm4353_vm2, %v4336_v40, %v9943_v1 }
 0x3f3   :  { %v4355_v51 = vsel %vm4353_vm2, %v9943_v1, %v10049_v29  ;;  %vm11527_vm11 = vcmp.ne.s16.totalorder %v11526_v41, 0  ;;  %11528 = vst [vmem:[#allocation8_spill] sm:$0xff] %v10073_v3  ;;  %v10084_v27 = vcombine.high %v9941_v56, %v10047_v33  ;;  %v10094_v24 = vsel %vm11531_vm9, %v10047_v33, 0 }
 0x3f4   :  { %v10068_v15 = vsel %vm11527_vm11, %v9754_v22, 0  ;;  %8241 = vmatmul.mubr.msk.bf16.vlgmr.msra.gmra.mxu0 %vm11529_vm0, %v10026_v53  ;;  %5512 = vrot.lane.b32.xlu0 %v10053_v60, %s8611_s10  ;;  %vm11530_vm8 = vmmov %vm11527_vm11  ;;  %v10101_v2 = vsel %vm11533_vm13, %v9941_v56, 0  ;;  %vm11534_vm11 = vcmp.ne.s16.totalorder %v9525_v47, 0  ;;  %v10124_v21 = vcombine.low %v9941_v56, %v10047_v33 }
 0x3f5   :  { %v10089_v35 = vsel %vm11530_vm8, %v9865_v44, 0  ;;  %8242 = vmatmul.mubr.msk.bf16.vlgmr.msra.gmra.mxu1 %vm11532_vm14, %v10026_v53  ;;  %4168 = vmatpush1.bf16.msra.mxu0 %v4052_v58  ;;  %v10106_v26 = vsel %vm11534_vm11, %v9941_v56, 0  ;;  %vm11535_vm0 = vmmov %vm11534_vm11  ;;  %v10118_v58 = vpop.permute.xlu0 %4351  ;;  %vm11541_vm9 = vcmp.ne.s16.totalorder %v11540_v5, 0  ;;  %v7014_v47 = vsel %vm9517_vm6, %v10126_v28, 0  ;;  %v8569_v5 = vld [vmem:[%s11352_s3 + $0x28] sm:$0xff]  }
 0x3f6   :  { %v10111_v41 = vsel %vm11535_vm0, %v10047_v33, 0  ;;  %4211 = vmatpush1.bf16.msra.mxu1 %v4054_v0  ;;  %4387 = vmatprep.subr.bf16.mxu0 %v4355_v51  ;;  %v10120_v19 = vpop.permute.xlu1 %4343  ;;  %v10135_v0 = vsel %vm11538_vm7, %v9941_v56, 0  ;;  %vm11539_vm8 = vmmov %vm11538_vm7  ;;  %v5947_v18 = vsel %vm11541_vm9, %v9796_v48, 0  ;;  %v10197_v1 = vsel %vm9090_vm1, %v9941_v56, 0 }
 0x3f7   :  { %11536 = vst [vmem:[#allocation24_spill] sm:$0xff] %v10111_v41  ;;  %v4357_v51 = vsel %vm4353_vm2, %v9997_v6, %v10120_v19  ;;  %4185 = vmatprep.mubr.bf16.mxu0 %v9573_v8  ;;  %4228 = vmatprep.mubr.bf16.mxu1 %v9573_v8  ;;  %v10149_v42 = vsel %vm11539_vm8, %v10047_v33, 0  ;;  %v10202_v40 = vsel %vm9090_vm1, %v10047_v33, 0  ;;  %vm11551_vm0 = vcmask 523264  }
 0x3f8   :  { %4430 = vmatprep.subr.bf16.mxu1 %v4357_v51  ;;  %5526 = vrot.lane.b32.xlu1 %v10084_v27, %s8611_s10  ;;  %v10153_v17 = vld [vmem:[#allocation2 + $0x8c] sm:$0xf]  ;;  %v8333_v51 = vcombine.high %v10068_v15, %v10089_v35  ;;  %vm11553_vm7 = vmmov %vm11551_vm0 }
 0x3f9   :  { %5524 = vrot.lane.b32.xlu0 %v10124_v21, %s8611_s10  ;;  %v6740_v54 = vsel %vm9437_vm5, %v10153_v17, 0  ;;  %v10179_v55 = vpop.permute.xlu0 %4645  ;;  %v10183_v12 = vcombine.low %v10126_v28, %v10153_v17  ;;  %v7019_v39 = vsel %vm9517_vm6, %v10153_v17, 0  ;;  %vm11542_vm5 = vmmov %vm11532_vm14  ;;  %v5950_v41 = vsel %vm9260_vm10, %v10153_v17, 0 }
 0x3fa   :  { %v4346_v3 = vpop.permute.xlu1 %4345  ;;  %v10185_v59 = vcombine.low %v6735_v7, %v6740_v54  ;;  %v10190_v10 = vcombine.low %v7014_v47, %v7019_v39  ;;  %vm11543_vm1 = vmmov %vm11542_vm5  ;;  %v4356_v47 = vsel %vm4353_vm2, %v10049_v29, %v9997_v6  ;;  %v7530_v39 = vsel %vm9709_vm3, %v10153_v17, 0 }
 0x3fb   :  { %vm11544_vm6 = vmmov %vm11541_vm9  ;;  %v4358_v7 = vsel %vm4353_vm2, %v10120_v19, %v4346_v3  ;;  %v5945_v19 = vsel %vm9260_vm10, %v10126_v28, 0 }
 0x3fc   :  { %8243 = vmatmul.mubr.msk.bf16.vlgmr.msra.gmra.mxu0 %vm11542_vm5, %v10026_v53  ;;  %5997 = vrot.lane.b32.xlu1 %v8333_v51, %s8614_s12  ;;  %v5942_v51 = vsel %vm11544_vm6, %v9745_v45, 0  ;;  %vm11548_vm14 = vmmov %vm11543_vm1 }
 0x3fd   :  { %8244 = vmatmul.mubr.msk.bf16.vlgmr.msra.gmra.mxu1 %vm11543_vm1, %v10026_v53  ;;  %4388 = vmatpush1.bf16.msra.mxu0 %v4354_v32  ;;  %v10227_v36 = vpop.permute.xlu0 %4649  ;;  %v8335_v53 = vcombine.high %v5942_v51, %v5947_v18  ;;  %v10231_v32 = vcombine.low %v7525_v63, %v7530_v39  ;;  %v8334_v30 = vcombine.low %v5942_v51, %v5947_v18  ;;  %vm11550_vm11 = vmmov %vm11543_vm1 }
 0x3fe   :  { %4431 = vmatpush1.bf16.msra.mxu1 %v4356_v47  ;;  %v4644_v54 = vpop.permute.xlu1 %4643  ;;  %5528 = vrot.lane.b32.xlu0 %v10183_v12, %s8611_s10  ;;  %v11546_v47 = vld [vmem:[#allocation12_spill] sm:$0xff]  ;;  %vm11558_vm9 = vmmov %vm11551_vm0 }
 0x3ff   :  { %11545 = vst [vmem:[#allocation10_spill] sm:$0xff] %v10231_v32  ;;  %4405 = vmatprep.mubr.bf16.mxu0 %v9573_v8  ;;  %4448 = vmatprep.mubr.bf16.mxu1 %v9573_v8  ;;  %vm11547_vm3 = vcmp.ne.s16.totalorder %v11546_v47, 0  ;;  %v4660_v51 = vsel %vm11551_vm0, %v4644_v54, %v10179_v55 }
 0x400   :  { %6001 = vrot.lane.b32.xlu1 %v8335_v53, %s8614_s12  ;;  %v5948_v63 = vsel %vm11547_vm3, %v9835_v9, 0  ;;  %v8332_v53 = vcombine.low %v10068_v15, %v10089_v35  ;;  %vm11549_vm13 = vmmov %vm11547_vm3 }
 0x401   :  { %v4348_v6 = vpop.permute.xlu0 %4347  ;;  %v5943_v18 = vsel %vm11549_vm13, %v9749_v25, 0  ;;  %vm11561_vm3 = vmmov %vm11543_vm1 }
 0x402   :  { %v4648_v29 = vpop.permute.xlu1 %4647  ;;  %5999 = vrot.lane.b32.xlu0 %v8334_v30, %s8614_s12  ;;  %v4359_v39 = vsel %vm4353_vm2, %v4346_v3, %v4348_v6  ;;  %v8336_v30 = vcombine.low %v5943_v18, %v5948_v63 }
 0x403   :  { %4473 = vmatprep.subr.bf16.mxu0 %v4359_v39  ;;  %v4662_v47 = vsel %vm11553_vm7, %v4648_v29, %v10227_v36  ;;  %v11556_v39 = vld [vmem:[#allocation9_spill] sm:$0xff]  ;;  %vm11566_vm7 = vmmov %vm11543_vm1 }
 0x404   :  { %8257 = vmatmul.mubr.msk.bf16.vlgmr.msra.gmra.mxu0 %vm11548_vm14, %v8569_v5  ;;  %5995 = vrot.lane.b32.xlu1 %v8332_v53, %s8614_s12  ;;  %v8337_v53 = vcombine.high %v5943_v18, %v5948_v63  ;;  %vm11557_vm10 = vcmp.ne.s16.totalorder %v11556_v39, 0  ;;  %vm11562_vm14 = vmmov %vm11551_vm0 }
 0x405   :  { %8258 = vmatmul.mubr.msk.bf16.vlgmr.msra.gmra.mxu1 %vm11550_vm11, %v8569_v5  ;;  %4474 = vmatpush1.bf16.msra.mxu0 %v4358_v7  ;;  %v10258_v32 = vpop.permute.xlu0 %4651  ;;  %v8340_v7 = vcombine.low %v5945_v19, %v5950_v41  ;;  %vm11560_vm6 = vmmov %vm11557_vm10 }
 0x406   :  { %4692 = vmatprep.subr.bf16.mxu0 %v4660_v51  ;;  %v4350_v3 = vpop.permute.xlu1 %4349  ;;  %6003 = vrot.lane.b32.xlu0 %v8336_v30, %s8614_s12  ;;  %v6220_v18 = vsel %vm11560_vm6, %v9754_v22, 0  ;;  %vm11571_vm6 = vmmov %vm11551_vm0 }
 0x407   :  { %v4361_v35 = vsel %vm4353_vm2, %v4350_v3, %v10118_v58  ;;  %v4360_v15 = vsel %vm4353_vm2, %v4348_v6, %v4350_v3  ;;  %4491 = vmatprep.mubr.bf16.mxu0 %v9573_v8  ;;  %4534 = vmatprep.mubr.bf16.mxu1 %v9573_v8  ;;  %v11554_v58 = vld [vmem:[#allocation11_spill] sm:$0xff]  ;;  %v6225_v3 = vsel %vm11557_vm10, %v9865_v44, 0  ;;  %v4661_v44 = vsel %vm11562_vm14, %v10179_v55, %v4648_v29  ;;  %v8570_v55 = vld [vmem:[%s11352_s3 + $0x30] sm:$0xff]   ;;  %vm11574_vm14 = vmmov %vm11566_vm7 }
 0x408   :  { %4516 = vmatprep.subr.bf16.mxu1 %v4361_v35  ;;  %vm11555_vm8 = vcmp.ne.s16.totalorder %v11554_v58, 0  ;;  %6011 = vrot.lane.b32.xlu1 %v8340_v7, %s8614_s12  ;;  %v11563_v35 = vld [vmem:[#allocation13_spill] sm:$0xff]  ;;  %vm11568_vm10 = vcmp.ne.s16.totalorder %v9338_v43, 0 }
 0x409   :  { %4517 = vmatpush1.bf16.msra.mxu1 %v4360_v15  ;;  %v6226_v51 = vsel %vm11555_vm8, %v9796_v48, 0  ;;  %v4877_v6 = vpop.permute.xlu0 %4876  ;;  %vm11559_vm5 = vmmov %vm11555_vm8  ;;  %vm11564_vm13 = vcmp.ne.s16.totalorder %v11563_v35, 0  ;;  %v5949_v58 = vsel %vm11568_vm10, %v10047_v33, 0  ;;  %v6229_v35 = vsel %vm9281_vm15, %v10153_v17, 0 }
 0x40a   :  { %4735 = vmatprep.subr.bf16.mxu1 %v4662_v47  ;;  %v4642_v30 = vpop.permute.xlu1 %4641  ;;  %6005 = vrot.lane.b32.xlu0 %v8337_v53, %s8614_s12  ;;  %v6221_v63 = vsel %vm11559_vm5, %v9745_v45, 0  ;;  %v6227_v15 = vsel %vm11564_vm13, %v9835_v9, 0  ;;  %vm11565_vm11 = vmmov %vm11564_vm13  ;;  %v8348_v53 = vcombine.low %v6220_v18, %v6225_v3 }
 0x40b   :  { %v4659_v41 = vsel %vm11558_vm9, %v4642_v30, %v4644_v54  ;;  %v8350_v48 = vcombine.low %v6221_v63, %v6226_v51  ;;  %v8349_v54 = vcombine.high %v6220_v18, %v6225_v3  ;;  %v6222_v22 = vsel %vm11565_vm11, %v9749_v25, 0  ;;  %vm11567_vm8 = vmmov %vm11543_vm1 }
 0x40c   :  { %8259 = vmatmul.mubr.msk.bf16.vlgmr.msra.gmra.mxu0 %vm11543_vm1, %v8569_v5  ;;  %v8352_v9 = vcombine.low %v6222_v22, %v6227_v15  ;;  %v8353_v25 = vcombine.high %v6222_v22, %v6227_v15  ;;  %vm4892_vm9 = vcmask 515072   ;;  %vm11569_vm5 = vmmov %vm11568_vm10 }
 0x40d   :  { %8260 = vmatmul.mubr.msk.bf16.vlgmr.msra.gmra.mxu1 %vm11561_vm3, %v8569_v5  ;;  %4693 = vmatpush1.bf16.msra.mxu0 %v4659_v41  ;;  %v4881_v19 = vpop.permute.xlu0 %4880  ;;  %v8351_v5 = vcombine.high %v6221_v63, %v6226_v51  ;;  %v5944_v39 = vsel %vm11569_vm5, %v9941_v56, 0  ;;  %vm11570_vm1 = vmmov %vm11551_vm0  ;;  %vm5198_vm5 = vcmask 506880  }
 0x40e   :  { %4736 = vmatpush1.bf16.msra.mxu1 %v4661_v44  ;;  %v4658_v45 = vpop.permute.xlu1 %4657  ;;  %6278 = vrot.lane.b32.xlu1 %v8350_v48, %s8615_s13  ;;  %v8338_v63 = vcombine.low %v5944_v39, %v5949_v58  ;;  %vm11572_vm3 = vmmov %vm11551_vm0  ;;  %v8339_v18 = vcombine.high %v5944_v39, %v5949_v58  ;;  %v11583_v39 = vcombine.low %v9888_v23, %v9893_v52 }
 0x40f   :  { %6276 = vrot.lane.b32.xlu0 %v8349_v54, %s8615_s13  ;;  %4710 = vmatprep.mubr.bf16.mxu0 %v9573_v8  ;;  %v4663_v48 = vsel %vm11572_vm3, %v10227_v36, %v10258_v32  ;;  %vm11575_vm13 = vmmov %vm11566_vm7 }
 0x410   :  { %4753 = vmatprep.mubr.bf16.mxu1 %v9573_v8  ;;  %vm11577_vm11 = vmmov %vm11566_vm7 }
 0x411   :  { %v4656_v29 = vpop.permute.xlu0 %4655  ;;  %vm11580_vm10 = vmmov %vm11567_vm8 }
 0x412   :  { %v4879_v7 = vpop.permute.xlu1 %4878  ;;  %6282 = vrot.lane.b32.xlu1 %v8352_v9, %s8615_s13  ;;  %v4666_v47 = vsel %vm11551_vm0, %v4656_v29, %v4658_v45  ;;  %v6224_v45 = vsel %vm9281_vm15, %v10126_v28, 0  ;;  %v8571_v28 = vld [vmem:[%s11352_s3 + $0x38] sm:$0xff]   ;;  %vm11576_vm15 = vmmov %vm11566_vm7  ;;  %vm11578_vm0 = vcmp.ne.s16.totalorder %v9375_v13, 0  ;;  %v11581_v13 = vcombine.low %v9819_v38, %v9824_v61 }
 0x413   :  { %6280 = vrot.lane.b32.xlu0 %v8351_v5, %s8615_s13  ;;  %4821 = vmatprep.subr.bf16.mxu1 %v4666_v47  ;;  %v4894_v44 = vsel %vm4892_vm9, %v4877_v6, %v4879_v7  ;;  %v4895_v22 = vsel %vm4892_vm9, %v4879_v7, %v4881_v19  ;;  %v8356_v9 = vcombine.low %v6224_v45, %v6229_v35  ;;  %v6228_v47 = vsel %vm11578_vm0, %v10047_v33, 0 }
 0x414   :  { %8273 = vmatmul.mubr.msk.bf16.vlgmr.msra.gmra.mxu0 %vm11566_vm7, %v8570_v55  ;;  %vm11579_vm7 = vmmov %vm11578_vm0  ;;  %v11582_v33 = vcombine.high %v9883_v62, %v9915_v31 }
 0x415   :  { %8274 = vmatmul.mubr.msk.bf16.vlgmr.msra.gmra.mxu1 %vm11567_vm8, %v8570_v55  ;;  %4796 = vmatprep.mubr.bf16.mxu0 %v9573_v8  ;;  %v4875_v51 = vpop.permute.xlu0 %4874 }
 0x416   :  { %6284 = vrot.lane.b32.xlu1 %v8353_v25, %s8615_s13  ;;  %4839 = vmatprep.mubr.bf16.mxu1 %v9573_v8  ;;  %v4654_v30 = vpop.permute.xlu1 %4653  ;;  %v4893_v36 = vsel %vm4892_vm9, %v4875_v51, %v4877_v6  ;;  %v6223_v25 = vsel %vm11579_vm7, %v9941_v56, 0 }
 0x417   :  { %6274 = vrot.lane.b32.xlu0 %v8348_v53, %s8615_s13  ;;  %v4665_v3 = vsel %vm11570_vm1, %v4654_v30, %v4656_v29  ;;  %v4664_v41 = vsel %vm11571_vm6, %v10258_v32, %v4654_v30  ;;  %v8355_v53 = vcombine.high %v6223_v25, %v6228_v47  ;;  %v8354_v58 = vcombine.low %v6223_v25, %v6228_v47  ;;  %vm11587_vm1 = vmmov %vm11567_vm8 }
 0x418   :  { %4778 = vmatprep.subr.bf16.mxu0 %v4664_v41  ;;  %4822 = vmatpush1.bf16.msra.mxu1 %v4665_v3  ;;  %v11584_v41 = vcombine.high %v9819_v38, %v9824_v61  ;;  %v11586_v38 = vcombine.low %v9883_v62, %v9915_v31  ;;  %vm11589_vm6 = vmmov %vm11587_vm1  ;;  %v11591_v31 = vcombine.low %v9920_v46, %v9925_v11 }
 0x419   :  { %4779 = vmatpush1.bf16.msra.mxu0 %v4663_v48  ;;  %v4887_v32 = vpop.permute.xlu0 %4886  ;;  %vm11596_vm3 = vmmov %vm11587_vm1 }
 0x41a   :  { %6007 = vrot.lane.b32.xlu1 %v8338_v63, %s8614_s12  ;;  %4926 = vmatprep.subr.bf16.mxu0 %v4894_v44  ;;  %v4883_v43 = vpop.permute.xlu1 %4882  ;;  %v11585_v44 = vcombine.high %v9888_v23, %v9893_v52  ;;  %v11588_v23 = vcombine.high %v9904_v16, %v9952_v37  ;;  %v11590_v52 = vcombine.high %v9920_v46, %v9925_v11  ;;  %vm11609_vm7 = vmmov %vm11587_vm1 }
 0x41b   :  { %6009 = vrot.lane.b32.xlu0 %v8339_v18, %s8614_s12  ;;  %v4896_v15 = vsel %vm4892_vm9, %v4881_v19, %v4883_v43  ;;  %v11594_v46 = vcombine.low %v9904_v16, %v9952_v37  ;;  %v11595_v11 = vcombine.low %v9968_v4, %v9938_v49 }
 0x41c   :  { %8275 = vmatmul.mubr.msk.bf16.vlgmr.msra.gmra.mxu0 %vm11574_vm14, %v8570_v55  ;;  %4969 = vmatprep.subr.bf16.mxu1 %v4896_v15  ;;  %vm11600_vm14 = vcmask 1039360  }
 0x41d   :  { %8276 = vmatmul.mubr.msk.bf16.vlgmr.msra.gmra.mxu1 %vm11575_vm13, %v8570_v55  ;;  %4927 = vmatpush1.bf16.msra.mxu0 %v4893_v36  ;;  %v4891_v19 = vpop.permute.xlu0 %4890  ;;  %v11593_v36 = vcombine.low %v10101_v2, %v10094_v24  ;;  %vm11602_vm13 = vmmov %vm11600_vm14 }
 0x41e   :  { %4970 = vmatpush1.bf16.msra.mxu1 %v4895_v22  ;;  %v4885_v17 = vpop.permute.xlu1 %4884  ;;  %6508 = vrot.lane.b32.xlu1 %v9877_v50, %s8617_s17  ;;  %vm11605_vm0 = vmmov %vm11602_vm13 }
 0x41f   :  { %v4898_v6 = vsel %vm4892_vm9, %v4885_v17, %v4887_v32  ;;  %6290 = vrot.lane.b32.xlu0 %v8356_v9, %s8615_s13  ;;  %4944 = vmatprep.mubr.bf16.mxu0 %v9573_v8  ;;  %v4897_v7 = vsel %vm4892_vm9, %v4883_v43, %v4885_v17  ;;  %v8572_v43 = vld [vmem:[%s11352_s3 + $0x40] sm:$0xff]  }
 0x420   :  { %5012 = vmatprep.subr.bf16.mxu0 %v4898_v6  ;;  %4987 = vmatprep.mubr.bf16.mxu1 %v9573_v8 }
 0x422   :  { %v4889_v55 = vpop.permute.xlu1 %4888  ;;  %6512 = vrot.lane.b32.xlu1 %v9959_v57, %s8617_s17 }
 0x423   :  { %v4899_v5 = vsel %vm4892_vm9, %v4887_v32, %v4889_v55  ;;  %v4900_v29 = vsel %vm4892_vm9, %v4889_v55, %v4891_v19  ;;  %6510 = vrot.lane.b32.xlu0 %v9809_v34, %s8617_s17  ;;  %v10491_v19 = vpop.f32.mrf.mxu0  ;;  %v11606_v55 = vld [vmem:[#allocation7_spill] sm:$0xff] }
 0x424   :  { %8280 = vmatmul.mubr.msk.bf16.vlgmr.msra.gmra.mxu0 %vm11576_vm15, %v8571_v28  ;;  %5055 = vmatprep.subr.bf16.mxu1 %v4900_v29  ;;  %vm11603_vm15 = vmmov %vm11602_vm13 }
 0x425   :  { %8281 = vmatmul.mubr.msk.bf16.vlgmr.msra.gmra.mxu1 %vm11577_vm11, %v8571_v28  ;;  %5013 = vmatpush1.bf16.msra.mxu0 %v4897_v7  ;;  %vm11604_vm11 = vmmov %vm11587_vm1  ;;  %v10505_v25 = vpop.f32.mrf.mxu0 }
 0x426   :  { %5056 = vmatpush1.bf16.msra.mxu1 %v4899_v5  ;;  %6506 = vrot.lane.b32.xlu1 %v10053_v60, %s8617_s17  ;;  %v11607_v5 = vld [vmem:[#allocation19_spill] sm:$0xff] }
 0x427   :  { %6514 = vrot.lane.b32.xlu0 %v9850_v20, %s8617_s17  ;;  %5030 = vmatprep.mubr.bf16.mxu0 %v9573_v8  ;;  %v11608_v29 = vcombine.high %v11606_v55, %v11607_v5 }
 0x428   :  { %5073 = vmatprep.mubr.bf16.mxu1 %v9573_v8 }
 0x42a   :  { %6288 = vrot.lane.b32.xlu1 %v8355_v53, %s8615_s13 }
 0x42b   :  { %6286 = vrot.lane.b32.xlu0 %v8354_v58, %s8615_s13  ;;  %v11613_v58 = vld [vmem:[#allocation6_spill] sm:$0xff] }
 0x42c   :  { %8282 = vmatmul.mubr.msk.bf16.vlgmr.msra.gmra.mxu0 %vm11567_vm8, %v8571_v28  ;;  %vm11610_vm8 = vmmov %vm11587_vm1 }
 0x42d   :  { %8283 = vmatmul.mubr.msk.bf16.vlgmr.msra.gmra.mxu1 %vm11580_vm10, %v8571_v28  ;;  %5250 = vmatprep.mubr.bf16.mxu0 %v9573_v8  ;;  %vm11611_vm10 = vmmov %vm11605_vm0 }
 0x42e   :  { %5293 = vmatprep.mubr.bf16.mxu1 %v9573_v8  ;;  %6518 = vrot.lane.b32.xlu1 %v10124_v21, %s8617_s17 }
 0x42f   :  { %6516 = vrot.lane.b32.xlu0 %v9910_v14, %s8617_s17 }
 0x432   :  { %6522 = vrot.lane.b32.xlu1 %v10183_v12, %s8617_s17 }
 0x433   :  { %6520 = vrot.lane.b32.xlu0 %v10084_v27, %s8617_s17 }
 0x436   :  { %6789 = vrot.lane.b32.xlu1 %v11581_v13, %s8618_s18  ;;  %v11614_v13 = vld [vmem:[#allocation17_spill] sm:$0xff] }
 0x437   :  { %6787 = vrot.lane.b32.xlu0 %v11582_v33, %s8618_s18  ;;  %v11616_v33 = vld [vmem:[#allocation18_spill] sm:$0xff] }
 0x438   :  { %v5183_v56 = vpop.permute.xlu1 %5182 }
 0x439   :  { %v5185_v51 = vpop.permute.xlu0 %5184 }
 0x43a   :  { %v5200_v30 = vsel %vm5198_vm5, %v5183_v56, %v5185_v51  ;;  %6793 = vrot.lane.b32.xlu1 %v11583_v39, %s8618_s18 }
 0x43b   :  { %5232 = vmatprep.subr.bf16.mxu0 %v5200_v30  ;;  %6791 = vrot.lane.b32.xlu0 %v11584_v41, %s8618_s18  ;;  %v10522_v41 = vpop.f32.mrf.mxu0 }
 0x43c   :  { %v5187_v3 = vpop.permute.xlu1 %5186 }
 0x43d   :  { %v5189_v63 = vpop.permute.xlu0 %5188  ;;  %v5201_v18 = vsel %vm5198_vm5, %v5185_v51, %v5187_v3  ;;  %v11617_v51 = vld [vmem:[#allocation20_spill] sm:$0xff] }
 0x43e   :  { %v5202_v48 = vsel %vm5198_vm5, %v5187_v3, %v5189_v63  ;;  %6795 = vrot.lane.b32.xlu1 %v11585_v44, %s8618_s18  ;;  %v11618_v30 = vcombine.high %v11616_v33, %v11617_v51  ;;  %v11622_v44 = vcombine.low %v11606_v55, %v11607_v5  ;;  %v11645_v5 = vcombine.low %v10197_v1, %v10202_v40 }
 0x43f   :  { %5275 = vmatprep.subr.bf16.mxu1 %v5202_v48  ;;  %6785 = vrot.lane.b32.xlu0 %v11586_v38, %s8618_s18 }
 0x440   :  { %5276 = vmatpush1.bf16.msra.mxu1 %v5201_v18  ;;  %v5181_v54 = vpop.permute.xlu1 %5180 }
 0x441   :  { %v5199_v61 = vsel %vm5198_vm5, %v5181_v54, %v5183_v56  ;;  %v5191_v35 = vpop.permute.xlu0 %5190  ;;  %v11615_v56 = vcombine.high %v11613_v58, %v11614_v13  ;;  %v11624_v54 = vcombine.low %v11616_v33, %v11617_v51 }
 0x442   :  { %5233 = vmatpush1.bf16.msra.mxu0 %v5199_v61  ;;  %7066 = vrot.lane.b32.xlu1 %v11588_v23, %s8613_s22  ;;  %v5203_v45 = vsel %vm5198_vm5, %v5189_v63, %v5191_v35  ;;  %v10542_v61 = vpop.f32.mrf.mxu0  ;;  %v11625_v23 = vld [vmem:[#allocation16_spill] sm:$0xff] }
 0x443   :  { %8297 = vmatmul.mubr.msk.bf16.vlgmr.msra.gmra.mxu1 %vm11587_vm1, %v8572_v43  ;;  %6801 = vrot.lane.b32.xlu0 %v10185_v59, %s8618_s18  ;;  %v11592_v59 = vcombine.high %v10101_v2, %v10094_v24  ;;  %v11597_v24 = vcombine.high %v9968_v4, %v9938_v49  ;;  %v11598_v2 = vld [vmem:[#allocation24_spill] sm:$0xff]  ;;  %vm11612_vm1 = vmmov %vm11605_vm0 }
 0x444   :  { %5379 = vmatprep.mubr.bf16.mxu1 %v9573_v8  ;;  %v11599_v22 = vcombine.low %v10106_v26, %v11598_v2  ;;  %v11601_v49 = vcombine.high %v10106_v26, %v11598_v2 }
 0x445   :  { %8296 = vmatmul.mubr.msk.bf16.vlgmr.msra.gmra.mxu0 %vm11589_vm6, %v8572_v43  ;;  %vm11620_vm6 = vmmov %vm11605_vm0 }
 0x446   :  { %5336 = vmatprep.mubr.bf16.mxu0 %v9573_v8  ;;  %7070 = vrot.lane.b32.xlu1 %v11590_v52, %s8613_s22 }
 0x447   :  { %v5197_v62 = vpop.permute.xlu1 %5196  ;;  %7068 = vrot.lane.b32.xlu0 %v11591_v31, %s8613_s22  ;;  %v11628_v31 = vld [vmem:[#allocation23_spill] sm:$0xff] }
 0x44a   :  { %6799 = vrot.lane.b32.xlu1 %v11592_v59, %s8618_s18 }
 0x44b   :  { %6797 = vrot.lane.b32.xlu0 %v11593_v36, %s8618_s18  ;;  %v11632_v36 = vld [vmem:[#allocation25_spill] sm:$0xff] }
 0x44c   :  { %v5193_v15 = vpop.permute.xlu1 %5192 }
 0x44d   :  { %v5204_v32 = vsel %vm5198_vm5, %v5191_v35, %v5193_v15  ;;  %v11629_v35 = vld [vmem:[#allocation22_spill] sm:$0xff] }
 0x44e   :  { %5318 = vmatprep.subr.bf16.mxu0 %v5204_v32  ;;  %7064 = vrot.lane.b32.xlu1 %v11594_v46, %s8613_s22  ;;  %v11630_v59 = vcombine.high %v11628_v31, %v11629_v35 }
 0x44f   :  { %5319 = vmatpush1.bf16.msra.mxu0 %v5203_v45  ;;  %7072 = vrot.lane.b32.xlu0 %v11595_v11, %s8613_s22  ;;  %v11634_v45 = vcombine.low %v10135_v0, %v10149_v42  ;;  %v8574_v11 = vld [vmem:[%s11352_s3] sm:$0xff]  }
 0x452   :  { %8298 = vmatmul.mubr.msk.bf16.vlgmr.msra.gmra.mxu0 %vm11596_vm3, %v8572_v43  ;;  %7080 = vrot.lane.b32.xlu1 %v10190_v10, %s8613_s22  ;;  %vm11621_vm3 = vmmov %vm11605_vm0 }
 0x453   :  { %5581 = vmatprep.mubr.bf16.mxu0 %v9573_v8  ;;  %7074 = vrot.lane.b32.xlu0 %v11597_v24, %s8613_s22  ;;  %v5517_v37 = vpop.permute.xlu1 %5516  ;;  %v11636_v24 = vcombine.low %v11628_v31, %v11629_v35 }
 0x456   :  { %7300 = vrot.lane.b32.xlu1 %v9809_v34, %s8619_s19 }
 0x457   :  { %7298 = vrot.lane.b32.xlu0 %v9877_v50, %s8619_s19 }
 0x459   :  { %v5521_v9 = vpop.permute.xlu1 %5520 }
 0x45a   :  { %v5515_v16 = vpop.permute.xlu0 %5514  ;;  %7076 = vrot.lane.b32.xlu1 %v11599_v22, %s8613_s22 }
 0x45b   :  { %v5531_v10 = vsel %vm11600_vm14, %v5515_v16, %v5517_v37  ;;  %7078 = vrot.lane.b32.xlu0 %v11601_v49, %s8613_s22  ;;  %vm11623_vm14 = vmmov %vm11609_vm7 }
 0x45c   :  { %5563 = vmatprep.subr.bf16.mxu0 %v5531_v10  ;;  %v11638_v10 = vcombine.high %v10197_v1, %v10202_v40 }
 0x45e   :  { %v5195_v4 = vpop.permute.xlu0 %5194  ;;  %7304 = vrot.lane.b32.xlu1 %v9850_v20, %s8619_s19  ;;  %v5523_v20 = vpop.permute.xlu1 %5522 }
 0x45f   :  { %v5205_v34 = vsel %vm5198_vm5, %v5193_v15, %v5195_v4  ;;  %v5206_v50 = vsel %vm5198_vm5, %v5195_v4, %v5197_v62  ;;  %7302 = vrot.lane.b32.xlu0 %v9959_v57, %s8619_s19  ;;  %v11626_v62 = vld [vmem:[#allocation21_spill] sm:$0xff]  ;;  %v11631_v15 = vld [vmem:[#allocation8_spill] sm:$0xff]  ;;  %v11639_v4 = vld [vmem:[#allocation10_spill] sm:$0xff] }
 0x460   :  { %5361 = vmatprep.subr.bf16.mxu1 %v5206_v50  ;;  %v11627_v52 = vcombine.low %v11625_v23, %v11626_v62  ;;  %v11633_v32 = vcombine.high %v11631_v15, %v11632_v36  ;;  %v11637_v2 = vcombine.high %v11625_v23, %v11626_v62  ;;  %v11641_v50 = vcombine.low %v11631_v15, %v11632_v36 }
 0x461   :  { %5362 = vmatpush1.bf16.msra.mxu1 %v5205_v34 }
 0x462   :  { %v5519_v17 = vpop.permute.xlu0 %5518  ;;  %7306 = vrot.lane.b32.xlu1 %v9910_v14, %s8619_s19  ;;  %v8573_v14 = vld [vmem:[%s11352_s3 + $0x8] sm:$0xff]  }
 0x463   :  { %v5532_v6 = vsel %vm11602_vm13, %v5517_v37, %v5519_v17  ;;  %v5533_v26 = vsel %vm11603_vm15, %v5519_v17, %v5521_v9  ;;  %7296 = vrot.lane.b32.xlu0 %v10053_v60, %s8619_s19  ;;  %vm11635_vm13 = vmmov %vm11609_vm7 }
 0x464   :  { %8299 = vmatmul.mubr.msk.bf16.vlgmr.msra.gmra.mxu1 %vm11604_vm11, %v8572_v43  ;;  %5606 = vmatprep.subr.bf16.mxu1 %v5533_v26  ;;  %vm11640_vm15 = vmmov %vm11609_vm7  ;;  %vm11642_vm11 = vcmask 1031168   ;;  %v11643_v26 = vcombine.high %v10135_v0, %v10149_v42 }
 0x465   :  { %5607 = vmatpush1.bf16.msra.mxu1 %v5532_v6  ;;  %5624 = vmatprep.mubr.bf16.mxu1 %v9573_v8  ;;  %v2864_v6 = vld [vmem:[%s11353_s4 + $0x8] sm:$0xff] }
 0x466   :  { %v5513_v28 = vpop.permute.xlu0 %5512  ;;  %7310 = vrot.lane.b32.xlu1 %v10084_v27, %s8619_s19 }
 0x467   :  { %v5530_v57 = vsel %vm11605_vm0, %v5513_v28, %v5515_v16  ;;  %7308 = vrot.lane.b32.xlu0 %v10124_v21, %s8619_s19  ;;  %v5534_v21 = vsel %vm11612_vm1, %v5521_v9, %v5523_v20  ;;  %vm11644_vm0 = vmmov %vm11609_vm7 }
 0x468   :  { %5564 = vmatpush1.bf16.msra.mxu0 %v5530_v57  ;;  %v10500_v27 = vpop.f32.mrf.mxu1 }
 0x46a   :  { %v5527_v60 = vpop.permute.xlu1 %5526  ;;  %7577 = vrot.lane.b32.xlu1 %v11608_v29, %s8620_s23  ;;  %v10520_v39 = vpop.f32.mrf.mxu1 }
 0x46b   :  { %8312 = vmatmul.mubr.msk.bf16.vlgmr.msra.gmra.mxu0 %vm11609_vm7, %v8573_v14  ;;  %v5525_v7 = vpop.permute.xlu0 %5524  ;;  %7312 = vrot.lane.b32.xlu0 %v10183_v12, %s8619_s19  ;;  %v11619_v12 = vcombine.low %v11613_v58, %v11614_v13  ;;  %vm11646_vm7 = vmmov %vm11642_vm11 }
 0x46c   :  { %8313 = vmatmul.mubr.msk.bf16.vlgmr.msra.gmra.mxu1 %vm11610_vm8, %v8573_v14  ;;  %v5535_v47 = vsel %vm11611_vm10, %v5523_v20, %v5525_v7  ;;  %5667 = vmatprep.mubr.bf16.mxu0 %v9573_v8  ;;  %v5536_v18 = vsel %vm11621_vm3, %v5525_v7, %v5527_v60  ;;  %v10537_v43 = vpop.f32.mrf.mxu1  ;;  %vm11647_vm8 = vmmov %vm11646_vm7 }
 0x46d   :  { %5649 = vmatprep.subr.bf16.mxu0 %v5535_v47  ;;  %5710 = vmatprep.mubr.bf16.mxu1 %v9573_v8  ;;  %vm11648_vm10 = vmmov %vm11644_vm0 }
 0x46e   :  { %5650 = vmatpush1.bf16.msra.mxu0 %v5534_v21  ;;  %v10510_v53 = vpop.permute.xlu1 %5997  ;;  %7581 = vrot.lane.b32.xlu1 %v11615_v56, %s8620_s23  ;;  %v10560_v46 = vpop.f32.mrf.mxu1  ;;  %vm11649_vm1 = vmmov %vm11646_vm7 }
 0x46f   :  { %5783 = vmatprep.subr.bf16.mxu0 %v11618_v30  ;;  %7579 = vrot.lane.b32.xlu0 %v11619_v12, %s8620_s23  ;;  %v8575_v12 = vld [vmem:[%s11352_s3 + $0x10] sm:$0xff]   ;;  %vm11651_vm3 = vmmov %vm11644_vm0 }
 0x470   :  { %v5529_v3 = vpop.permute.xlu0 %5528 }
 0x471   :  { %v5537_v63 = vsel %vm11620_vm6, %v5527_v60, %v5529_v3  ;;  %vm11650_vm6 = vmmov %vm11644_vm0 }
 0x472   :  { %5692 = vmatprep.subr.bf16.mxu1 %v5537_v63  ;;  %v10529_v48 = vpop.permute.xlu1 %6001  ;;  %7575 = vrot.lane.b32.xlu1 %v11622_v44, %s8620_s23 }
 0x473   :  { %8314 = vmatmul.mubr.msk.bf16.vlgmr.msra.gmra.mxu0 %vm11623_vm14, %v8573_v14  ;;  %5693 = vmatpush1.bf16.msra.mxu1 %v5536_v18  ;;  %vm11652_vm14 = vmmov %vm11649_vm1 }
 0x474   :  { %5784 = vmatpush1.bf16.msra.mxu0 %v11624_v54  ;;  %v6000_v38 = vpop.permute.xlu0 %5999  ;;  %7583 = vrot.lane.b32.xlu0 %v11627_v52, %s8620_s23 }
 0x475   :  { %5826 = vmatprep.subr.bf16.mxu1 %v11630_v59  ;;  %5869 = vmatprep.subr.bf16.mxu0 %v11633_v32  ;;  %v6014_v9 = vsel %vm11642_vm11, %v10510_v53, %v6000_v38  ;;  %v6015_v30 = vsel %vm11649_vm1, %v6000_v38, %v10529_v48  ;;  %vm11655_vm11 = vmmov %vm11649_vm1 }
 0x476   :  { %5801 = vmatprep.mubr.bf16.mxu0 %v9573_v8  ;;  %7587 = vrot.lane.b32.xlu1 %v11634_v45, %s8620_s23  ;;  %v5996_v16 = vpop.permute.xlu1 %5995 }
 0x477   :  { %8315 = vmatmul.mubr.msk.bf16.vlgmr.msra.gmra.mxu1 %vm11635_vm13, %v8573_v14  ;;  %v3109_v37 = vpop.f32.mrf.mxu0  ;;  %v2863_v14 = vld [vmem:[%s11353_s4] sm:$0xff]  ;;  %v6013_v21 = vsel %vm11647_vm8, %v5996_v16, %v10510_v53  ;;  %vm11653_vm13 = vmmov %vm11649_vm1 }
 0x478   :  { %5827 = vmatpush1.bf16.msra.mxu1 %v11636_v24  ;;  %5844 = vmatprep.mubr.bf16.mxu1 %v9573_v8  ;;  %v10573_v22 = vpop.permute.xlu0 %6003  ;;  %vm11657_vm8 = vmmov %vm11644_vm0 }
 0x479   :  { %7585 = vrot.lane.b32.xlu0 %v11637_v2, %s8620_s23  ;;  %5912 = vmatprep.subr.bf16.mxu1 %v11638_v10  ;;  %v3111_v49 = vpop.f32.mrf.mxu0  ;;  %v6016_v42 = vsel %vm11646_vm7, %v10529_v48, %v10573_v22  ;;  %vm11656_vm7 = vmmov %vm11644_vm0 }
 0x47a   :  { %7591 = vrot.lane.b32.xlu1 %v11639_v4, %s8620_s23  ;;  %v10586_v17 = vpop.permute.xlu1 %6011 }
 0x47b   :  { %8325 = vmatmul.mubr.msk.bf16.vlgmr.msra.gmra.mxu0 %vm11640_vm15, %v8574_v11  ;;  %v3113_v28 = vpop.f32.mrf.mxu0  ;;  %vm11654_vm15 = vmmov %vm11649_vm1 }
 0x47c   :  { %v3152_v34 = vpop.f32.mrf.mxu1  ;;  %5870 = vmatpush1.bf16.msra.mxu0 %v11641_v50  ;;  %5887 = vmatprep.mubr.bf16.mxu0 %v9573_v8  ;;  %v6006_v20 = vpop.permute.xlu0 %6005  ;;  %vm11659_vm1 = vmmov %vm11644_vm0 }
 0x47d   :  { %7589 = vrot.lane.b32.xlu0 %v11643_v26, %s8620_s23  ;;  %6046 = vmatprep.subr.bf16.mxu0 %v6014_v9  ;;  %v10600_v60 = vpop.f32.mrf.mxu0  ;;  %v6017_v24 = vsel %vm11655_vm11, %v10573_v22, %v6006_v20  ;;  %vm11669_vm11 = vmmov %vm11644_vm0 }
 0x47e   :  { %v3154_v57 = vpop.f32.mrf.mxu1  ;;  %5413 = vperm.xlu1 %8456, %v2864_v6  }
 0x47f   :  { %8326 = vmatmul.mubr.msk.bf16.vlgmr.msra.gmra.mxu1 %vm11644_vm0, %v8574_v11  ;;  %v3243_v7 = vpop.f32.mrf.mxu0 }
 0x480   :  { %v10602_v55 = vpop.f32.mrf.mxu1  ;;  %5913 = vmatpush1.bf16.msra.mxu1 %v11645_v5  ;;  %v10610_v0 = vpop.permute.xlu1 %6278  ;;  %5930 = vmatprep.mubr.bf16.mxu1 %v9573_v8  ;;  %v3244_v15 = vadd.f32 %v3243_v7, %v10491_v19 }
 0x481   :  { %6089 = vmatprep.subr.bf16.mxu1 %v6016_v42  ;;  %v10613_v29 = vpop.permute.xlu0 %6276  ;;  %5408 = vperm.xlu0 %8455, %v2863_v14   ;;  %v3245_v1 = vpop.f32.mrf.mxu0 }
 0x482   :  { %v10615_v47 = vpop.f32.mrf.mxu1  ;;  %v3246_v19 = vadd.f32 %v3245_v1, %v10505_v25  ;;  %v6293_v10 = vsel %vm3813_vm12, %v10613_v29, %v10610_v0 }
 0x483   :  { %8327 = vmatmul.mubr.msk.bf16.vlgmr.msra.gmra.mxu0 %vm11648_vm10, %v8574_v11  ;;  %v3247_v33 = vpop.f32.mrf.mxu0  ;;  %vm11658_vm10 = vmmov %vm11644_vm0 }
 0x484   :  { %v3286_v40 = vpop.f32.mrf.mxu1  ;;  %6047 = vmatpush1.bf16.msra.mxu0 %v6013_v21  ;;  %v10620_v58 = vpop.permute.xlu1 %6282  ;;  %6064 = vmatprep.mubr.bf16.mxu0 %v9573_v8  ;;  %v3248_v25 = vadd.f32 %v3247_v33, %v10522_v41  ;;  %v8576_v21 = vld [vmem:[%s11352_s3 + $0x18] sm:$0xff]  }
 0x485   :  { %v3287_v13 = vadd.f32 %v3286_v40, %v10500_v27  ;;  %v10624_v56 = vpop.permute.xlu0 %6280  ;;  %v10632_v3 = vpop.f32.mrf.mxu0 }
 0x486   :  { %v3288_v51 = vpop.f32.mrf.mxu1 }
 0x487   :  { %v10629_v53 = vadd.f32 %v3288_v51, %v10520_v39  ;;  %8328 = vmatmul.mubr.msk.bf16.vlgmr.msra.gmra.mxu1 %vm11650_vm6, %v8574_v11  ;;  %v3329_v39 = vpop.f32.mrf.mxu0  ;;  %vm11661_vm6 = vmmov %vm11644_vm0 }
 0x488   :  { %v3290_v63 = vpop.f32.mrf.mxu1  ;;  %6090 = vmatpush1.bf16.msra.mxu1 %v6015_v30  ;;  %v10637_v27 = vpop.permute.xlu1 %6284  ;;  %6107 = vmatprep.mubr.bf16.mxu1 %v9573_v8  ;;  %v10645_v54 = vadd.f32 %v3329_v39, %v3109_v37 }
 0x489   :  { %v10641_v18 = vadd.f32 %v3290_v63, %v10537_v43  ;;  %v6275_v48 = vpop.permute.xlu0 %6274  ;;  %v3331_v38 = vpop.f32.mrf.mxu0 }
 0x48a   :  { %v10643_v44 = vpop.f32.mrf.mxu1  ;;  %v10648_v62 = vadd.f32 %v3331_v38, %v3111_v49  ;;  %v6295_v49 = vsel %vm3813_vm12, %v10624_v56, %v10620_v58  ;;  %v6292_v6 = vsel %vm3813_vm12, %v6275_v48, %v10613_v29  ;;  %v6294_v29 = vsel %vm3813_vm12, %v10610_v0, %v10624_v56 }
 0x48b   :  { %8341 = vmatmul.mubr.msk.bf16.vlgmr.msra.gmra.mxu0 %vm11651_vm3, %v8575_v12  ;;  %v3333_v59 = vpop.f32.mrf.mxu0  ;;  %vm11662_vm3 = vmmov %vm11644_vm0 }
 0x48c   :  { %v3372_v23 = vpop.f32.mrf.mxu1  ;;  %v6008_v52 = vpop.permute.xlu1 %6007  ;;  %6150 = vmatprep.mubr.bf16.mxu0 %v9573_v8  ;;  %v10654_v45 = vadd.f32 %v3333_v59, %v3113_v28 }
 0x48d   :  { %v3373_v31 = vadd.f32 %v3372_v23, %v3152_v34  ;;  %v6010_v35 = vpop.permute.xlu0 %6009  ;;  %v6018_v43 = vsel %vm11652_vm14, %v6006_v20, %v6008_v52  ;;  %v10661_v37 = vpop.f32.mrf.mxu0  ;;  %vm11663_vm14 = vmmov %vm11644_vm0 }
 0x48e   :  { %v3374_v36 = vpop.f32.mrf.mxu1  ;;  %v6019_v32 = vsel %vm11653_vm13, %v6008_v52, %v6010_v35  ;;  %6132 = vmatprep.subr.bf16.mxu0 %v6018_v43  ;;  %v6020_v11 = vsel %vm11654_vm15, %v6010_v35, %v10586_v17  ;;  %vm11667_vm13 = vmmov %vm11644_vm0 }
 0x48f   :  { %v3375_v16 = vadd.f32 %v3374_v36, %v3154_v57  ;;  %8342 = vmatmul.mubr.msk.bf16.vlgmr.msra.gmra.mxu1 %vm11644_vm0, %v8575_v12  ;;  %6175 = vmatprep.subr.bf16.mxu1 %v6020_v11  ;;  %v3557_v34 = vpop.f32.mrf.mxu0  ;;  %vm11668_vm15 = vmmov %vm11644_vm0 }
 0x490   :  { %v3376_v2 = vpop.f32.mrf.mxu1  ;;  %6133 = vmatpush1.bf16.msra.mxu0 %v6017_v24  ;;  %6176 = vmatpush1.bf16.msra.mxu1 %v6019_v32  ;;  %v10671_v4 = vpop.permute.xlu1 %6508  ;;  %v10676_v17 = vadd.f32 %v3557_v34, %v3244_v15 }
 0x491   :  { %v3377_v22 = vadd.f32 %v3376_v2, %v10602_v55  ;;  %6325 = vmatprep.subr.bf16.mxu0 %v6293_v10  ;;  %6368 = vmatprep.subr.bf16.mxu1 %v6295_v49  ;;  %v6291_v9 = vpop.permute.xlu0 %6290  ;;  %v3559_v26 = vpop.f32.mrf.mxu0 }
 0x492   :  { %v10674_v50 = vpop.f32.mrf.mxu1  ;;  %6193 = vmatprep.mubr.bf16.mxu1 %v9573_v8  ;;  %v10682_v28 = vadd.f32 %v3559_v26, %v3246_v19 }
 0x493   :  { %8343 = vmatmul.mubr.msk.bf16.vlgmr.msra.gmra.mxu0 %vm11656_vm7, %v8575_v12  ;;  %v3561_v14 = vpop.f32.mrf.mxu0 }
 0x494   :  { %v3600_v20 = vpop.f32.mrf.mxu1  ;;  %6326 = vmatpush1.bf16.msra.mxu0 %v6292_v6  ;;  %6343 = vmatprep.mubr.bf16.mxu0 %v9573_v8  ;;  %v10685_v57 = vpop.permute.xlu1 %6512  ;;  %v10687_v42 = vadd.f32 %v3561_v14, %v3248_v25  ;;  %v8577_v14 = vld [vmem:[%s11352_s3 + $0x20] sm:$0xff]  }
 0x495   :  { %v3697_v41 = vadd.f32 %v3600_v20, %v3287_v13  ;;  %v6511_v5 = vpop.permute.xlu0 %6510  ;;  %v10697_v40 = vpop.f32.mrf.mxu0 }
 0x496   :  { %v3602_v55 = vpop.f32.mrf.mxu1  ;;  %v6526_v25 = vsel %vm4047_vm4, %v6511_v5, %v10685_v57 }
 0x497   :  { %v3698_v7 = vadd.f32 %v3602_v55, %v10629_v53  ;;  %8344 = vmatmul.mubr.msk.bf16.vlgmr.msra.gmra.mxu1 %vm11657_vm8, %v8575_v12 }
 0x498   :  { %v3604_v1 = vpop.f32.mrf.mxu1  ;;  %6369 = vmatpush1.bf16.msra.mxu1 %v6294_v29  ;;  %6386 = vmatprep.mubr.bf16.mxu1 %v9573_v8  ;;  %v6507_v33 = vpop.permute.xlu1 %6506 }
 0x499   :  { %v10701_v13 = vadd.f32 %v3604_v1, %v10641_v18  ;;  %v10705_v0 = vpop.permute.xlu0 %6514 }
 0x49a   :  { %v10703_v51 = vpop.f32.mrf.mxu1 }
 0x49b   :  { %8357 = vmatmul.mubr.msk.bf16.vlgmr.msra.gmra.mxu0 %vm11658_vm10, %v8576_v21 }
 0x49c   :  { %v3643_v56 = vpop.f32.mrf.mxu0  ;;  %v3686_v30 = vpop.f32.mrf.mxu1  ;;  %6429 = vmatprep.mubr.bf16.mxu0 %v9573_v8 }
 0x49d   :  { %v10710_v53 = vadd.f32 %v3643_v56, %v10645_v54  ;;  %v10712_v12 = vadd.f32 %v3686_v30, %v3373_v31  ;;  %v6289_v63 = vpop.permute.xlu1 %6288  ;;  %v6287_v52 = vpop.permute.xlu0 %6286  ;;  %v6296_v54 = vsel %vm3813_vm12, %v10620_v58, %v10637_v27  ;;  %v6527_v58 = vsel %vm4047_vm4, %v10685_v57, %v10705_v0 }
 0x49e   :  { %v3645_v48 = vpop.f32.mrf.mxu0  ;;  %v3688_v18 = vpop.f32.mrf.mxu1  ;;  %v6299_v39 = vsel %vm3813_vm12, %v6289_v63, %v6291_v9  ;;  %v6298_v31 = vsel %vm3813_vm12, %v6287_v52, %v6289_v63  ;;  %v6297_v43 = vsel %vm3813_vm12, %v10637_v27, %v6287_v52  ;;  %v6525_v27 = vsel %vm4047_vm4, %v10671_v4, %v6511_v5  ;;  %vm11660_vm12 = vmmov %vm11644_vm0 }
 0x49f   :  { %v10716_v38 = vadd.f32 %v3645_v48, %v10648_v62  ;;  %v10718_v23 = vadd.f32 %v3688_v18, %v3375_v16  ;;  %8358 = vmatmul.mubr.msk.bf16.vlgmr.msra.gmra.mxu1 %vm11659_vm1, %v8576_v21  ;;  %6454 = vmatprep.subr.bf16.mxu1 %v6299_v39  ;;  %v6524_v16 = vsel %vm4047_vm4, %v6507_v33, %v10671_v4 }
 0x4a0   :  { %v3647_v35 = vpop.f32.mrf.mxu0  ;;  %v3690_v59 = vpop.f32.mrf.mxu1  ;;  %6472 = vmatprep.mubr.bf16.mxu1 %v9573_v8  ;;  %6411 = vmatprep.subr.bf16.mxu0 %v6297_v43 }
 0x4a1   :  { %v10729_v62 = vadd.f32 %v3647_v35, %v10654_v45  ;;  %v10731_v15 = vadd.f32 %v3690_v59, %v3377_v22  ;;  %6455 = vmatpush1.bf16.msra.mxu1 %v6298_v31  ;;  %v6519_v36 = vpop.permute.xlu1 %6518  ;;  %6412 = vmatpush1.bf16.msra.mxu0 %v6296_v54  ;;  %v6517_v45 = vpop.permute.xlu0 %6516 }
 0x4a2   :  { %v10736_v32 = vpop.f32.mrf.mxu0  ;;  %v10738_v11 = vpop.f32.mrf.mxu1  ;;  %6600 = vmatprep.subr.bf16.mxu1 %v6527_v58  ;;  %6557 = vmatprep.subr.bf16.mxu0 %v6525_v27  ;;  %v6529_v34 = vsel %vm4047_vm4, %v6517_v45, %v6519_v36 }
 0x4a4   :  { %v3867_v24 = vpop.f32.mrf.mxu0  ;;  %v3910_v2 = vpop.f32.mrf.mxu1  ;;  %8359 = vmatmul.mubr.msk.bf16.vlgmr.msra.gmra.mxu0 %vm11660_vm12, %v8576_v21  ;;  %vm11678_vm12 = vmmov %vm11659_vm1 }
 0x4a5   :  { %v10745_v19 = vadd.f32 %v3867_v24, %v10676_v17  ;;  %v6523_v10 = vpop.permute.xlu1 %6522  ;;  %v10748_v49 = vadd.f32 %v3910_v2, %v3697_v41  ;;  %6558 = vmatpush1.bf16.msra.mxu0 %v6524_v16  ;;  %6575 = vmatprep.mubr.bf16.mxu0 %v9573_v8  ;;  %v6521_v17 = vpop.permute.xlu0 %6520 }
 0x4a6   :  { %v3869_v22 = vpop.f32.mrf.mxu0  ;;  %v3912_v9 = vpop.f32.mrf.mxu1  ;;  %6643 = vmatprep.subr.bf16.mxu0 %v6529_v34  ;;  %v6531_v20 = vsel %vm4047_vm4, %v6521_v17, %v6523_v10  ;;  %v6530_v48 = vsel %vm4047_vm4, %v6519_v36, %v6521_v17  ;;  %v8578_v34 = vld [vmem:[%s11352_s3 + $0x28] sm:$0xff]  }
 0x4a7   :  { %v10755_v4 = vadd.f32 %v3869_v22, %v10682_v28  ;;  %8360 = vmatmul.mubr.msk.bf16.vlgmr.msra.gmra.mxu1 %vm11661_vm6, %v8576_v21  ;;  %v10758_v6 = vadd.f32 %v3912_v9, %v3698_v7 }
 0x4a8   :  { %v3871_v26 = vpop.f32.mrf.mxu0  ;;  %6601 = vmatpush1.bf16.msra.mxu1 %v6526_v25  ;;  %6618 = vmatprep.mubr.bf16.mxu1 %v9573_v8  ;;  %v3914_v57 = vpop.f32.mrf.mxu1 }
 0x4a9   :  { %v10763_v41 = vadd.f32 %v3871_v26, %v10687_v42  ;;  %6686 = vmatprep.subr.bf16.mxu1 %v6531_v20  ;;  %v6790_v28 = vpop.permute.xlu1 %6789  ;;  %v10769_v55 = vadd.f32 %v3914_v57, %v10701_v13  ;;  %v6788_v7 = vpop.permute.xlu0 %6787  ;;  %v6528_v42 = vsel %vm4047_vm4, %v10705_v0, %v6517_v45  ;;  %vm11666_vm4 = vmmov %vm11644_vm0  ;;  %vm11672_vm0 = vcmask 523264  }
 0x4aa   :  { %v10771_v5 = vpop.f32.mrf.mxu0  ;;  %v10773_v29 = vpop.f32.mrf.mxu1  ;;  %v6804_v63 = vsel %vm4353_vm2, %v6788_v7, %v6790_v28  ;;  %vm11673_vm7 = vmmov %vm11672_vm0 }
 0x4ab   :  { %vm11674_vm8 = vmmov %vm11672_vm0 }
 0x4ac   :  { %v3953_v21 = vpop.f32.mrf.mxu0  ;;  %8364 = vmatmul.mubr.msk.bf16.vlgmr.msra.gmra.mxu0 %vm11662_vm3, %v8577_v14  ;;  %vm11676_vm10 = vmmov %vm11672_vm0 }
 0x4ad   :  { %v10778_v1 = vadd.f32 %v3953_v21, %v10710_v53  ;;  %v3996_v33 = vpop.f32.mrf.mxu1  ;;  %v10781_v56 = vpop.permute.xlu1 %6793  ;;  %6644 = vmatpush1.bf16.msra.mxu0 %v6528_v42  ;;  %6661 = vmatprep.mubr.bf16.mxu0 %v9573_v8  ;;  %vm11681_vm6 = vmmov %vm11672_vm0 }
 0x4ae   :  { %v4011_v13 = vadd.f32 %v3996_v33, %v10712_v12  ;;  %v3955_v30 = vpop.f32.mrf.mxu0  ;;  %6836 = vmatprep.subr.bf16.mxu0 %v6804_v63  ;;  %v6792_v18 = vpop.permute.xlu0 %6791  ;;  %vm11682_vm3 = vmmov %vm11672_vm0 }
 0x4af   :  { %v10788_v0 = vadd.f32 %v3955_v30, %v10716_v38  ;;  %v3998_v53 = vpop.f32.mrf.mxu1  ;;  %8365 = vmatmul.mubr.msk.bf16.vlgmr.msra.gmra.mxu1 %vm11663_vm14, %v8577_v14  ;;  %v6806_v12 = vsel %vm4353_vm2, %v6792_v18, %v10781_v56  ;;  %vm11683_vm14 = vmmov %vm11659_vm1 }
 0x4b0   :  { %v4012_v39 = vadd.f32 %v3998_v53, %v10718_v23  ;;  %v3957_v52 = vpop.f32.mrf.mxu0  ;;  %6687 = vmatpush1.bf16.msra.mxu1 %v6530_v48  ;;  %6704 = vmatprep.mubr.bf16.mxu1 %v9573_v8 }
 0x4b1   :  { %v10796_v54 = vadd.f32 %v3957_v52, %v10729_v62  ;;  %v4000_v31 = vpop.f32.mrf.mxu1  ;;  %6879 = vmatprep.subr.bf16.mxu1 %v6806_v12  ;;  %v6796_v38 = vpop.permute.xlu1 %6795 }
 0x4b2   :  { %v4019_v35 = vadd.f32 %v4000_v31, %v10731_v15  ;;  %v10799_v59 = vpop.f32.mrf.mxu0  ;;  %v6786_v23 = vpop.permute.xlu0 %6785  ;;  %v6805_v15 = vsel %vm4353_vm2, %v6790_v28, %v6792_v18 }
 0x4b3   :  { %11664 = vst [vmem:[#allocation12_spill] sm:$0xff] %v10796_v54  ;;  %11665 = vst [vmem:[#allocation14_spill] sm:$0xff] %v10799_v59  ;;  %v10801_v43 = vpop.f32.mrf.mxu1  ;;  %v6803_v36 = vsel %vm4353_vm2, %v6786_v23, %v6788_v7 }
 0x4b4   :  { %v10803_v58 = vpop.f32.mrf.mxu0  ;;  %8366 = vmatmul.mubr.msk.bf16.vlgmr.msra.gmra.mxu0 %vm11666_vm4, %v8577_v14  ;;  %vm11685_vm4 = vmmov %vm11672_vm0 }
 0x4b5   :  { %v10806_v27 = vpop.f32.mrf.mxu1  ;;  %v7067_v62 = vpop.permute.xlu1 %7066  ;;  %6837 = vmatpush1.bf16.msra.mxu0 %v6803_v36  ;;  %6854 = vmatprep.mubr.bf16.mxu0 %v9573_v8 }
 0x4b6   :  { %v10809_v45 = vpop.f32.mrf.mxu0  ;;  %v6802_v16 = vpop.permute.xlu0 %6801 }
 0x4b7   :  { %v10813_v24 = vpop.f32.mrf.mxu1  ;;  %8367 = vmatmul.mubr.msk.bf16.vlgmr.msra.gmra.mxu1 %vm11667_vm13, %v8577_v14  ;;  %vm11687_vm13 = vmmov %vm11672_vm0 }
 0x4b8   :  { %v10816_v2 = vpop.f32.mrf.mxu0  ;;  %6880 = vmatpush1.bf16.msra.mxu1 %v6805_v15  ;;  %6897 = vmatprep.mubr.bf16.mxu1 %v9573_v8 }
 0x4b9   :  { %v10819_v10 = vpop.f32.mrf.mxu1  ;;  %v7071_v22 = vpop.permute.xlu1 %7070 }
 0x4ba   :  { %v10824_v25 = vpop.f32.mrf.mxu0  ;;  %v7069_v17 = vpop.permute.xlu0 %7068 }
 0x4bb   :  { %v10826_v9 = vpop.f32.mrf.mxu1 }
 0x4bc   :  { %v10828_v26 = vpop.f32.mrf.mxu0  ;;  %8380 = vmatmul.mubr.msk.bf16.vlgmr.msra.gmra.mxu0 %vm11668_vm15, %v8578_v34  ;;  %vm11691_vm15 = vmmov %vm11659_vm1 }
 0x4bd   :  { %v4230_v20 = vpop.f32.mrf.mxu1  ;;  %v6800_v57 = vpop.permute.xlu1 %6799  ;;  %6940 = vmatprep.mubr.bf16.mxu0 %v9573_v8 }
 0x4be   :  { %v4245_v28 = vadd.f32 %v4230_v20, %v4011_v13  ;;  %v10831_v14 = vpop.f32.mrf.mxu0  ;;  %v6810_v7 = vsel %vm4353_vm2, %v6800_v57, %v6802_v16  ;;  %v6798_v42 = vpop.permute.xlu0 %6797  ;;  %v6807_v13 = vsel %vm4353_vm2, %v10781_v56, %v6796_v38  ;;  %v7084_v20 = vsel %vm11676_vm10, %v7069_v17, %v7071_v22 }
 0x4bf   :  { %v4232_v21 = vpop.f32.mrf.mxu1  ;;  %8381 = vmatmul.mubr.msk.bf16.vlgmr.msra.gmra.mxu1 %vm11669_vm11, %v8578_v34  ;;  %6965 = vmatprep.subr.bf16.mxu1 %v6810_v7  ;;  %v6809_v30 = vsel %vm4353_vm2, %v6798_v42, %v6800_v57  ;;  %v6808_v48 = vsel %vm4353_vm2, %v6796_v38, %v6798_v42  ;;  %vm11675_vm2 = vmmov %vm11659_vm1 }
 0x4c0   :  { %v4246_v33 = vadd.f32 %v4232_v21, %v4012_v39  ;;  %v10837_v63 = vpop.f32.mrf.mxu0  ;;  %6983 = vmatprep.mubr.bf16.mxu1 %v9573_v8  ;;  %6922 = vmatprep.subr.bf16.mxu0 %v6808_v48  ;;  %v7083_v39 = vsel %vm11672_vm0, %v7067_v62, %v7069_v17  ;;  %vm11692_vm11 = vmmov %vm11659_vm1 }
 0x4c1   :  { %11670 = vst [vmem:[#allocation11_spill] sm:$0xff] %v10837_v63  ;;  %v4234_v53 = vpop.f32.mrf.mxu1  ;;  %6966 = vmatpush1.bf16.msra.mxu1 %v6809_v30  ;;  %v7065_v18 = vpop.permute.xlu1 %7064  ;;  %6923 = vmatpush1.bf16.msra.mxu0 %v6807_v13  ;;  %vm11695_vm0 = vmmov %vm11659_vm1 }
 0x4c2   :  { %v4253_v52 = vadd.f32 %v4234_v53, %v4019_v35  ;;  %v10843_v12 = vpop.f32.mrf.mxu0  ;;  %v7073_v23 = vpop.permute.xlu0 %7072  ;;  %7115 = vmatprep.subr.bf16.mxu0 %v7083_v39  ;;  %v7082_v16 = vsel %vm11674_vm8, %v7065_v18, %v7067_v62  ;;  %v3379_v62 = vadd.f32 %v10674_v50, %v10615_v47  ;;  %vm11703_vm8 = vmmov %vm11695_vm0 }
 0x4c3   :  { %11671 = vst [vmem:[#allocation9_spill] sm:$0xff] %v10843_v12  ;;  %v4236_v31 = vpop.f32.mrf.mxu1  ;;  %v7085_v15 = vsel %vm11673_vm7, %v7071_v22, %v7073_v23  ;;  %v8579_v22 = vld [vmem:[%s11352_s3 + $0x30] sm:$0xff]   ;;  %vm11698_vm7 = vmmov %vm11695_vm0 }
 0x4c4   :  { %v10846_v36 = vpop.f32.mrf.mxu0  ;;  %8382 = vmatmul.mubr.msk.bf16.vlgmr.msra.gmra.mxu0 %vm11675_vm2, %v8578_v34  ;;  %7158 = vmatprep.subr.bf16.mxu1 %v7085_v15  ;;  %v3710_v53 = vadd.f32 %v10738_v11, %v3379_v62  ;;  %vm11705_vm2 = vmmov %vm11695_vm0 }
 0x4c5   :  { %v10850_v56 = vpop.f32.mrf.mxu1  ;;  %v7081_v38 = vpop.permute.xlu1 %7080  ;;  %7116 = vmatpush1.bf16.msra.mxu0 %v7082_v16  ;;  %7133 = vmatprep.mubr.bf16.mxu0 %v9573_v8  ;;  %vm11706_vm10 = vmmov %vm11695_vm0 }
 0x4c6   :  { %v10853_v35 = vpop.f32.mrf.mxu0  ;;  %v7075_v7 = vpop.permute.xlu0 %7074  ;;  %v4020_v16 = vadd.f32 %v10801_v43, %v3710_v53 }
 0x4c7   :  { %v10857_v57 = vpop.f32.mrf.mxu1  ;;  %8383 = vmatmul.mubr.msk.bf16.vlgmr.msra.gmra.mxu1 %vm11659_vm1, %v8578_v34  ;;  %vm11707_vm1 = vmmov %vm11695_vm0 }
 0x4c8   :  { %v10860_v21 = vpop.f32.mrf.mxu0  ;;  %7159 = vmatpush1.bf16.msra.mxu1 %v7084_v20  ;;  %7176 = vmatprep.mubr.bf16.mxu1 %v9573_v8  ;;  %v7086_v20 = vsel %vm11682_vm3, %v7073_v23, %v7075_v7 }
 0x4c9   :  { %v10865_v42 = vpop.f32.mrf.mxu1  ;;  %v7301_v30 = vpop.permute.xlu1 %7300 }
 0x4ca   :  { %v10870_v17 = vpop.f32.mrf.mxu0  ;;  %v7299_v34 = vpop.permute.xlu0 %7298 }
 0x4cb   :  { %v10872_v48 = vpop.f32.mrf.mxu1  ;;  %v7315_v11 = vsel %vm4892_vm9, %v7299_v34, %v7301_v30 }
 0x4cc   :  { %v10874_v13 = vpop.f32.mrf.mxu0  ;;  %8396 = vmatmul.mubr.msk.bf16.vlgmr.msra.gmra.mxu0 %vm11678_vm12, %v8579_v22  ;;  %vm11708_vm12 = vmmov %vm11695_vm0 }
 0x4cd   :  { %11677 = vst [vmem:[#allocation13_spill] sm:$0xff] %v10874_v13  ;;  %v4536_v18 = vpop.f32.mrf.mxu1  ;;  %v7077_v47 = vpop.permute.xlu1 %7076  ;;  %7219 = vmatprep.mubr.bf16.mxu0 %v9573_v8 }
 0x4ce   :  { %v10878_v50 = vadd.f32 %v4536_v18, %v4245_v28  ;;  %v10880_v39 = vpop.f32.mrf.mxu0  ;;  %v7087_v15 = vsel %vm11681_vm6, %v7075_v7, %v7077_v47  ;;  %v7079_v63 = vpop.permute.xlu0 %7078  ;;  %v4254_v7 = vadd.f32 %v4236_v31, %v4020_v16 }
 0x4cf   :  { %11680 = vst [vmem:[#allocation24_spill] sm:$0xff] %v10880_v39  ;;  %v4538_v12 = vpop.f32.mrf.mxu1  ;;  %8397 = vmatmul.mubr.msk.bf16.vlgmr.msra.gmra.mxu1 %vm11683_vm14, %v8579_v22  ;;  %7201 = vmatprep.subr.bf16.mxu0 %v7087_v15  ;;  %v7088_v28 = vsel %vm11685_vm4, %v7077_v47, %v7079_v63 }
 0x4d0   :  { %11679 = vst [vmem:[#allocation15_spill] sm:$0xff] %v10878_v50  ;;  %v10888_v62 = vadd.f32 %v4538_v12, %v4246_v33  ;;  %v10891_v18 = vpop.f32.mrf.mxu0  ;;  %v7089_v50 = vsel %vm11687_vm13, %v7079_v63, %v7081_v38  ;;  %7202 = vmatpush1.bf16.msra.mxu0 %v7086_v20  ;;  %7262 = vmatprep.mubr.bf16.mxu1 %v9573_v8 }
 0x4d1   :  { %11686 = vst [vmem:[#allocation19_spill] sm:$0xff] %v10891_v18  ;;  %v4540_v43 = vpop.f32.mrf.mxu1  ;;  %7244 = vmatprep.subr.bf16.mxu1 %v7089_v50  ;;  %7347 = vmatprep.subr.bf16.mxu0 %v7315_v11  ;;  %v7305_v23 = vpop.permute.xlu1 %7304 }
 0x4d2   :  { %11684 = vst [vmem:[#allocation7_spill] sm:$0xff] %v10888_v62  ;;  %v10895_v53 = vadd.f32 %v4540_v43, %v4253_v52  ;;  %v10897_v15 = vpop.f32.mrf.mxu0  ;;  %7245 = vmatpush1.bf16.msra.mxu1 %v7088_v28  ;;  %v7303_v12 = vpop.permute.xlu0 %7302 }
 0x4d3   :  { %11689 = vst [vmem:[#allocation17_spill] sm:$0xff] %v10897_v15  ;;  %v4542_v33 = vpop.f32.mrf.mxu1  ;;  %v7317_v63 = vsel %vm4892_vm9, %v7303_v12, %v7305_v23  ;;  %v7316_v52 = vsel %vm4892_vm9, %v7301_v30, %v7303_v12  ;;  %v8580_v30 = vld [vmem:[%s11352_s3 + $0x38] sm:$0xff]  }
 0x4d4   :  { %11688 = vst [vmem:[#allocation6_spill] sm:$0xff] %v10895_v53  ;;  %v10899_v47 = vadd.f32 %v4542_v33, %v4254_v7  ;;  %v10901_v62 = vpop.f32.mrf.mxu0  ;;  %8398 = vmatmul.mubr.msk.bf16.vlgmr.msra.gmra.mxu0 %vm11691_vm15, %v8579_v22  ;;  %7390 = vmatprep.subr.bf16.mxu1 %v7317_v63 }
 0x4d5   :  { %v10904_v38 = vpop.f32.mrf.mxu1  ;;  %v7307_v50 = vpop.permute.xlu1 %7306  ;;  %7365 = vmatprep.mubr.bf16.mxu0 %v9573_v8 }
 0x4d6   :  { %11690 = vst [vmem:[#allocation18_spill] sm:$0xff] %v10899_v47  ;;  %v10907_v31 = vpop.f32.mrf.mxu0  ;;  %v7297_v20 = vpop.permute.xlu0 %7296  ;;  %v7318_v63 = vsel %vm4892_vm9, %v7305_v23, %v7307_v50 }
 0x4d7   :  { %v10911_v16 = vpop.f32.mrf.mxu1  ;;  %8399 = vmatmul.mubr.msk.bf16.vlgmr.msra.gmra.mxu1 %vm11692_vm11, %v8579_v22  ;;  %v7314_v11 = vsel %vm4892_vm9, %v7297_v20, %v7299_v34 }
 0x4d8   :  { %v10915_v28 = vpop.f32.mrf.mxu0  ;;  %7391 = vmatpush1.bf16.msra.mxu1 %v7316_v52  ;;  %7408 = vmatprep.mubr.bf16.mxu1 %v9573_v8 }
 0x4d9   :  { %v10918_v43 = vpop.f32.mrf.mxu1  ;;  %7348 = vmatpush1.bf16.msra.mxu0 %v7314_v11  ;;  %v7311_v7 = vpop.permute.xlu1 %7310 }
 0x4da   :  { %v10923_v33 = vpop.f32.mrf.mxu0  ;;  %v7309_v22 = vpop.permute.xlu0 %7308 }
 0x4db   :  { %v10925_v12 = vpop.f32.mrf.mxu1  ;;  %v7319_v34 = vsel %vm4892_vm9, %v7307_v50, %v7309_v22 }
 0x4dc   :  { %v10929_v52 = vpop.f32.mrf.mxu0  ;;  %8403 = vmatmul.mubr.msk.bf16.vlgmr.msra.gmra.mxu0 %vm11695_vm0, %v8580_v30  ;;  %7433 = vmatprep.subr.bf16.mxu0 %v7319_v34  ;;  %v7320_v34 = vsel %vm4892_vm9, %v7309_v22, %v7311_v7 }
 0x4dd   :  { %11693 = vst [vmem:[#allocation20_spill] sm:$0xff] %v10929_v52  ;;  %v10931_v20 = vpop.f32.mrf.mxu1  ;;  %7434 = vmatpush1.bf16.msra.mxu0 %v7318_v63  ;;  %v7578_v11 = vpop.permute.xlu1 %7577  ;;  %7451 = vmatprep.mubr.bf16.mxu0 %v9573_v8 }
 0x4de   :  { %11694 = vst [vmem:[#allocation16_spill] sm:$0xff] %v10931_v20  ;;  %v10935_v47 = vpop.f32.mrf.mxu0  ;;  %v7313_v15 = vpop.permute.xlu0 %7312 }
 0x4df   :  { %11696 = vst [vmem:[#allocation21_spill] sm:$0xff] %v10935_v47  ;;  %v10937_v53 = vpop.f32.mrf.mxu1  ;;  %8404 = vmatmul.mubr.msk.bf16.vlgmr.msra.gmra.mxu1 %vm11698_vm7, %v8580_v30  ;;  %v7321_v20 = vsel %vm4892_vm9, %v7311_v7, %v7313_v15  ;;  %vm11704_vm9 = vmmov %vm11695_vm0 }
 0x4e0   :  { %11697 = vst [vmem:[#allocation23_spill] sm:$0xff] %v10937_v53  ;;  %7494 = vmatprep.mubr.bf16.mxu1 %v9573_v8  ;;  %v10941_v23 = vpop.f32.mrf.mxu0  ;;  %7476 = vmatprep.subr.bf16.mxu1 %v7321_v20 }
 0x4e1   :  { %11699 = vst [vmem:[#allocation22_spill] sm:$0xff] %v10941_v23  ;;  %v10943_v50 = vpop.f32.mrf.mxu1  ;;  %v7582_v63 = vpop.permute.xlu1 %7581  ;;  %7477 = vmatpush1.bf16.msra.mxu1 %v7320_v34 }
 0x4e2   :  { %11700 = vst [vmem:[#allocation8_spill] sm:$0xff] %v10943_v50  ;;  %v10947_v18 = vpop.f32.mrf.mxu0  ;;  %v7580_v53 = vpop.permute.xlu0 %7579 }
 0x4e3   :  { %11701 = vst [vmem:[#allocation25_spill] sm:$0xff] %v10947_v18  ;;  %v10949_v47 = vpop.f32.mrf.mxu1  ;;  %v7594_v23 = vsel %vm5198_vm5, %v7578_v11, %v7580_v53 }
 0x4e4   :  { %11702 = vst [vmem:[#allocation10_spill] sm:$0xff] %v10949_v47  ;;  %8405 = vmatmul.mubr.msk.bf16.vlgmr.msra.gmra.mxu0 %vm11703_vm8, %v8580_v30  ;;  %v10955_v39 = vpop.f32.mrf.mxu0  ;;  %7626 = vmatprep.subr.bf16.mxu0 %v7594_v23  ;;  %v8581_v47 = vld [vmem:[%s11352_s3 + $0x40] sm:$0xff]   ;;  %v7595_v23 = vsel %vm5198_vm5, %v7580_v53, %v7582_v63 }
 0x4e5   :  { %v10951_v52 = vpop.f32.mrf.mxu1  ;;  %v7576_v15 = vpop.permute.xlu1 %7575  ;;  %7644 = vmatprep.mubr.bf16.mxu0 %v9573_v8 }
 0x4e6   :  { %v7593_v7 = vsel %vm5198_vm5, %v7576_v15, %v7578_v11  ;;  %v7584_v22 = vpop.permute.xlu0 %7583  ;;  %v10968_v50 = vpop.f32.mrf.mxu0 }
 0x4e7   :  { %8406 = vmatmul.mubr.msk.bf16.vlgmr.msra.gmra.mxu1 %vm11704_vm9, %v8580_v30  ;;  %7627 = vmatpush1.bf16.msra.mxu0 %v7593_v7  ;;  %v10961_v20 = vpop.f32.mrf.mxu1  ;;  %v7596_v34 = vsel %vm5198_vm5, %v7582_v63, %v7584_v22 }
 0x4e8   :  { %7687 = vmatprep.mubr.bf16.mxu1 %v9573_v8  ;;  %7669 = vmatprep.subr.bf16.mxu1 %v7596_v34  ;;  %v10974_v18 = vpop.f32.mrf.mxu0 }
 0x4e9   :  { %v7588_v11 = vpop.permute.xlu1 %7587  ;;  %7670 = vmatpush1.bf16.msra.mxu1 %v7595_v23  ;;  %v10970_v15 = vpop.f32.mrf.mxu1 }
 0x4ea   :  { %v10982_v13 = vpop.f32.mrf.mxu0 }
 0x4eb   :  { %v7586_v30 = vpop.permute.xlu0 %7585  ;;  %v4995_v34 = vpop.f32.mrf.mxu1 }
 0x4ec   :  { %8419 = vmatmul.mubr.msk.bf16.vlgmr.msra.gmra.mxu0 %vm11705_vm2, %v8581_v47  ;;  %v7598_v7 = vsel %vm5198_vm5, %v7586_v30, %v7588_v11  ;;  %v7597_v54 = vsel %vm5198_vm5, %v7584_v22, %v7586_v30 }
 0x4ed   :  { %7712 = vmatprep.subr.bf16.mxu0 %v7598_v7  ;;  %7730 = vmatprep.mubr.bf16.mxu0 %v9573_v8  ;;  %v7592_v63 = vpop.permute.xlu1 %7591  ;;  %v10984_v22 = vpop.f32.mrf.mxu1  ;;  %v3250_v7 = vadd.f32 %v10632_v3, %v10542_v61  ;;  %v4240_v3 = vadd.f32 %v10809_v45, %v10755_v4 }
 0x4ee   :  { %7713 = vmatpush1.bf16.msra.mxu0 %v7597_v54  ;;  %v10987_v54 = vpop.f32.mrf.mxu0 }
 0x4ef   :  { %8420 = vmatmul.mubr.msk.bf16.vlgmr.msra.gmra.mxu1 %vm11706_vm10, %v8581_v47  ;;  %v7590_v53 = vpop.permute.xlu0 %7589  ;;  %v10992_v30 = vpop.f32.mrf.mxu1 }
 0x4f0   :  { %7773 = vmatprep.mubr.bf16.mxu1 %v9573_v8  ;;  %v7599_v23 = vsel %vm5198_vm5, %v7588_v11, %v7590_v53  ;;  %v7600_v59 = vsel %vm5198_vm5, %v7590_v53, %v7592_v63  ;;  %v3293_v8 = vadd.f32 %v10643_v44, %v10560_v46  ;;  %11709 = vst [vmem:[#allocation26_spill] sm:$0xff] %v10992_v30  ;;  %v10994_v11 = vpop.f32.mrf.mxu0 }
 0x4f1   :  { %7755 = vmatprep.subr.bf16.mxu1 %v7600_v59  ;;  %v4241_v59 = vadd.f32 %v10806_v27, %v10748_v49  ;;  %v11001_v63 = vpop.f32.mrf.mxu1  ;;  %v4242_v46 = vadd.f32 %v10813_v24, %v10758_v6  ;;  %v3704_v30 = vadd.f32 %v10697_v40, %v3250_v7  ;;  %v4247_v27 = vadd.f32 %v10816_v2, %v10763_v41 }
 0x4f2   :  { %7756 = vmatpush1.bf16.msra.mxu1 %v7599_v23  ;;  %v3706_v53 = vadd.f32 %v10703_v51, %v3293_v8  ;;  %v11008_v23 = vpop.f32.mrf.mxu0  ;;  %v4249_v51 = vadd.f32 %v10819_v10, %v10769_v55 }
 0x4f3   :  { %v4547_v44 = vadd.f32 %v10850_v56, %v4241_v59  ;;  %v11024_v24 = vpop.f32.mrf.mxu1  ;;  %v4553_v41 = vadd.f32 %v10860_v21, %v4247_v27 }
 0x4f4   :  { %8421 = vmatmul.mubr.msk.bf16.vlgmr.msra.gmra.mxu0 %vm11707_vm1, %v8581_v47  ;;  %v4016_v61 = vadd.f32 %v10773_v29, %v3706_v53  ;;  %v4546_v29 = vadd.f32 %v10853_v35, %v4240_v3  ;;  %v4555_v4 = vadd.f32 %v10865_v42, %v4249_v51 }
 0x4f5   :  { %v4852_v6 = vadd.f32 %v10904_v38, %v4547_v44 }
 0x4f6   :  { %v4250_v40 = vadd.f32 %v10826_v9, %v4016_v61  ;;  %v4851_v9 = vadd.f32 %v10907_v31, %v4546_v29 }
 0x4f7   :  { %8422 = vmatmul.mubr.msk.bf16.vlgmr.msra.gmra.mxu1 %vm11708_vm12, %v8581_v47  ;;  %v4239_v47 = vadd.f32 %v10803_v58, %v10745_v19  ;;  %v4548_v19 = vadd.f32 %v10857_v57, %v4242_v46  ;;  %v4014_v58 = vadd.f32 %v10771_v5, %v3704_v30  ;;  %v5086_v10 = vadd.f32 %v10951_v52, %v4852_v6 }
 0x4f8   :  { %v4556_v2 = vadd.f32 %v10872_v48, %v4250_v40  ;;  %v4860_v57 = vadd.f32 %v10918_v43, %v4555_v4  ;;  %v5085_v48 = vadd.f32 %v10968_v50, %v4851_v9  ;;  %v3336_v46 = vadd.f32 %v10661_v37, %v10600_v60  ;;  %v11713_v40 = vld [vmem:[#allocation14_spill] sm:$0xff]  ;;  %v11714_v4 = vld [vmem:[#allocation12_spill] sm:$0xff] }
 0x4f9   :  { %v4545_v49 = vadd.f32 %v10846_v36, %v4239_v47  ;;  %v4853_v45 = vadd.f32 %v10911_v16, %v4548_v19  ;;  %v11030_v36 = vpop.f32.mrf.mxu0  ;;  %v4248_v5 = vadd.f32 %v10824_v25, %v4014_v58  ;;  %v4858_v25 = vadd.f32 %v10915_v28, %v4553_v41 }
 0x4fa   :  { %v4861_v21 = vadd.f32 %v10925_v12, %v4556_v2  ;;  %v5094_v8 = vadd.f32 %v10970_v15, %v4860_v57  ;;  %v4243_v60 = vadd.f32 %v10828_v26, %v10778_v1  ;;  %v3708_v6 = vadd.f32 %v10736_v32, %v3336_v46  ;;  %v11712_v1 = vld [vmem:[#allocation13_spill] sm:$0xff]  ;;  %v11719_v2 = vld [vmem:[#allocation19_spill] sm:$0xff] }
 0x4fb   :  { %v4850_v55 = vadd.f32 %v10901_v62, %v4545_v49  ;;  %v5087_v62 = vadd.f32 %v10961_v20, %v4853_v45  ;;  %v4554_v16 = vadd.f32 %v10870_v17, %v4248_v5  ;;  %v5092_v17 = vadd.f32 %v10974_v18, %v4858_v25  ;;  %v11716_v45 = vld [vmem:[#allocation24_spill] sm:$0xff]  ;;  %v11718_v5 = vld [vmem:[#allocation9_spill] sm:$0xff]  ;;  %v11722_v25 = vld [vmem:[#allocation22_spill] sm:$0xff] }
 0x4fc   :  { %v11036_v35 = vpop.permute.xlu0 %5408  ;;  %v5095_v59 = vadd.f32 %v4995_v34, %v4861_v21  ;;  %v4244_v58 = vadd.f32 %v10831_v14, %v10788_v0  ;;  %v4549_v26 = vadd.f32 %v11712_v1, %v4243_v60  ;;  %v4018_v29 = vadd.f32 %v11713_v40, %v3708_v6  ;;  %v11717_v0 = vld [vmem:[#allocation20_spill] sm:$0xff]  ;;  %v11727_v46 = vld [vmem:[#allocation23_spill] sm:$0xff] }
 0x4fd   :  { %11710 = vst [vmem:[#allocation27_spill] sm:$0xff] %v11036_v35  ;;  %v5084_v42 = vadd.f32 %v10955_v39, %v4850_v55  ;;  %v11047_v39 = vpop.permute.xlu1 %5413  ;;  %v4859_v20 = vadd.f32 %v10923_v33, %v4554_v16  ;;  %v11715_v55 = vld [vmem:[#allocation11_spill] sm:$0xff] }
 0x4fe   :  { %11711 = vst [vmem:[#allocation28_spill] sm:$0xff] %v11047_v39  ;;  %v4251_v32 = vadd.f32 %v11715_v55, %v11714_v4  ;;  %v4854_v14 = vadd.f32 %v11717_v0, %v4549_v26  ;;  %v4252_v41 = vadd.f32 %v11718_v5, %v4018_v29 }
 0x4ff   :  { %v5093_v33 = vadd.f32 %v10982_v13, %v4859_v20 }
 0x500   :  { %v4557_v9 = vadd.f32 %v11719_v2, %v4251_v32 }
 0x502   :  { %v4862_v21 = vadd.f32 %v11722_v25, %v4557_v9 }
 0x503   :  { %v5295_v56 = vpop.f32.mrf.mxu1 }
 0x504   :  { %v5392_v38 = vadd.f32 %v5295_v56, %v5086_v10  ;;  %v4550_v10 = vadd.f32 %v11716_v45, %v4244_v58  ;;  %v11720_v56 = vld [vmem:[#allocation21_spill] sm:$0xff] }
 0x505   :  { %v5252_v52 = vpop.f32.mrf.mxu0  ;;  %v5297_v31 = vpop.f32.mrf.mxu1 }
 0x506   :  { %v5418_v30 = vadd.f32 %v11036_v35, %v5392_v38  ;;  %v5390_v43 = vadd.f32 %v5252_v52, %v5084_v42  ;;  %v5393_v7 = vadd.f32 %v5297_v31, %v5087_v62  ;;  %v4855_v57 = vadd.f32 %v11720_v56, %v4550_v10  ;;  %v11721_v38 = vld [vmem:[#allocation17_spill] sm:$0xff] }
 0x507   :  { %v5254_v28 = vpop.f32.mrf.mxu0  ;;  %v5299_v53 = vpop.f32.mrf.mxu1  ;;  %v5088_v42 = vadd.f32 %v10987_v54, %v4854_v14  ;;  %v4558_v16 = vadd.f32 %v11721_v38, %v4252_v41 }
 0x508   :  { %5434 = vst [vmem:[%s11354_s5 + $0x10] sm:$0xff] %v5418_v30  ;;  %v5416_v12 = vadd.f32 %v11036_v35, %v5390_v43  ;;  %v5419_v50 = vadd.f32 %v11036_v35, %v5393_v7  ;;  %v5391_v15 = vadd.f32 %v5254_v28, %v5085_v48  ;;  %v5400_v47 = vadd.f32 %v5299_v53, %v5094_v8  ;;  %v11723_v8 = vld [vmem:[#allocation25_spill] sm:$0xff] }
 0x509   :  { %v5256_v44 = vpop.f32.mrf.mxu0  ;;  %v5301_v18 = vpop.f32.mrf.mxu1  ;;  %v5089_v48 = vadd.f32 %v10994_v11, %v4855_v57  ;;  %v4863_v30 = vadd.f32 %v11723_v8, %v4558_v16  ;;  %v5096_v43 = vadd.f32 %v11008_v23, %v4862_v21 }
 0x50a   :  { %5432 = vst [vmem:[%s11354_s5] sm:$0xff] %v5416_v12  ;;  %5435 = vst [vmem:[%s11354_s5 + $0x18] sm:$0xff] %v5419_v50  ;;  %v5417_v34 = vadd.f32 %v11036_v35, %v5391_v15  ;;  %v5398_v61 = vadd.f32 %v5256_v44, %v5092_v17  ;;  %v5401_v3 = vadd.f32 %v5301_v18, %v5095_v59  ;;  %v11724_v12 = vld [vmem:[#allocation15_spill] sm:$0xff]  ;;  %v11725_v50 = vld [vmem:[#allocation16_spill] sm:$0xff] }
 0x50b   :  { %v5426_v51 = vadd.f32 %v11047_v39, %v5400_v47  ;;  %v5258_v37 = vpop.f32.mrf.mxu0  ;;  %v5097_v59 = vadd.f32 %v11030_v36, %v4863_v30  ;;  %v4856_v15 = vadd.f32 %v11725_v50, %v11724_v12  ;;  %v11726_v47 = vld [vmem:[#allocation7_spill] sm:$0xff] }
 0x50c   :  { %5433 = vst [vmem:[%s11354_s5 + $0x8] sm:$0xff] %v5417_v34  ;;  %v5424_v13 = vadd.f32 %v11047_v39, %v5398_v61  ;;  %v5427_v49 = vadd.f32 %v11047_v39, %v5401_v3  ;;  %v5399_v19 = vadd.f32 %v5258_v37, %v5093_v33  ;;  %v4857_v33 = vadd.f32 %v11727_v46, %v11726_v47  ;;  %v11728_v34 = vld [vmem:[#allocation6_spill] sm:$0xff]  ;;  %v11729_v61 = vld [vmem:[#allocation8_spill] sm:$0xff] }
 0x50d   :  { %5442 = vst [vmem:[%s11354_s5 + $0x50] sm:$0xff] %v5426_v51  ;;  %v5090_v44 = vadd.f32 %v10984_v22, %v4856_v15  ;;  %v4864_v3 = vadd.f32 %v11729_v61, %v11728_v34  ;;  %v11730_v51 = vld [vmem:[#allocation26_spill] sm:$0xff] }
 0x50e   :  { %5440 = vst [vmem:[%s11354_s5 + $0x40] sm:$0xff] %v5424_v13  ;;  %5443 = vst [vmem:[%s11354_s5 + $0x58] sm:$0xff] %v5427_v49  ;;  %v5425_v27 = vadd.f32 %v11047_v39, %v5399_v19  ;;  %v5091_v60 = vadd.f32 %v11730_v51, %v4857_v33  ;;  %v11731_v49 = vld [vmem:[#allocation18_spill] sm:$0xff] }
 0x50f   :  { %v11732_v19 = vld [vmem:[#allocation10_spill] sm:$0xff]  ;;  %v5098_v58 = vadd.f32 %v11001_v63, %v4864_v3 }
 0x510   :  { %5441 = vst [vmem:[%s11354_s5 + $0x48] sm:$0xff] %v5425_v27  ;;  %v4865_v6 = vadd.f32 %v11732_v19, %v11731_v49 }
 0x512   :  { %v5338_v62 = vpop.f32.mrf.mxu0  ;;  %v5099_v40 = vadd.f32 %v11024_v24, %v4865_v6 }
 0x513   :  { %v5394_v52 = vadd.f32 %v5338_v62, %v5088_v42 }
 0x514   :  { %v5340_v31 = vpop.f32.mrf.mxu0 }
 0x515   :  { %v5420_v7 = vadd.f32 %v11036_v35, %v5394_v52  ;;  %v5395_v20 = vadd.f32 %v5340_v31, %v5089_v48 }
 0x516   :  { %v5342_v17 = vpop.f32.mrf.mxu0 }
 0x517   :  { %5436 = vst [vmem:[%s11354_s5 + $0x20] sm:$0xff] %v5420_v7  ;;  %v5421_v54 = vadd.f32 %v11036_v35, %v5395_v20  ;;  %v5402_v28 = vadd.f32 %v5342_v17, %v5096_v43 }
 0x518   :  { %v5344_v11 = vpop.f32.mrf.mxu0 }
 0x519   :  { %5437 = vst [vmem:[%s11354_s5 + $0x28] sm:$0xff] %v5421_v54  ;;  %v5428_v23 = vadd.f32 %v11047_v39, %v5402_v28  ;;  %v5403_v53 = vadd.f32 %v5344_v11, %v5097_v59 }
 0x51b   :  { %5444 = vst [vmem:[%s11354_s5 + $0x60] sm:$0xff] %v5428_v23  ;;  %v5429_v36 = vadd.f32 %v11047_v39, %v5403_v53 }
 0x51d   :  { %5445 = vst [vmem:[%s11354_s5 + $0x68] sm:$0xff] %v5429_v36 }
 0x524   :  { %v5381_v18 = vpop.f32.mrf.mxu1 }
 0x525   :  { %v5396_v37 = vadd.f32 %v5381_v18, %v5090_v44 }
 0x526   :  { %v5383_v13 = vpop.f32.mrf.mxu1 }
 0x527   :  { %v5422_v1 = vadd.f32 %v11036_v35, %v5396_v37  ;;  %v5397_v26 = vadd.f32 %v5383_v13, %v5091_v60 }
 0x528   :  { %v5385_v27 = vpop.f32.mrf.mxu1 }
 0x529   :  { %5438 = vst [vmem:[%s11354_s5 + $0x30] sm:$0xff] %v5422_v1  ;;  %v5423_v22 = vadd.f32 %v11036_v35, %v5397_v26  ;;  %v5404_v29 = vadd.f32 %v5385_v27, %v5098_v58 }
 0x52a   :  { %v5387_v4 = vpop.f32.mrf.mxu1 }
 0x52b   :  { %5439 = vst [vmem:[%s11354_s5 + $0x38] sm:$0xff] %v5423_v22  ;;  %v5430_v63 = vadd.f32 %v11047_v39, %v5404_v29  ;;  %v5405_v55 = vadd.f32 %v5387_v4, %v5099_v40  ;;  %v5583_v32 = vpop.f32.mrf.mxu0 }
 0x52c   :  { %v5626_v45 = vpop.f32.mrf.mxu1 }
 0x52d   :  { %5446 = vst [vmem:[%s11354_s5 + $0x70] sm:$0xff] %v5430_v63  ;;  %v5431_v24 = vadd.f32 %v11047_v39, %v5405_v55  ;;  %v5585_v10 = vpop.f32.mrf.mxu0 }
 0x52e   :  { %v5628_v0 = vpop.f32.mrf.mxu1 }
 0x52f   :  { %5447 = vst [vmem:[%s11354_s5 + $0x78] sm:$0xff] %v5431_v24  ;;  %v5587_v14 = vpop.f32.mrf.mxu0 }
 0x530   :  { %v5630_v5 = vpop.f32.mrf.mxu1 }
 0x531   :  { %v5589_v41 = vpop.f32.mrf.mxu0 }
 0x532   :  { %v5632_v9 = vpop.f32.mrf.mxu1 }
 0x533   :  { %v5669_v2 = vpop.f32.mrf.mxu0 }
 0x535   :  { %v5671_v56 = vpop.f32.mrf.mxu0 }
 0x537   :  { %v5673_v57 = vpop.f32.mrf.mxu0  ;;  %v5712_v42 = vpop.f32.mrf.mxu1 }
 0x539   :  { %v5675_v62 = vpop.f32.mrf.mxu0  ;;  %v5714_v38 = vpop.f32.mrf.mxu1 }
 0x53b   :  { %v5716_v16 = vpop.f32.mrf.mxu1  ;;  %v5803_v25 = vpop.f32.mrf.mxu0 }
 0x53c   :  { %v5804_v21 = vadd.f32 %v5803_v25, %v5583_v32 }
 0x53d   :  { %v5718_v48 = vpop.f32.mrf.mxu1  ;;  %v5805_v52 = vpop.f32.mrf.mxu0 }
 0x53e   :  { %v5806_v31 = vadd.f32 %v5805_v52, %v5585_v10 }
 0x53f   :  { %v5807_v8 = vpop.f32.mrf.mxu0  ;;  %v5846_v30 = vpop.f32.mrf.mxu1 }
 0x540   :  { %v5808_v43 = vadd.f32 %v5807_v8, %v5587_v14  ;;  %v5847_v7 = vadd.f32 %v5846_v30, %v5626_v45 }
 0x541   :  { %v5809_v20 = vpop.f32.mrf.mxu0  ;;  %v5848_v17 = vpop.f32.mrf.mxu1 }
 0x542   :  { %v5810_v59 = vadd.f32 %v5809_v20, %v5589_v41  ;;  %v5849_v54 = vadd.f32 %v5848_v17, %v5628_v0 }
 0x543   :  { %v5850_v28 = vpop.f32.mrf.mxu1  ;;  %v5889_v11 = vpop.f32.mrf.mxu0 }
 0x544   :  { %v5851_v23 = vadd.f32 %v5850_v28, %v5630_v5  ;;  %v5890_v53 = vadd.f32 %v5889_v11, %v5669_v2 }
 0x545   :  { %v5852_v36 = vpop.f32.mrf.mxu1  ;;  %v5891_v12 = vpop.f32.mrf.mxu0 }
 0x546   :  { %v5853_v50 = vadd.f32 %v5852_v36, %v5632_v9  ;;  %v5892_v15 = vadd.f32 %v5891_v12, %v5671_v56 }
 0x547   :  { %v5893_v47 = vpop.f32.mrf.mxu0  ;;  %v5932_v46 = vpop.f32.mrf.mxu1 }
 0x548   :  { %v5894_v33 = vadd.f32 %v5893_v47, %v5673_v57  ;;  %v5933_v44 = vadd.f32 %v5932_v46, %v5712_v42 }
 0x549   :  { %v5895_v18 = vpop.f32.mrf.mxu0  ;;  %v5934_v34 = vpop.f32.mrf.mxu1 }
 0x54a   :  { %v5896_v61 = vadd.f32 %v5895_v18, %v5675_v62  ;;  %v5935_v3 = vadd.f32 %v5934_v34, %v5714_v38 }
 0x54b   :  { %v5936_v51 = vpop.f32.mrf.mxu1  ;;  %v6066_v60 = vpop.f32.mrf.mxu0 }
 0x54c   :  { %v5937_v37 = vadd.f32 %v5936_v51, %v5716_v16  ;;  %v6204_v13 = vadd.f32 %v6066_v60, %v5804_v21 }
 0x54d   :  { %v5938_v49 = vpop.f32.mrf.mxu1  ;;  %v6068_v19 = vpop.f32.mrf.mxu0 }
 0x54e   :  { %v5939_v6 = vadd.f32 %v5938_v49, %v5718_v48  ;;  %v6205_v58 = vadd.f32 %v6068_v19, %v5806_v31 }
 0x54f   :  { %v6070_v1 = vpop.f32.mrf.mxu0  ;;  %v6109_v26 = vpop.f32.mrf.mxu1 }
 0x550   :  { %v6212_v27 = vadd.f32 %v6070_v1, %v5808_v43  ;;  %v6206_v40 = vadd.f32 %v6109_v26, %v5847_v7 }
 0x551   :  { %v6072_v22 = vpop.f32.mrf.mxu0  ;;  %v6111_v29 = vpop.f32.mrf.mxu1 }
 0x552   :  { %v6213_v4 = vadd.f32 %v6072_v22, %v5810_v59  ;;  %v6207_v63 = vadd.f32 %v6111_v29, %v5849_v54 }
 0x553   :  { %v6113_v55 = vpop.f32.mrf.mxu1  ;;  %v6152_v32 = vpop.f32.mrf.mxu0 }
 0x554   :  { %v6214_v45 = vadd.f32 %v6113_v55, %v5851_v23  ;;  %v6208_v24 = vadd.f32 %v6152_v32, %v5890_v53 }
 0x555   :  { %v6115_v10 = vpop.f32.mrf.mxu1  ;;  %v6154_v0 = vpop.f32.mrf.mxu0 }
 0x556   :  { %v6215_v14 = vadd.f32 %v6115_v10, %v5853_v50  ;;  %v6209_v5 = vadd.f32 %v6154_v0, %v5892_v15 }
 0x557   :  { %v6156_v41 = vpop.f32.mrf.mxu0  ;;  %v6195_v2 = vpop.f32.mrf.mxu1 }
 0x558   :  { %v6216_v9 = vadd.f32 %v6156_v41, %v5894_v33  ;;  %v6210_v56 = vadd.f32 %v6195_v2, %v5933_v44 }
 0x559   :  { %v6158_v57 = vpop.f32.mrf.mxu0  ;;  %v6197_v42 = vpop.f32.mrf.mxu1 }
 0x55a   :  { %v6217_v62 = vadd.f32 %v6158_v57, %v5896_v61  ;;  %v6211_v38 = vadd.f32 %v6197_v42, %v5935_v3 }
 0x55b   :  { %v6199_v16 = vpop.f32.mrf.mxu1  ;;  %v6345_v25 = vpop.f32.mrf.mxu0 }
 0x55c   :  { %v6218_v21 = vadd.f32 %v6199_v16, %v5937_v37  ;;  %v11150_v48 = vadd.f32 %v6345_v25, %v6204_v13 }
 0x55d   :  { %v6201_v52 = vpop.f32.mrf.mxu1  ;;  %v6347_v31 = vpop.f32.mrf.mxu0 }
 0x55e   :  { %v6219_v8 = vadd.f32 %v6201_v52, %v5939_v6  ;;  %v11152_v30 = vadd.f32 %v6347_v31, %v6205_v58 }
 0x55f   :  { %v6349_v43 = vpop.f32.mrf.mxu0  ;;  %v6388_v7 = vpop.f32.mrf.mxu1 }
 0x560   :  { %v11154_v20 = vadd.f32 %v6349_v43, %v6212_v27  ;;  %v11156_v17 = vadd.f32 %v6388_v7, %v6206_v40 }
 0x561   :  { %v6351_v59 = vpop.f32.mrf.mxu0  ;;  %v6390_v54 = vpop.f32.mrf.mxu1 }
 0x562   :  { %v11158_v28 = vadd.f32 %v6351_v59, %v6213_v4  ;;  %v11160_v11 = vadd.f32 %v6390_v54, %v6207_v63 }
 0x563   :  { %v6392_v23 = vpop.f32.mrf.mxu1 }
 0x564   :  { %v11162_v53 = vadd.f32 %v6392_v23, %v6214_v45  ;;  %v6431_v36 = vpop.f32.mrf.mxu0 }
 0x565   :  { %v6394_v12 = vpop.f32.mrf.mxu1  ;;  %v11164_v50 = vadd.f32 %v6431_v36, %v6208_v24 }
 0x566   :  { %v11166_v15 = vadd.f32 %v6394_v12, %v6215_v14  ;;  %v6433_v47 = vpop.f32.mrf.mxu0 }
 0x567   :  { %v6474_v46 = vpop.f32.mrf.mxu1  ;;  %v11168_v33 = vadd.f32 %v6433_v47, %v6209_v5 }
 0x568   :  { %v11170_v44 = vadd.f32 %v6474_v46, %v6210_v56  ;;  %v6435_v18 = vpop.f32.mrf.mxu0 }
 0x569   :  { %v6476_v34 = vpop.f32.mrf.mxu1  ;;  %v11172_v61 = vadd.f32 %v6435_v18, %v6216_v9 }
 0x56a   :  { %v11174_v3 = vadd.f32 %v6476_v34, %v6211_v38  ;;  %v6437_v51 = vpop.f32.mrf.mxu0 }
 0x56b   :  { %v6478_v60 = vpop.f32.mrf.mxu1  ;;  %v11176_v37 = vadd.f32 %v6437_v51, %v6217_v62 }
 0x56c   :  { %v11178_v13 = vadd.f32 %v6478_v60, %v6218_v21  ;;  %v6577_v49 = vpop.f32.mrf.mxu0 }
 0x56d   :  { %v6480_v19 = vpop.f32.mrf.mxu1 }
 0x56e   :  { %v11180_v6 = vadd.f32 %v6480_v19, %v6219_v8  ;;  %v6579_v58 = vpop.f32.mrf.mxu0 }
 0x56f   :  { %v6620_v1 = vpop.f32.mrf.mxu1 }
 0x570   :  { %v6581_v26 = vpop.f32.mrf.mxu0 }
 0x571   :  { %v6622_v27 = vpop.f32.mrf.mxu1 }
 0x572   :  { %v6583_v40 = vpop.f32.mrf.mxu0 }
 0x573   :  { %v6624_v22 = vpop.f32.mrf.mxu1 }
 0x574   :  { %v6663_v29 = vpop.f32.mrf.mxu0 }
 0x575   :  { %v6626_v4 = vpop.f32.mrf.mxu1 }
 0x576   :  { %v6665_v63 = vpop.f32.mrf.mxu0 }
 0x577   :  { %v6706_v55 = vpop.f32.mrf.mxu1 }
 0x578   :  { %v6667_v32 = vpop.f32.mrf.mxu0 }
 0x579   :  { %v6708_v45 = vpop.f32.mrf.mxu1 }
 0x57a   :  { %v6669_v24 = vpop.f32.mrf.mxu0 }
 0x57b   :  { %v6710_v10 = vpop.f32.mrf.mxu1 }
 0x57c   :  { %v6856_v0 = vpop.f32.mrf.mxu0 }
 0x57d   :  { %v6712_v14 = vpop.f32.mrf.mxu1 }
 0x57e   :  { %v6858_v5 = vpop.f32.mrf.mxu0 }
 0x57f   :  { %v6899_v41 = vpop.f32.mrf.mxu1 }
 0x580   :  { %v6860_v2 = vpop.f32.mrf.mxu0 }
 0x581   :  { %v6901_v9 = vpop.f32.mrf.mxu1 }
 0x582   :  { %v6862_v56 = vpop.f32.mrf.mxu0 }
 0x583   :  { %v6903_v57 = vpop.f32.mrf.mxu1 }
 0x584   :  { %v6942_v42 = vpop.f32.mrf.mxu0 }
 0x585   :  { %v6905_v62 = vpop.f32.mrf.mxu1 }
 0x586   :  { %v6944_v38 = vpop.f32.mrf.mxu0 }
 0x587   :  { %v6985_v16 = vpop.f32.mrf.mxu1 }
 0x588   :  { %v11182_v25 = vpop.f32.mrf.mxu0 }
 0x589   :  { %v11184_v21 = vpop.f32.mrf.mxu1 }
 0x58a   :  { %v11186_v52 = vpop.f32.mrf.mxu0 }
 0x58b   :  { %v11188_v31 = vpop.f32.mrf.mxu1 }
 0x58c   :  { %11733 = vst [vmem:[#allocation13_spill] sm:$0xff] %v11188_v31  ;;  %v7135_v8 = vpop.f32.mrf.mxu0  ;;  %v6718_v31 = vadd.f32 %v6622_v27, %v11160_v11  ;;  %v6722_v11 = vadd.f32 %v6708_v45, %v11174_v3 }
 0x58d   :  { %v11190_v43 = vpop.f32.mrf.mxu1 }
 0x58e   :  { %11734 = vst [vmem:[#allocation14_spill] sm:$0xff] %v11190_v43  ;;  %v7137_v7 = vpop.f32.mrf.mxu0 }
 0x58f   :  { %v7178_v59 = vpop.f32.mrf.mxu1 }
 0x590   :  { %v11192_v54 = vpop.f32.mrf.mxu0 }
 0x591   :  { %11735 = vst [vmem:[#allocation12_spill] sm:$0xff] %v11192_v54  ;;  %v11194_v23 = vpop.f32.mrf.mxu1 }
 0x592   :  { %11736 = vst [vmem:[#allocation11_spill] sm:$0xff] %v11194_v23  ;;  %v11196_v36 = vpop.f32.mrf.mxu0 }
 0x593   :  { %11737 = vst [vmem:[#allocation24_spill] sm:$0xff] %v11196_v36  ;;  %v11198_v12 = vpop.f32.mrf.mxu1 }
 0x594   :  { %11738 = vst [vmem:[#allocation20_spill] sm:$0xff] %v11198_v12  ;;  %v11200_v47 = vpop.f32.mrf.mxu0 }
 0x595   :  { %11739 = vst [vmem:[#allocation9_spill] sm:$0xff] %v11200_v47  ;;  %v11202_v46 = vpop.f32.mrf.mxu1 }
 0x596   :  { %11740 = vst [vmem:[#allocation19_spill] sm:$0xff] %v11202_v46  ;;  %v11204_v18 = vpop.f32.mrf.mxu0 }
 0x597   :  { %11741 = vst [vmem:[#allocation21_spill] sm:$0xff] %v11204_v18  ;;  %v11206_v34 = vpop.f32.mrf.mxu1 }
 0x598   :  { %11742 = vst [vmem:[#allocation17_spill] sm:$0xff] %v11206_v34  ;;  %v11208_v51 = vpop.f32.mrf.mxu0  ;;  %v6715_v34 = vadd.f32 %v6577_v49, %v11150_v48  ;;  %v6726_v48 = vadd.f32 %v6626_v4, %v11166_v15 }
 0x599   :  { %11743 = vst [vmem:[#allocation22_spill] sm:$0xff] %v11208_v51  ;;  %v11210_v60 = vpop.f32.mrf.mxu1  ;;  %v6716_v51 = vadd.f32 %v6579_v58, %v11152_v30  ;;  %v6720_v30 = vadd.f32 %v6665_v63, %v11168_v33 }
 0x59a   :  { %11744 = vst [vmem:[#allocation25_spill] sm:$0xff] %v11210_v60  ;;  %v11212_v19 = vpop.f32.mrf.mxu0  ;;  %v6723_v60 = vadd.f32 %v6581_v26, %v11154_v20  ;;  %v6727_v20 = vadd.f32 %v6667_v32, %v11172_v61 }
 0x59b   :  { %11745 = vst [vmem:[#allocation15_spill] sm:$0xff] %v11212_v19  ;;  %v11214_v39 = vpop.f32.mrf.mxu1  ;;  %v6717_v19 = vadd.f32 %v6620_v1, %v11156_v17  ;;  %v6721_v17 = vadd.f32 %v6706_v55, %v11170_v44  ;;  %v6994_v1 = vadd.f32 %v6856_v0, %v6715_v34  ;;  %v6995_v15 = vadd.f32 %v6858_v5, %v6716_v51 }
 0x59c   :  { %11746 = vst [vmem:[#allocation16_spill] sm:$0xff] %v11214_v39  ;;  %v7367_v35 = vpop.f32.mrf.mxu0  ;;  %v7002_v26 = vadd.f32 %v6860_v2, %v6723_v60  ;;  %v6999_v63 = vadd.f32 %v6944_v38, %v6720_v30  ;;  %v7001_v0 = vadd.f32 %v11184_v21, %v6722_v11 }
 0x59d   :  { %v11216_v36 = vpop.f32.mrf.mxu1  ;;  %v6996_v33 = vadd.f32 %v6899_v41, %v6717_v19  ;;  %v7000_v3 = vadd.f32 %v6985_v16, %v6721_v17  ;;  %v7274_v32 = vadd.f32 %v7137_v7, %v6995_v15  ;;  %v11751_v41 = vld [vmem:[#allocation12_spill] sm:$0xff]  ;;  %v11757_v19 = vld [vmem:[#allocation9_spill] sm:$0xff]  ;;  %v11758_v30 = vld [vmem:[#allocation19_spill] sm:$0xff] }
 0x59e   :  { %11747 = vst [vmem:[#allocation7_spill] sm:$0xff] %v11216_v36  ;;  %v7369_v12 = vpop.f32.mrf.mxu0  ;;  %v6724_v36 = vadd.f32 %v6583_v40, %v11158_v28  ;;  %v6728_v28 = vadd.f32 %v6669_v24, %v11176_v37  ;;  %v6997_v40 = vadd.f32 %v6901_v9, %v6718_v31  ;;  %v7005_v37 = vadd.f32 %v6905_v62, %v6726_v48  ;;  %v11755_v7 = vld [vmem:[#allocation20_spill] sm:$0xff]  ;;  %v11761_v15 = vld [vmem:[#allocation21_spill] sm:$0xff] }
 0x59f   :  { %v7410_v43 = vpop.f32.mrf.mxu1  ;;  %v7275_v45 = vadd.f32 %v7178_v59, %v6996_v33  ;;  %v7281_v2 = vadd.f32 %v11751_v41, %v7002_v26  ;;  %v7506_v62 = vadd.f32 %v7369_v12, %v7274_v32  ;;  %v7278_v26 = vadd.f32 %v11761_v15, %v6999_v63  ;;  %v11762_v33 = vld [vmem:[#allocation17_spill] sm:$0xff] }
 0x5a0   :  { %v7371_v47 = vpop.f32.mrf.mxu0  ;;  %v7003_v44 = vadd.f32 %v6862_v56, %v6724_v36  ;;  %v7284_v12 = vadd.f32 %v11758_v30, %v7005_v37  ;;  %v11763_v37 = vld [vmem:[#allocation28_spill] sm:$0xff] }
 0x5a1   :  { %v7412_v23 = vpop.f32.mrf.mxu1  ;;  %v7507_v38 = vadd.f32 %v7410_v43, %v7275_v45  ;;  %v7513_v59 = vadd.f32 %v7371_v47, %v7281_v2 }
 0x5a2   :  { %v11218_v46 = vpop.f32.mrf.mxu0 }
 0x5a3   :  { %11748 = vst [vmem:[#allocation23_spill] sm:$0xff] %v11218_v46  ;;  %v11220_v18 = vpop.f32.mrf.mxu1  ;;  %v6725_v46 = vadd.f32 %v6624_v22, %v11162_v53  ;;  %v6729_v53 = vadd.f32 %v6710_v10, %v11178_v13  ;;  %v7007_v10 = vadd.f32 %v11186_v52, %v6728_v28 }
 0x5a4   :  { %11749 = vst [vmem:[#allocation6_spill] sm:$0xff] %v11220_v18  ;;  %v11226_v39 = vpop.f32.mrf.mxu0  ;;  %v6719_v18 = vadd.f32 %v6663_v29, %v11164_v50  ;;  %v6730_v50 = vadd.f32 %v6712_v14, %v11180_v6  ;;  %v7273_v29 = vadd.f32 %v7135_v8, %v6994_v1  ;;  %v7006_v6 = vadd.f32 %v11182_v25, %v6727_v20  ;;  %v11750_v14 = vld [vmem:[#allocation13_spill] sm:$0xff]  ;;  %v11753_v25 = vld [vmem:[#allocation14_spill] sm:$0xff]  ;;  %v11754_v8 = vld [vmem:[#allocation24_spill] sm:$0xff] }
 0x5a5   :  { %v11228_v54 = vpop.f32.mrf.mxu1  ;;  %v7004_v22 = vadd.f32 %v6903_v57, %v6725_v46  ;;  %v7008_v5 = vadd.f32 %v11750_v14, %v6729_v53  ;;  %v11752_v57 = vld [vmem:[#allocation11_spill] sm:$0xff]  ;;  %v11765_v14 = vld [vmem:[#allocation25_spill] sm:$0xff] }
 0x5a6   :  { %v11238_v49 = vpop.f32.mrf.mxu0  ;;  %v6998_v4 = vadd.f32 %v6942_v42, %v6719_v18  ;;  %v7505_v24 = vadd.f32 %v7367_v35, %v7273_v29  ;;  %v7276_v42 = vadd.f32 %v11752_v57, %v6997_v40  ;;  %v7009_v31 = vadd.f32 %v11753_v25, %v6730_v50  ;;  %v11756_v18 = vld [vmem:[#allocation27_spill] sm:$0xff] }
 0x5a7   :  { %v11240_v58 = vpop.f32.mrf.mxu1  ;;  %v7282_v35 = vadd.f32 %v11754_v8, %v7003_v44  ;;  %v7283_v52 = vadd.f32 %v11755_v7, %v7004_v22  ;;  %v7279_v44 = vadd.f32 %v11762_v33, %v7000_v3  ;;  %v7516_v22 = vadd.f32 %v11228_v54, %v7284_v12 }
 0x5a8   :  { %v11246_v27 = vpop.f32.mrf.mxu0  ;;  %v7508_v46 = vadd.f32 %v7412_v23, %v7276_v42  ;;  %v7277_v48 = vadd.f32 %v11757_v19, %v6998_v4  ;;  %v7280_v54 = vadd.f32 %v11765_v14, %v7001_v0  ;;  %v7510_v41 = vadd.f32 %v11238_v49, %v7278_v26 }
 0x5a9   :  { %v11248_v61 = vpop.f32.mrf.mxu1  ;;  %v7511_v2 = vadd.f32 %v11240_v58, %v7279_v44 }
 0x5aa   :  { %v11250_v55 = vpop.f32.mrf.mxu0  ;;  %v11759_v43 = vld [vmem:[#allocation23_spill] sm:$0xff]  ;;  %v7509_v40 = vadd.f32 %v11226_v39, %v7277_v48  ;;  %v7512_v8 = vadd.f32 %v11248_v61, %v7280_v54 }
 0x5ab   :  { %v11252_v13 = vpop.f32.mrf.mxu1  ;;  %v7514_v20 = vadd.f32 %v11759_v43, %v7282_v35  ;;  %v11760_v17 = vld [vmem:[#allocation6_spill] sm:$0xff] }
 0x5ac   :  { %v7646_v9 = vpop.f32.mrf.mxu0  ;;  %v7515_v28 = vadd.f32 %v11760_v17, %v7283_v52 }
 0x5ad   :  { %v11259_v56 = vpop.f32.mrf.mxu1  ;;  %v7784_v16 = vadd.f32 %v7646_v9, %v7505_v24  ;;  %v11764_v24 = vld [vmem:[#allocation22_spill] sm:$0xff] }
 0x5ae   :  { %v7648_v21 = vpop.f32.mrf.mxu0  ;;  %v7285_v39 = vadd.f32 %v11764_v24, %v7006_v6 }
 0x5af   :  { %v7689_v36 = vpop.f32.mrf.mxu1  ;;  %v7800_v34 = vadd.f32 %v7784_v16, %v11756_v18  ;;  %v7785_v51 = vadd.f32 %v7648_v21, %v7506_v62  ;;  %v11767_v16 = vld [vmem:[#allocation16_spill] sm:$0xff]  ;;  %v11768_v21 = vld [vmem:[#allocation7_spill] sm:$0xff] }
 0x5b0   :  { %v7786_v60 = vadd.f32 %v7689_v36, %v7507_v38  ;;  %v7650_v11 = vpop.f32.mrf.mxu0  ;;  %v11766_v38 = vld [vmem:[#allocation15_spill] sm:$0xff]  ;;  %v7287_v58 = vadd.f32 %v11767_v16, %v7008_v5  ;;  %v7517_v25 = vadd.f32 %v11246_v27, %v7285_v39  ;;  %v7288_v27 = vadd.f32 %v11768_v21, %v7009_v31 }
 0x5b1   :  { %v7691_v53 = vpop.f32.mrf.mxu1  ;;  %7816 = vst [vmem:[%s11354_s5 + $0x80] sm:$0xff] %v7800_v34  ;;  %v7801_v23 = vadd.f32 %v7785_v51, %v11756_v18  ;;  %v7792_v47 = vadd.f32 %v7650_v11, %v7513_v59  ;;  %v7286_v49 = vadd.f32 %v11766_v38, %v7007_v10 }
 0x5b2   :  { %v7802_v1 = vadd.f32 %v7786_v60, %v11756_v18  ;;  %v7787_v50 = vadd.f32 %v7691_v53, %v7508_v46  ;;  %v7652_v29 = vpop.f32.mrf.mxu0  ;;  %v7519_v36 = vadd.f32 %v11252_v13, %v7287_v58 }
 0x5b3   :  { %v7693_v4 = vpop.f32.mrf.mxu1  ;;  %7817 = vst [vmem:[%s11354_s5 + $0x88] sm:$0xff] %v7801_v23  ;;  %v7808_v32 = vadd.f32 %v7792_v47, %v11763_v37  ;;  %v7793_v45 = vadd.f32 %v7652_v29, %v7514_v20  ;;  %v7518_v61 = vadd.f32 %v11250_v55, %v7286_v49  ;;  %v7520_v55 = vadd.f32 %v11259_v56, %v7288_v27 }
 0x5b4   :  { %7818 = vst [vmem:[%s11354_s5 + $0x90] sm:$0xff] %v7802_v1  ;;  %v7803_v63 = vadd.f32 %v7787_v50, %v11756_v18  ;;  %v7794_v3 = vadd.f32 %v7693_v4, %v7515_v28  ;;  %v7732_v9 = vpop.f32.mrf.mxu0 }
 0x5b5   :  { %v7695_v57 = vpop.f32.mrf.mxu1  ;;  %7824 = vst [vmem:[%s11354_s5 + $0xc0] sm:$0xff] %v7808_v32  ;;  %v7809_v42 = vadd.f32 %v7793_v45, %v11763_v37  ;;  %v7788_v62 = vadd.f32 %v7732_v9, %v7509_v40 }
 0x5b6   :  { %7819 = vst [vmem:[%s11354_s5 + $0x98] sm:$0xff] %v7803_v63  ;;  %v7810_v6 = vadd.f32 %v7794_v3, %v11763_v37  ;;  %v7795_v0 = vadd.f32 %v7695_v57, %v7516_v22  ;;  %v7734_v35 = vpop.f32.mrf.mxu0 }
 0x5b7   :  { %v7775_v7 = vpop.f32.mrf.mxu1  ;;  %7825 = vst [vmem:[%s11354_s5 + $0xc8] sm:$0xff] %v7809_v42  ;;  %v7804_v52 = vadd.f32 %v7788_v62, %v11756_v18  ;;  %v7789_v59 = vadd.f32 %v7734_v35, %v7510_v41 }
 0x5b8   :  { %7826 = vst [vmem:[%s11354_s5 + $0xd0] sm:$0xff] %v7810_v6  ;;  %v7811_v10 = vadd.f32 %v7795_v0, %v11763_v37  ;;  %v7790_v5 = vadd.f32 %v7775_v7, %v7511_v2  ;;  %v7736_v46 = vpop.f32.mrf.mxu0 }
 0x5b9   :  { %v7777_v34 = vpop.f32.mrf.mxu1  ;;  %7820 = vst [vmem:[%s11354_s5 + $0xa0] sm:$0xff] %v7804_v52  ;;  %v7805_v51 = vadd.f32 %v7789_v59, %v11756_v18  ;;  %v7796_v60 = vadd.f32 %v7736_v46, %v7517_v25 }
 0x5ba   :  { %7827 = vst [vmem:[%s11354_s5 + $0xd8] sm:$0xff] %v7811_v10  ;;  %v7806_v19 = vadd.f32 %v7790_v5, %v11756_v18  ;;  %v7791_v31 = vadd.f32 %v7777_v34, %v7512_v8  ;;  %v7738_v48 = vpop.f32.mrf.mxu0 }
 0x5bb   :  { %v7779_v13 = vpop.f32.mrf.mxu1  ;;  %7821 = vst [vmem:[%s11354_s5 + $0xa8] sm:$0xff] %v7805_v51  ;;  %v7812_v30 = vadd.f32 %v7796_v60, %v11763_v37  ;;  %v7797_v12 = vadd.f32 %v7738_v48, %v7518_v61 }
 0x5bc   :  { %7822 = vst [vmem:[%s11354_s5 + $0xb0] sm:$0xff] %v7806_v19  ;;  %v7807_v43 = vadd.f32 %v7791_v31, %v11756_v18  ;;  %v7798_v20 = vadd.f32 %v7779_v13, %v7519_v36 }
 0x5bd   :  { %v7781_v17 = vpop.f32.mrf.mxu1  ;;  %7828 = vst [vmem:[%s11354_s5 + $0xe0] sm:$0xff] %v7812_v30  ;;  %v7813_v56 = vadd.f32 %v7797_v12, %v11763_v37 }
 0x5be   :  { %7823 = vst [vmem:[%s11354_s5 + $0xb8] sm:$0xff] %v7807_v43  ;;  %v7814_v28 = vadd.f32 %v7798_v20, %v11763_v37  ;;  %v7799_v11 = vadd.f32 %v7781_v17, %v7520_v55 }
 0x5bf   :  { %7829 = vst [vmem:[%s11354_s5 + $0xe8] sm:$0xff] %v7813_v56 }
 0x5c0   :  { %7830 = vst [vmem:[%s11354_s5 + $0xf0] sm:$0xff] %v7814_v28  ;;  %v7815_v18 = vadd.f32 %v7799_v11, %v11763_v37 }
 0x5c2   :  { %7831 = vst [vmem:[%s11354_s5 + $0xf8] sm:$0xff] %v7815_v18 }
 0x5c3   :  { %7836 = vsyncpa [#allocation4], 1 }

</bundles_post_ra>
